<compile_context>
chip_gen: v7x
topology: tpu7x:2x2x1
jax: 0.10.0
libtpu: 0.0.40
codegen_flags: <defaults>
</compile_context>

<pallas_src>
import functools

import jax
import jax.numpy as jnp
from jax.experimental import pallas as pl
from jax.experimental.pallas import tpu as pltpu

NEG_SLOPE = 0.1


def _round_up(x, m):
    return ((x + m - 1) // m) * m


def _divisors_desc(n, step, cap):
    out = []
    d = (min(n, cap) // step) * step
    while d >= step:
        if n % d == 0:
            out.append(d)
        d -= step
    return out


# ---------------------------------------------------------------------------
# Explicit per-generation chip table: VMEM capacity + TensorCore count.
# (review: replace the get_tpu_info probe + 64 MiB fallback; key builders on it.)
# ---------------------------------------------------------------------------
@functools.lru_cache(maxsize=None)
def _chip_config():
    kind = ""
    try:
        kind = jax.devices()[0].device_kind.lower()
    except Exception:
        pass
    if "7" in kind:                          # v7x: 64 MiB VMEM per TC, 2 TCs per chip
        vmem, num_tc = 64 << 20, 2
    elif ("v4" in kind) or ("v5p" in kind):  # megacore chips, 128 MiB VMEM
        vmem, num_tc = 128 << 20, 2
    elif "tpu" in kind:                      # v5e / v6e: single TC, 128 MiB VMEM
        vmem, num_tc = 128 << 20, 1
    else:                                    # unknown backend: size conservatively
        vmem, num_tc = 64 << 20, 1
    budget = int(vmem * 0.60)                # tiling working-set target (double-buffer aware)
    limit = int(vmem * 0.75)                 # scoped VMEM limit handed to Mosaic
    return budget, limit, num_tc


# ---------------------------------------------------------------------------
# Pallas matmul kernels (bias + optional LeakyReLU fused in the epilogue)
# ---------------------------------------------------------------------------
def _mm_kernel_single(x_ref, w_ref, b_ref, o_ref, *, apply_act):
    # Single K block: no accumulator scratch, no extra VMEM->VMEM copy.
    r = jnp.dot(x_ref[...], w_ref[...], preferred_element_type=jnp.float32)
    r = r + b_ref[...]
    if apply_act:
        r = jnp.where(r >= 0, r, NEG_SLOPE * r)
    o_ref[...] = r.astype(o_ref.dtype)


def _mm_kernel_multi(x_ref, w_ref, b_ref, o_ref, acc_ref, *, apply_act):
    k = pl.program_id(2)

    @pl.when(k == 0)
    def _():
        acc_ref[...] = jnp.zeros_like(acc_ref)

    acc_ref[...] += jnp.dot(x_ref[...], w_ref[...],
                            preferred_element_type=jnp.float32)

    @pl.when(k == pl.num_programs(2) - 1)
    def _():
        r = acc_ref[...] + b_ref[...]
        if apply_act:
            r = jnp.where(r >= 0, r, NEG_SLOPE * r)
        o_ref[...] = r.astype(o_ref.dtype)


def _choose_tiles(M, K, N, budget, num_tc, out_bytes):
    """Pick (tm, tk, tn, single_k).

    Preference: (a) single full-K block (no scratch, no K zero-padding) with the
    widest tn (LHS streamed from HBM once) and the largest MXU-aligned row tile,
    (b) otherwise tiled K, shrinking tk (cheap 'arbitrary' axis) before tm/tn.
    >= num_tc parallel tiles are required only on multi-TensorCore chips."""
    Mp = _round_up(M, 8)
    Kp = _round_up(K, 128)

    if N % 128 == 0:
        tn_all = _divisors_desc(N, 128, N)
    else:
        tn_all = [N]        # full-dim lane block: masked stores beat pad + slice round trips

    tm_all = []
    for step in (256, 128, 8):              # MXU-friendly row tiles first
        for d in _divisors_desc(Mp, step, 4096):
            if d not in tm_all:
                tm_all.append(d)
    if not tm_all:
        tm_all = [Mp]

    tk_all = _divisors_desc(Kp, 128, 8192) or [Kp]

    def footprint(tm, tk, tn, single_k):
        b = 2 * 2 * (tm * tk + tk * tn)     # bf16 LHS / weight tiles, double-buffered
        b += 2 * 4 * tn                     # f32 bias, double-buffered
        b += 2 * out_bytes * tm * tn        # output tiles, double-buffered
        if not single_k:
            b += 4 * tm * tn                # f32 accumulator scratch
        return b

    def search(need):
        def ok(tm, tn):
            return (Mp // tm) * (N // tn) >= need
        for tn in tn_all:                   # (a) single full-K block
            for tm in tm_all:
                if ok(tm, tn) and footprint(tm, K, tn, True) <= budget:
                    return (tm, K, tn, True)
        for tn in tn_all:                   # (b) tiled K: shrink tk before tm/tn
            for tm in tm_all:
                for tk in tk_all:
                    if ok(tm, tn) and footprint(tm, tk, tn, False) <= budget:
                        return (tm, tk, tn, False)
        return None

    choice = (search(num_tc) if num_tc > 1 else None) or search(1) \
        or (tm_all[-1], tk_all[-1], tn_all[-1], False)
    return Mp, Kp, choice


@functools.lru_cache(maxsize=None)
def _build_matmul(M, K, N, apply_act, out_dtype_name, budget, limit, num_tc):
    out_dtype = jnp.dtype(out_dtype_name)
    Mp, Kp, (tm, tk, tn, single_k) = _choose_tiles(M, K, N, budget, num_tc,
                                                   out_dtype.itemsize)
    cost = pl.CostEstimate(
        flops=2 * M * K * N, transcendentals=0,
        bytes_accessed=2 * (M * K + K * N) + out_dtype.itemsize * M * N)

    if single_k:
        Kp = K                                        # keep K whole, no zero padding
        grid = (N // tn, Mp // tm)                    # row tiles innermost: weight stays resident
        kernel = functools.partial(_mm_kernel_single, apply_act=apply_act)
        in_specs = [
            pl.BlockSpec((tm, Kp), lambda j, i: (i, 0)),
            pl.BlockSpec((Kp, tn), lambda j, i: (0, j)),
            pl.BlockSpec((1, tn), lambda j, i: (0, j)),
        ]
        out_specs = pl.BlockSpec((tm, tn), lambda j, i: (i, j))
        scratch = []
        sems = ("parallel", "parallel")
    else:
        grid = (N // tn, Mp // tm, Kp // tk)          # reduction axis last
        kernel = functools.partial(_mm_kernel_multi, apply_act=apply_act)
        in_specs = [
            pl.BlockSpec((tm, tk), lambda j, i, k: (i, k)),
            pl.BlockSpec((tk, tn), lambda j, i, k: (k, j)),
            pl.BlockSpec((1, tn), lambda j, i, k: (0, j)),
        ]
        out_specs = pl.BlockSpec((tm, tn), lambda j, i, k: (i, j))
        scratch = [pltpu.VMEM((tm, tn), jnp.float32)]
        sems = ("parallel", "parallel", "arbitrary")

    fn = pl.pallas_call(
        kernel,
        out_shape=jax.ShapeDtypeStruct((Mp, N), out_dtype),
        grid_spec=pltpu.PrefetchScalarGridSpec(
            num_scalar_prefetch=0,
            grid=grid,
            in_specs=in_specs,
            out_specs=out_specs,
            scratch_shapes=scratch),
        compiler_params=pltpu.CompilerParams(
            dimension_semantics=sems,
            vmem_limit_bytes=limit),
        cost_estimate=cost,
    )
    return fn, Mp, Kp


def matmul_bias_act(x, w, b, apply_act, out_dtype=jnp.bfloat16):
    """y = act(x @ w + b).  x:(M,K), w:(K,N) bf16; b:(N,) f32; f32 MXU accumulation."""
    M, K = x.shape
    K2, N = w.shape
    assert K == K2
    budget, limit, num_tc = _chip_config()
    fn, Mp, Kp = _build_matmul(int(M), int(K), int(N), bool(apply_act),
                               jnp.dtype(out_dtype).name, budget, limit, num_tc)
    x = x.astype(jnp.bfloat16)
    w = w.astype(jnp.bfloat16)
    b2 = b.astype(jnp.float32).reshape(1, N)
    if (Mp, Kp) != (M, K):                 # only the tiny M remainder / multi-K zero pad
        x = jnp.pad(x, ((0, Mp - M), (0, Kp - K)))
    if Kp != K:
        w = jnp.pad(w, ((0, Kp - K), (0, 0)))
    out = fn(x, w, b2)
    if Mp != M:
        out = out[:M]
    return out


# ---------------------------------------------------------------------------
# Fused 3x3 (stride-1) convolution kernel: the padded NHWC activation is streamed
# once per (Cout-tile, batch) grid step; the k*k taps become static shifted slices
# inside VMEM feeding k*k MXU dots accumulated in f32.  No HBM im2col.
# ---------------------------------------------------------------------------
def _conv_tap_kernel(x_ref, w_ref, b_ref, o_ref, *, k, hout, wout, apply_act):
    cin = x_ref.shape[-1]
    tn = o_ref.shape[-1]
    acc = jnp.zeros((hout * wout, tn), jnp.float32)
    for dh in range(k):
        for dw in range(k):
            lhs = x_ref[0, dh:dh + hout, dw:dw + wout, :].reshape(hout * wout, cin)
            acc = acc + jnp.dot(lhs, w_ref[dh * k + dw],
                                preferred_element_type=jnp.float32)
    r = acc + b_ref[...]
    if apply_act:
        r = jnp.where(r >= 0, r, NEG_SLOPE * r)
    o_ref[...] = r.reshape(1, hout, wout, tn).astype(o_ref.dtype)


@functools.lru_cache(maxsize=None)
def _build_conv_tap(n, hout, wout, cin, cout, k, apply_act, budget, limit, num_tc):
    hp, wp = hout + k - 1, wout + k - 1
    tn_all = _divisors_desc(cout, 128, cout) if cout % 128 == 0 else [cout]

    def footprint(tn):
        b = 2 * 2 * (hp * wp * cin)             # padded activation slab, double-buffered
        b += 2 * 2 * (k * k * cin * tn)         # weight taps, double-buffered
        b += 2 * 4 * tn                         # f32 bias
        b += 2 * 2 * (hout * wout * tn)         # bf16 output slab, double-buffered
        b += 4 * (hout * wout * tn)             # f32 accumulator (compiler temp)
        b += 2 * 2 * (hout * wout * cin)        # shifted-tap LHS temporaries
        return b

    def search(need):
        for tn in tn_all:
            if (cout // tn) * n >= need and footprint(tn) <= budget:
                return tn
        return None

    tn = (search(num_tc) if num_tc > 1 else None) or search(1) or tn_all[-1]
    # TODO(synk): tile the H axis (halo blocks) if a single padded image slab ever
    # exceeds the VMEM budget (not the case for YOLOv1 shapes at <=448 resolution).

    kernel = functools.partial(_conv_tap_kernel, k=k, hout=hout, wout=wout,
                               apply_act=apply_act)
    cost = pl.CostEstimate(
        flops=2 * n * hout * wout * k * k * cin * cout, transcendentals=0,
        bytes_accessed=2 * (n * hp * wp * cin + k * k * cin * cout
                            + n * hout * wout * cout))
    fn = pl.pallas_call(
        kernel,
        out_shape=jax.ShapeDtypeStruct((n, hout, wout, cout), jnp.bfloat16),
        grid_spec=pltpu.PrefetchScalarGridSpec(
            num_scalar_prefetch=0,
            grid=(cout // tn, n),               # batch innermost: weight taps stay resident
            in_specs=[
                pl.BlockSpec((1, hp, wp, cin), lambda j, b: (b, 0, 0, 0)),
                pl.BlockSpec((k * k, cin, tn), lambda j, b: (0, 0, j)),
                pl.BlockSpec((1, tn), lambda j, b: (0, j)),
            ],
            out_specs=pl.BlockSpec((1, hout, wout, tn), lambda j, b: (b, 0, 0, j)),
            scratch_shapes=[]),
        compiler_params=pltpu.CompilerParams(
            dimension_semantics=("parallel", "parallel"),
            vmem_limit_bytes=limit),
        cost_estimate=cost,
    )
    return fn


# ---------------------------------------------------------------------------
# Single-pass MaxPool2d(2,2): W-pairs folded onto the lane axis, H-pairs via the
# row blocking.  One HBM read of the activation, one quarter-size write.
# ---------------------------------------------------------------------------
def _pool_kernel(x_ref, o_ref):
    v = x_ref[...]                                # (2*TH, W/2, 2*C)
    th2, w2, c2 = v.shape
    c = c2 // 2
    v = v.reshape(th2 // 2, 2, w2, c2)            # split H pairs (leading dims only)
    m = jnp.maximum(v[:, 0], v[:, 1])             # max over the H pair
    # TODO(synk): for c=64/192 the output stores are not fully lane-dense; restructure
    # those two pools (or fuse them into the preceding conv epilogue) for dense vst.
    o_ref[...] = jnp.maximum(m[:, :, :c], m[:, :, c:])   # max over the W pair


@functools.lru_cache(maxsize=None)
def _build_pool(rows, w2, c, dtype_name, limit):
    dtype = jnp.dtype(dtype_name)
    th = 1
    for d in range(1, rows + 1):                  # largest block <= ~8 MiB of input
        if rows % d == 0 and 2 * d * w2 * 2 * c * dtype.itemsize <= (8 << 20):
            th = d
    return pl.pallas_call(
        _pool_kernel,
        out_shape=jax.ShapeDtypeStruct((rows, w2, c), dtype),
        grid=(rows // th,),
        in_specs=[pl.BlockSpec((2 * th, w2, 2 * c), lambda i: (i, 0, 0))],
        out_specs=pl.BlockSpec((th, w2, c), lambda i: (i, 0, 0)),
        compiler_params=pltpu.CompilerParams(
            dimension_semantics=("parallel",),
            vmem_limit_bytes=limit),
    )


def maxpool2x2(x):
    """MaxPool2d(kernel=2, stride=2) on an NHWC tensor."""
    n, h, w, c = x.shape
    if h % 2 or w % 2:                            # torch floor behaviour
        x = x[:, :(h // 2) * 2, :(w // 2) * 2, :]
        h, w = (h // 2) * 2, (w // 2) * 2
    h2, w2 = h // 2, w // 2
    _, limit, _ = _chip_config()
    xin = x.reshape(n * h, w2, 2 * c)             # free reshape: W-pairs on the lane axis
    fn = _build_pool(int(n * h2), int(w2), int(c), jnp.dtype(x.dtype).name, limit)
    return fn(xin).reshape(n, h2, w2, c)


# ---------------------------------------------------------------------------
# Conv2d dispatcher
# ---------------------------------------------------------------------------
def conv2d(x, w_mat, b, k, stride, pad, apply_act):
    """x: (N,H,W,Cin) NHWC bf16;  w_mat: (k*k*Cin, Cout) bf16 in (kh, kw, Cin) row order."""
    n, h, w, cin = x.shape
    cout = w_mat.shape[1]
    hout = (h + 2 * pad - k) // stride + 1
    wout = (w + 2 * pad - k) // stride + 1

    if k == 1 and stride == 1:                    # 1x1 conv: a pure lane-dense matmul
        y = matmul_bias_act(x.reshape(n * h * w, cin), w_mat, b, apply_act)
        return y.reshape(n, hout, wout, cout)

    xp = jnp.pad(x, ((0, 0), (pad, pad), (pad, pad), (0, 0))) if pad else x
    # TODO(synk): fold the 1-pixel border padding into the tap kernel's index math so
    # even this small halo copy never touches HBM.

    if stride == 1:                               # fused tap kernel: no HBM im2col
        budget, limit, num_tc = _chip_config()
        fn = _build_conv_tap(int(n), int(hout), int(wout), int(cin), int(cout),
                             int(k), bool(apply_act), budget, limit, num_tc)
        return fn(xp.astype(jnp.bfloat16),
                  w_mat.reshape(k * k, cin, cout).astype(jnp.bfloat16),
                  b.astype(jnp.float32).reshape(1, cout))

    # Strided convs (7x7/s2 stem, single 3x3/s2) are small: im2col + fused matmul.
    cols = [xp[:, i:i + stride * hout:stride, j:j + stride * wout:stride, :]
            for i in range(k) for j in range(k)]
    patches = jnp.concatenate(cols, axis=-1)
    y = matmul_bias_act(patches.reshape(n * hout * wout, k * k * cin),
                        w_mat, b, apply_act)
    return y.reshape(n, hout, wout, cout)


# ---------------------------------------------------------------------------
# Model definition mirroring the PyTorch layer list exactly
# (cin, cout, kernel, stride, pad, fused LeakyReLU after?, MaxPool after?)
# ---------------------------------------------------------------------------
CONV_CFG = [
    (3, 64, 7, 2, 3, True, True),
    (64, 192, 3, 1, 1, True, True),
    (192, 128, 1, 1, 0, True, False),
    (128, 256, 3, 1, 1, True, False),
    (256, 256, 1, 1, 0, True, False),
    (256, 512, 3, 1, 1, True, True),
]
for _ in range(4):
    CONV_CFG += [(512, 256, 1, 1, 0, False, False),   # no activation in torch list
                 (256, 512, 3, 1, 1, True, False)]
CONV_CFG += [(512, 512, 1, 1, 0, False, False),        # no activation in torch list
             (512, 1024, 3, 1, 1, True, True)]
for _ in range(2):
    CONV_CFG += [(1024, 512, 1, 1, 0, False, False),   # no activation in torch list
                 (512, 1024, 3, 1, 1, True, False)]
CONV_CFG += [(1024, 1024, 3, 1, 1, True, False),
             (1024, 1024, 3, 2, 1, True, False),
             (1024, 1024, 3, 1, 1, True, False),
             (1024, 1024, 3, 1, 1, True, False)]


def make_fc_cfg(img):
    # Backbone downsampling is 64x; at the canonical 448x448 input this gives the
    # module's hard-coded Linear(50176, 4096).
    s = img // 64
    return [(s * s * 1024, 4096), (4096, 1470)]


def init_params(key, img):
    params = {"conv": [], "fc": []}
    for (cin, cout, k, _s, _p, _act, _pool) in CONV_CFG:
        key, kw, kb = jax.random.split(key, 3)
        fan_in = cin * k * k
        w = jax.random.normal(kw, (cout, cin, k, k), jnp.float32) * jnp.sqrt(2.0 / fan_in)
        b = jax.random.normal(kb, (cout,), jnp.float32) * 0.01
        # reorder PyTorch (Cout, Cin, kh, kw) -> im2col rows (kh, kw, Cin) x Cout
        w_mat = jnp.transpose(w, (2, 3, 1, 0)).reshape(k * k * cin, cout)
        params["conv"].append((w_mat.astype(jnp.bfloat16), b))
    for (din, dout) in make_fc_cfg(img):
        key, kw, kb = jax.random.split(key, 3)
        w = jax.random.normal(kw, (dout, din), jnp.float32) * jnp.sqrt(1.0 / din)
        b = jax.random.normal(kb, (dout,), jnp.float32) * 0.01
        # TODO(synk): quantize the FC weight stream (int8 on v5e/v6e, fp8 on v7x) with
        # dequant fused in the epilogue; FC1 is HBM-bound on its weight bytes.
        params["fc"].append((jnp.transpose(w).astype(jnp.bfloat16), b))  # (din, dout)
    return params


def yolo_forward(params, x_nchw):
    x = jnp.transpose(x_nchw, (0, 2, 3, 1)).astype(jnp.bfloat16)  # NCHW -> NHWC, bf16
    for (w_mat, b), (cin, cout, k, s, p, act, pool) in zip(params["conv"], CONV_CFG):
        x = conv2d(x, w_mat, b, k, s, p, act)
        if pool:
            x = maxpool2x2(x)
    n = x.shape[0]
    # Flatten exactly like torch (NCHW row-major flatten).
    x = jnp.transpose(x, (0, 3, 1, 2)).reshape(n, -1)
    w1, b1 = params["fc"][0]
    # TODO(synk): Dropout(0.5) is identity in inference mode; training-mode dropout not implemented.
    x = matmul_bias_act(x, w1, b1, apply_act=True)                # Linear + Dropout(id) + LeakyReLU
    w2, b2 = params["fc"][1]
    x = matmul_bias_act(x, w2, b2, apply_act=False, out_dtype=jnp.float32)
    return x.reshape(n, 7, 7, 30)


if __name__ == "__main__":
    # Small demo resolution (multiple of 64).  IMG = 448 reproduces the reference
    # module's Linear(50176, 4096) exactly but is too large for a quick smoke test.
    IMG = 64
    key = jax.random.PRNGKey(0)
    kp, kx = jax.random.split(key)
    params = init_params(kp, IMG)
    x = jax.random.normal(kx, (2, 3, IMG, IMG), jnp.float32)
    out = yolo_forward(params, x)
    out = jax.block_until_ready(out)
    assert out.shape == (2, 7, 7, 30)
    assert bool(jnp.all(jnp.isfinite(out)))
    print("KERNEL_OK")
</pallas_src>

<mosaic_0001>
module attributes {stable_mosaic.version = 11 : i64} {
  func.func @_mm_kernel_single(%arg0: i32, %arg1: i32, %arg2: memref<2048x147xbf16, #tpu.memory_space<vmem>>, %arg3: memref<147x64xbf16, #tpu.memory_space<vmem>>, %arg4: memref<1x64xf32, #tpu.memory_space<vmem>>, %arg5: memref<2048x64xbf16, #tpu.memory_space<vmem>>) attributes {dimension_semantics = [#tpu.dimension_semantics<parallel>, #tpu.dimension_semantics<parallel>], iteration_bounds = array<i64: 1, 1>, scalar_prefetch = 0 : i64, scratch_operands = 0 : i64, tpu.core_type = #tpu.core_type<tc>, window_params = [{transform_indices = @transform_0, window_bounds = array<i64: 2048, 147>}, {transform_indices = @transform_1, window_bounds = array<i64: 147, 64>}, {transform_indices = @transform_2, window_bounds = array<i64: 1, 64>}, {transform_indices = @transform_3, window_bounds = array<i64: 2048, 64>}]} {
    %c0 = arith.constant 0 : index
    %c0_0 = arith.constant 0 : index
    %0 = vector.load %arg2[%c0, %c0_0] : memref<2048x147xbf16, #tpu.memory_space<vmem>>, vector<2048x147xbf16>
    %c0_1 = arith.constant 0 : index
    %c0_2 = arith.constant 0 : index
    %1 = vector.load %arg3[%c0_1, %c0_2] : memref<147x64xbf16, #tpu.memory_space<vmem>>, vector<147x64xbf16>
    %cst = arith.constant dense<0.000000e+00> : vector<2048x64xf32>
    %2 = tpu.matmul %0, %1, %cst {dimension_numbers = #tpu.dot_dimension_numbers<[1], [0], [0], [1], [0, 0, 1, 1], [], []>} : vector<2048x147xbf16>, vector<147x64xbf16>, vector<2048x64xf32> -> vector<2048x64xf32>
    %c0_3 = arith.constant 0 : index
    %c0_4 = arith.constant 0 : index
    %3 = vector.load %arg4[%c0_3, %c0_4] : memref<1x64xf32, #tpu.memory_space<vmem>>, vector<1x64xf32>
    %4 = vector.broadcast %3 : vector<1x64xf32> to vector<2048x64xf32>
    %5 = arith.addf %2, %4 : vector<2048x64xf32>
    %cst_5 = arith.constant 0.000000e+00 : f32
    %6 = vector.broadcast %cst_5 : f32 to vector<2048x64xf32>
    %7 = arith.cmpf oge, %5, %6 : vector<2048x64xf32>
    %cst_6 = arith.constant 1.000000e-01 : f32
    %8 = vector.broadcast %cst_6 : f32 to vector<2048x64xf32>
    %9 = arith.mulf %8, %5 : vector<2048x64xf32>
    %10 = arith.select %7, %5, %9 : vector<2048x64xi1>, vector<2048x64xf32>
    %11 = arith.truncf %10 : vector<2048x64xf32> to vector<2048x64xbf16>
    %c0_7 = arith.constant 0 : index
    %c0_8 = arith.constant 0 : index
    %12 = vector.load %arg5[%c0_7, %c0_8] : memref<2048x64xbf16, #tpu.memory_space<vmem>>, vector<2048x64xbf16>
    tpu.vector_store %arg5[%c0_7, %c0_8], %11 {strides = array<i32>} : memref<2048x64xbf16, #tpu.memory_space<vmem>>, vector<2048x64xbf16>,
    return
  }
  func.func @transform_0(%arg0: i32, %arg1: i32) -> (i32, i32) {
    %c0_i32 = arith.constant 0 : i32
    %c0_i32_0 = arith.constant 0 : i32
    return %arg1, %c0_i32 : i32, i32
  }
  func.func @transform_1(%arg0: i32, %arg1: i32) -> (i32, i32) {
    %c0_i32 = arith.constant 0 : i32
    %c0_i32_0 = arith.constant 0 : i32
    return %c0_i32, %arg0 : i32, i32
  }
  func.func @transform_2(%arg0: i32, %arg1: i32) -> (i32, i32) {
    %c0_i32 = arith.constant 0 : i32
    %c0_i32_0 = arith.constant 0 : i32
    return %c0_i32, %arg0 : i32, i32
  }
  func.func @transform_3(%arg0: i32, %arg1: i32) -> (i32, i32) {
    %c0_i32 = arith.constant 0 : i32
    return %arg1, %arg0 : i32, i32
  }
}

</mosaic_0001>

<bundles_post_ra>
// kernel: tpu_custom_call.1
= control target key start
LH: loop header
LB: loop body
LE: loop exit
PB: predicated region body
PF: predicated region fallthrough
CT: control target
= control target key end

     0   :  { %v6335_v0 = vmov 0   ;;  %vm1506_vm0 = vcmask 154624   ;;  %vm1891_vm1 = vcmask 1040384   ;;  %vm1892_vm2 = vcmask 1041408   ;;  %s8588_s1 = inlined_call_operand.vmem [shape: bf16[147,64], index: 1, kind: input, shape index: {}]   ;;  %s8589_s0 = inlined_call_operand.vmem [shape: bf16[2048,147], index: 0, kind: input, shape index: {}]   ;;  %s8590_s2 = inlined_call_operand.vmem [shape: f32[1,64], index: 2, kind: input, shape index: {}]   ;;  %s8591_s3 = inlined_call_operand.vmem [shape: bf16[2048,64], index: 3, kind: output, shape index: {}]  }
   0x1   :  { %1898 = vmatprep.subr.bf16.mxu0 %v6335_v0  ;;  %5915 = vmatprep.subr.bf16.mxu1 %v6335_v0  ;;  %v5937_v1 = vld [vmem:[%s8588_s1] sm:$0xff]   ;;  %v5938_v2 = vld [vmem:[%s8588_s1 + $0x8] sm:$0xff]   ;;  %v5939_v3 = vld [vmem:[%s8588_s1 + $0x10] sm:$0xff]   ;;  %v6336_v11 = vmov 65535   ;;  %vm4747_vm5 = vcmask 519168  }
   0x2   :  { %1899 = vmatpush1.bf16.msra.mxu0 %v5937_v1  ;;  %5925 = vmatpush1.bf16.msra.mxu1 %v5937_v1  ;;  %v5940_v4 = vld [vmem:[%s8588_s1 + $0x18] sm:$0xff]   ;;  %v5949_v5 = vld [vmem:[%s8589_s0 + $0x4] ss:$8 sps:$4 sm:$0xff]   ;;  %v5943_v9 = vld [vmem:[%s8588_s1 + $0x30] sm:$0xff]   ;;  %v1893_v12 = vsel %vm1891_vm1, 4294967295, %v6336_v11 }
   0x3   :  { %1900 = vmatprep.subr.bf16.mxu0 %v6335_v0  ;;  %5916 = vmatprep.subr.bf16.mxu1 %v6335_v0  ;;  %v5952_v6 = vld [vmem:[%s8589_s0 + $0x404] ss:$8 sps:$4 sm:$0xff]   ;;  %v5944_v10 = vld [vmem:[%s8588_s1 + $0x38] sm:$0xff]   ;;  %v5946_v14 = vld [vmem:[%s8588_s1 + $0x48] ss:$0 sps:$4 sm:$0x33]  }
   0x4   :  { %5275 = vmatprep.mubr.msk.bf16.mxu0 %vm1506_vm0, %v5949_v5  ;;  %v5941_v7 = vld [vmem:[%s8588_s1 + $0x20] sm:$0xff]   ;;  %5339 = vmatprep.mubr.msk.bf16.mxu1 %vm1506_vm0, %v5952_v6  ;;  %v5942_v8 = vld [vmem:[%s8588_s1 + $0x28] sm:$0xff]   ;;  %v1894_v15 = vsel %vm1892_vm2, %v1893_v12, 0  ;;  %v5953_v19 = vld [vmem:[%s8589_s0 + $0x14] ss:$8 sps:$4 sm:$0xff]  }
   0x5   :  { %v5945_v13 = vld [vmem:[%s8588_s1 + $0x40] sm:$0xff]   ;;  %v1896_v16 = vand.u32 %v5946_v14, %v1894_v15  ;;  %v5955_v20 = vld [vmem:[%s8589_s0 + $0x414] ss:$8 sps:$4 sm:$0xff]   ;;  %v5957_v21 = vld [vmem:[%s8589_s0 + $0x10] ss:$8 sps:$4 sm:$0xff]  }
   0x6   :  { %1901 = vmatpush1.bf16.msra.mxu0 %v5938_v2  ;;  %5926 = vmatpush1.bf16.msra.mxu1 %v5938_v2  ;;  %v5947_v17 = vld [vmem:[%s8589_s0] ss:$8 sps:$4 sm:$0xff]   ;;  %v5958_v22 = vld [vmem:[%s8589_s0 + $0x410] ss:$8 sps:$4 sm:$0xff]   ;;  %v5959_v23 = vld [vmem:[%s8589_s0 + $0x24] ss:$8 sps:$4 sm:$0xff]  }
   0x7   :  { %1902 = vmatprep.subr.bf16.mxu0 %v6335_v0  ;;  %5917 = vmatprep.subr.bf16.mxu1 %v6335_v0  ;;  %v5950_v18 = vld [vmem:[%s8589_s0 + $0x400] ss:$8 sps:$4 sm:$0xff]   ;;  %v5961_v24 = vld [vmem:[%s8589_s0 + $0x424] ss:$8 sps:$4 sm:$0xff]   ;;  %v5965_v27 = vld [vmem:[%s8589_s0 + $0x34] ss:$8 sps:$4 sm:$0xff]  }
   0x8   :  { %v5963_v25 = vld [vmem:[%s8589_s0 + $0x20] ss:$8 sps:$4 sm:$0xff]   ;;  %v5967_v28 = vld [vmem:[%s8589_s0 + $0x434] ss:$8 sps:$4 sm:$0xff]   ;;  %v5969_v29 = vld [vmem:[%s8589_s0 + $0x30] ss:$8 sps:$4 sm:$0xff]  }
   0x9   :  { %v5964_v26 = vld [vmem:[%s8589_s0 + $0x420] ss:$8 sps:$4 sm:$0xff]   ;;  %v5970_v30 = vld [vmem:[%s8589_s0 + $0x430] ss:$8 sps:$4 sm:$0xff]   ;;  %v5971_v31 = vld [vmem:[%s8589_s0 + $0x44] ss:$8 sps:$4 sm:$0xff]  }
   0xa   :  { %1903 = vmatpush1.bf16.msra.mxu0 %v5939_v3  ;;  %5927 = vmatpush1.bf16.msra.mxu1 %v5939_v3  ;;  %v5973_v32 = vld [vmem:[%s8589_s0 + $0x444] ss:$8 sps:$4 sm:$0xff]   ;;  %v5975_v33 = vld [vmem:[%s8589_s0 + $0x40] ss:$8 sps:$4 sm:$0xff]   ;;  %v5977_v35 = vld [vmem:[%s8589_s0 + $0x54] ss:$8 sps:$4 sm:$0xff]  }
   0xb   :  { %1904 = vmatprep.subr.bf16.mxu0 %v6335_v0  ;;  %5918 = vmatprep.subr.bf16.mxu1 %v6335_v0  ;;  %v5976_v34 = vld [vmem:[%s8589_s0 + $0x440] ss:$8 sps:$4 sm:$0xff]   ;;  %v5979_v36 = vld [vmem:[%s8589_s0 + $0x454] ss:$8 sps:$4 sm:$0xff]   ;;  %v5981_v37 = vld [vmem:[%s8589_s0 + $0x50] ss:$8 sps:$4 sm:$0xff]  }
   0xc   :  { %v5982_v38 = vld [vmem:[%s8589_s0 + $0x450] ss:$8 sps:$4 sm:$0xff]   ;;  %v5983_v39 = vld [vmem:[%s8589_s0 + $0x64] ss:$8 sps:$4 sm:$0xff]   ;;  %v5987_v41 = vld [vmem:[%s8589_s0 + $0x60] ss:$8 sps:$4 sm:$0xff]  }
   0xd   :  { %v5985_v40 = vld [vmem:[%s8589_s0 + $0x464] ss:$8 sps:$4 sm:$0xff]   ;;  %v5988_v42 = vld [vmem:[%s8589_s0 + $0x460] ss:$8 sps:$4 sm:$0xff]   ;;  %v5989_v43 = vld [vmem:[%s8589_s0 + $0x74] ss:$8 sps:$4 sm:$0xff]  }
   0xe   :  { %1905 = vmatpush1.bf16.msra.mxu0 %v5940_v4  ;;  %5928 = vmatpush1.bf16.msra.mxu1 %v5940_v4  ;;  %v5991_v44 = vld [vmem:[%s8589_s0 + $0x474] ss:$8 sps:$4 sm:$0xff]   ;;  %v5993_v45 = vld [vmem:[%s8589_s0 + $0x70] ss:$8 sps:$4 sm:$0xff]   ;;  %v5995_v47 = vld [vmem:[%s8589_s0 + $0x84] ss:$8 sps:$4 sm:$0xff]  }
   0xf   :  { %1906 = vmatprep.subr.bf16.mxu0 %v6335_v0  ;;  %5919 = vmatprep.subr.bf16.mxu1 %v6335_v0  ;;  %v5994_v46 = vld [vmem:[%s8589_s0 + $0x470] ss:$8 sps:$4 sm:$0xff]   ;;  %v5997_v48 = vld [vmem:[%s8589_s0 + $0x484] ss:$8 sps:$4 sm:$0xff]   ;;  %v5999_v49 = vld [vmem:[%s8589_s0 + $0x80] ss:$8 sps:$4 sm:$0xff]  }
  0x10   :  { %v6000_v50 = vld [vmem:[%s8589_s0 + $0x480] ss:$8 sps:$4 sm:$0xff]   ;;  %v6001_v51 = vld [vmem:[%s8589_s0 + $0x94] ss:$8 sps:$4 sm:$0xff]   ;;  %v6005_v53 = vld [vmem:[%s8589_s0 + $0x90] ss:$8 sps:$4 sm:$0xff]  }
  0x11   :  { %v6003_v52 = vld [vmem:[%s8589_s0 + $0x494] ss:$8 sps:$4 sm:$0xff]   ;;  %v6006_v54 = vld [vmem:[%s8589_s0 + $0x490] ss:$8 sps:$4 sm:$0xff]   ;;  %v6007_v55 = vld [vmem:[%s8589_s0 + $0xa4] ss:$8 sps:$4 sm:$0xff]  }
  0x12   :  { %1907 = vmatpush1.bf16.msra.mxu0 %v5941_v7  ;;  %5929 = vmatpush1.bf16.msra.mxu1 %v5941_v7  ;;  %v6009_v56 = vld [vmem:[%s8589_s0 + $0x4a4] ss:$8 sps:$4 sm:$0xff]   ;;  %v6011_v57 = vld [vmem:[%s8589_s0 + $0xa0] ss:$8 sps:$4 sm:$0xff]   ;;  %v6013_v59 = vld [vmem:[%s8589_s0 + $0xb4] ss:$8 sps:$4 sm:$0xff]  }
  0x13   :  { %1908 = vmatprep.subr.bf16.mxu0 %v6335_v0  ;;  %5920 = vmatprep.subr.bf16.mxu1 %v6335_v0  ;;  %v6012_v58 = vld [vmem:[%s8589_s0 + $0x4a0] ss:$8 sps:$4 sm:$0xff]   ;;  %v6015_v60 = vld [vmem:[%s8589_s0 + $0x4b4] ss:$8 sps:$4 sm:$0xff]   ;;  %v6017_v61 = vld [vmem:[%s8589_s0 + $0xb0] ss:$8 sps:$4 sm:$0xff]  }
  0x14   :  { %v6018_v62 = vld [vmem:[%s8589_s0 + $0x4b0] ss:$8 sps:$4 sm:$0xff]   ;;  %v6019_v63 = vld [vmem:[%s8589_s0 + $0xc4] ss:$8 sps:$4 sm:$0xff]   ;;  %v6023_v1 = vld [vmem:[%s8589_s0 + $0xc0] ss:$8 sps:$4 sm:$0xff]  }
  0x15   :  { %v6024_v2 = vld [vmem:[%s8589_s0 + $0x4c0] ss:$8 sps:$4 sm:$0xff]   ;;  %v6025_v3 = vld [vmem:[%s8589_s0 + $0xd4] ss:$8 sps:$4 sm:$0xff]   ;;  %v6029_v5 = vld [vmem:[%s8589_s0 + $0xd0] ss:$8 sps:$4 sm:$0xff]  }
  0x16   :  { %1909 = vmatpush1.bf16.msra.mxu0 %v5942_v8  ;;  %5930 = vmatpush1.bf16.msra.mxu1 %v5942_v8  ;;  %v6027_v4 = vld [vmem:[%s8589_s0 + $0x4d4] ss:$8 sps:$4 sm:$0xff]   ;;  %v6030_v6 = vld [vmem:[%s8589_s0 + $0x4d0] ss:$8 sps:$4 sm:$0xff]   ;;  %v6031_v7 = vld [vmem:[%s8589_s0 + $0xe4] ss:$8 sps:$4 sm:$0xff]  }
  0x17   :  { %1910 = vmatprep.subr.bf16.mxu0 %v6335_v0  ;;  %5921 = vmatprep.subr.bf16.mxu1 %v6335_v0  ;;  %v6033_v8 = vld [vmem:[%s8589_s0 + $0x4e4] ss:$8 sps:$4 sm:$0xff]   ;;  %v6037_v11 = vld [vmem:[%s8589_s0 + $0xf4] ss:$8 sps:$4 sm:$0xff]   ;;  %v6042_v14 = vld [vmem:[%s8589_s0 + $0x4f0] ss:$8 sps:$4 sm:$0xff]  }
  0x18   :  { %v6039_v12 = vld [vmem:[%s8589_s0 + $0x4f4] ss:$8 sps:$4 sm:$0xff]   ;;  %v6043_v15 = vld [vmem:[%s8589_s0 + $0x104] ss:$8 sps:$4 sm:$0xff]  }
  0x1a   :  { %1911 = vmatpush1.bf16.msra.mxu0 %v5943_v9  ;;  %5931 = vmatpush1.bf16.msra.mxu1 %v5943_v9  ;;  %v6035_v9 = vld [vmem:[%s8589_s0 + $0xe0] ss:$8 sps:$4 sm:$0xff]  }
  0x1b   :  { %1912 = vmatprep.subr.bf16.mxu0 %v6335_v0  ;;  %5922 = vmatprep.subr.bf16.mxu1 %v6335_v0 }
  0x1e   :  { %1913 = vmatpush1.bf16.msra.mxu0 %v5944_v10  ;;  %5932 = vmatpush1.bf16.msra.mxu1 %v5944_v10  ;;  %v6036_v10 = vld [vmem:[%s8589_s0 + $0x4e0] ss:$8 sps:$4 sm:$0xff]  }
  0x1f   :  { %1914 = vmatprep.subr.bf16.mxu0 %v6335_v0  ;;  %5923 = vmatprep.subr.bf16.mxu1 %v6335_v0 }
  0x22   :  { %1915 = vmatpush1.bf16.msra.mxu0 %v5945_v13  ;;  %5933 = vmatpush1.bf16.msra.mxu1 %v5945_v13  ;;  %v6041_v13 = vld [vmem:[%s8589_s0 + $0xf0] ss:$8 sps:$4 sm:$0xff]  }
  0x23   :  { %1916 = vmatprep.subr.bf16.mxu0 %v6335_v0  ;;  %5924 = vmatprep.subr.bf16.mxu1 %v6335_v0  ;;  %v6021_v0 = vld [vmem:[%s8589_s0 + $0x4c4] ss:$8 sps:$4 sm:$0xff]  }
  0x26   :  { %1917 = vmatpush1.bf16.msra.mxu0 %v1896_v16  ;;  %5934 = vmatpush1.bf16.msra.mxu1 %v1896_v16  ;;  %v6045_v16 = vld [vmem:[%s8589_s0 + $0x504] ss:$8 sps:$4 sm:$0xff]  }
  0x29   :  { %1931 = vmatmul.mubr.bf16.vlgmr.msra.gmra.mrb[0].mxu0 %v5947_v17  ;;  %2443 = vmatmul.mubr.bf16.vlgmr.msra.gmra.mrb[0].mxu1 %v5950_v18  ;;  %v6047_v17 = vld [vmem:[%s8589_s0 + $0x100] ss:$8 sps:$4 sm:$0xff]  }
  0x2a   :  { %5276 = vmatprep.mubr.msk.bf16.mxu0 %vm1506_vm0, %v5953_v19  ;;  %5340 = vmatprep.mubr.msk.bf16.mxu1 %vm1506_vm0, %v5955_v20  ;;  %v6048_v18 = vld [vmem:[%s8589_s0 + $0x500] ss:$8 sps:$4 sm:$0xff]   ;;  %v6049_v19 = vld [vmem:[%s8589_s0 + $0x114] ss:$8 sps:$4 sm:$0xff]  }
  0x2b   :  { %v6051_v20 = vld [vmem:[%s8589_s0 + $0x514] ss:$8 sps:$4 sm:$0xff]  }
  0x31   :  { %1939 = vmatmul.mubr.bf16.gmra.mrb[4].mxu0 %v5957_v21  ;;  %2451 = vmatmul.mubr.bf16.gmra.mrb[4].mxu1 %v5958_v22  ;;  %v6053_v21 = vld [vmem:[%s8589_s0 + $0x110] ss:$8 sps:$4 sm:$0xff]  }
  0x32   :  { %5277 = vmatprep.mubr.msk.bf16.mxu0 %vm1506_vm0, %v5959_v23  ;;  %5341 = vmatprep.mubr.msk.bf16.mxu1 %vm1506_vm0, %v5961_v24  ;;  %v6054_v22 = vld [vmem:[%s8589_s0 + $0x510] ss:$8 sps:$4 sm:$0xff]   ;;  %v6055_v23 = vld [vmem:[%s8589_s0 + $0x124] ss:$8 sps:$4 sm:$0xff]  }
  0x33   :  { %v6057_v24 = vld [vmem:[%s8589_s0 + $0x524] ss:$8 sps:$4 sm:$0xff]  }
  0x39   :  { %1947 = vmatmul.mubr.bf16.gmra.mrb[8].mxu0 %v5963_v25  ;;  %2459 = vmatmul.mubr.bf16.gmra.mrb[8].mxu1 %v5964_v26  ;;  %v6059_v25 = vld [vmem:[%s8589_s0 + $0x120] ss:$8 sps:$4 sm:$0xff]  }
  0x3a   :  { %5278 = vmatprep.mubr.msk.bf16.mxu0 %vm1506_vm0, %v5965_v27  ;;  %5342 = vmatprep.mubr.msk.bf16.mxu1 %vm1506_vm0, %v5967_v28  ;;  %v6060_v26 = vld [vmem:[%s8589_s0 + $0x520] ss:$8 sps:$4 sm:$0xff]   ;;  %v6061_v27 = vld [vmem:[%s8589_s0 + $0x134] ss:$8 sps:$4 sm:$0xff]  }
  0x3b   :  { %v6063_v28 = vld [vmem:[%s8589_s0 + $0x534] ss:$8 sps:$4 sm:$0xff]  }
  0x41   :  { %1955 = vmatmul.mubr.bf16.gmra.mrb[12].mxu0 %v5969_v29  ;;  %2467 = vmatmul.mubr.bf16.gmra.mrb[12].mxu1 %v5970_v30  ;;  %v6065_v29 = vld [vmem:[%s8589_s0 + $0x130] ss:$8 sps:$4 sm:$0xff]  }
  0x42   :  { %5279 = vmatprep.mubr.msk.bf16.mxu0 %vm1506_vm0, %v5971_v31  ;;  %5343 = vmatprep.mubr.msk.bf16.mxu1 %vm1506_vm0, %v5973_v32  ;;  %v6066_v30 = vld [vmem:[%s8589_s0 + $0x530] ss:$8 sps:$4 sm:$0xff]   ;;  %v6067_v31 = vld [vmem:[%s8589_s0 + $0x144] ss:$8 sps:$4 sm:$0xff]  }
  0x43   :  { %v6069_v32 = vld [vmem:[%s8589_s0 + $0x544] ss:$8 sps:$4 sm:$0xff]  }
  0x49   :  { %1963 = vmatmul.mubr.bf16.gmra.mrb[16].mxu0 %v5975_v33  ;;  %2475 = vmatmul.mubr.bf16.gmra.mrb[16].mxu1 %v5976_v34  ;;  %v6071_v33 = vld [vmem:[%s8589_s0 + $0x140] ss:$8 sps:$4 sm:$0xff]  }
  0x4a   :  { %5280 = vmatprep.mubr.msk.bf16.mxu0 %vm1506_vm0, %v5977_v35  ;;  %5344 = vmatprep.mubr.msk.bf16.mxu1 %vm1506_vm0, %v5979_v36  ;;  %v6072_v34 = vld [vmem:[%s8589_s0 + $0x540] ss:$8 sps:$4 sm:$0xff]   ;;  %v6073_v35 = vld [vmem:[%s8589_s0 + $0x154] ss:$8 sps:$4 sm:$0xff]  }
  0x4b   :  { %v6075_v36 = vld [vmem:[%s8589_s0 + $0x554] ss:$8 sps:$4 sm:$0xff]  }
  0x51   :  { %1971 = vmatmul.mubr.bf16.gmra.mrb[20].mxu0 %v5981_v37  ;;  %2483 = vmatmul.mubr.bf16.gmra.mrb[20].mxu1 %v5982_v38  ;;  %v6077_v37 = vld [vmem:[%s8589_s0 + $0x150] ss:$8 sps:$4 sm:$0xff]  }
  0x52   :  { %5281 = vmatprep.mubr.msk.bf16.mxu0 %vm1506_vm0, %v5983_v39  ;;  %5345 = vmatprep.mubr.msk.bf16.mxu1 %vm1506_vm0, %v5985_v40  ;;  %v6078_v38 = vld [vmem:[%s8589_s0 + $0x550] ss:$8 sps:$4 sm:$0xff]   ;;  %v6079_v39 = vld [vmem:[%s8589_s0 + $0x164] ss:$8 sps:$4 sm:$0xff]  }
  0x53   :  { %v6081_v40 = vld [vmem:[%s8589_s0 + $0x564] ss:$8 sps:$4 sm:$0xff]  }
  0x59   :  { %1979 = vmatmul.mubr.bf16.gmra.mrb[24].mxu0 %v5987_v41  ;;  %2491 = vmatmul.mubr.bf16.gmra.mrb[24].mxu1 %v5988_v42  ;;  %v6083_v41 = vld [vmem:[%s8589_s0 + $0x160] ss:$8 sps:$4 sm:$0xff]  }
  0x5a   :  { %5282 = vmatprep.mubr.msk.bf16.mxu0 %vm1506_vm0, %v5989_v43  ;;  %5346 = vmatprep.mubr.msk.bf16.mxu1 %vm1506_vm0, %v5991_v44  ;;  %v6084_v42 = vld [vmem:[%s8589_s0 + $0x560] ss:$8 sps:$4 sm:$0xff]   ;;  %v6085_v43 = vld [vmem:[%s8589_s0 + $0x174] ss:$8 sps:$4 sm:$0xff]  }
  0x5b   :  { %v6087_v44 = vld [vmem:[%s8589_s0 + $0x574] ss:$8 sps:$4 sm:$0xff]  }
  0x61   :  { %1987 = vmatmul.mubr.bf16.gmra.mrb[28].mxu0 %v5993_v45  ;;  %2499 = vmatmul.mubr.bf16.gmra.mrb[28].mxu1 %v5994_v46  ;;  %v6089_v45 = vld [vmem:[%s8589_s0 + $0x170] ss:$8 sps:$4 sm:$0xff]  }
  0x62   :  { %5283 = vmatprep.mubr.msk.bf16.mxu0 %vm1506_vm0, %v5995_v47  ;;  %5347 = vmatprep.mubr.msk.bf16.mxu1 %vm1506_vm0, %v5997_v48  ;;  %v6090_v46 = vld [vmem:[%s8589_s0 + $0x570] ss:$8 sps:$4 sm:$0xff]   ;;  %v6091_v47 = vld [vmem:[%s8589_s0 + $0x184] ss:$8 sps:$4 sm:$0xff]  }
  0x63   :  { %v6093_v48 = vld [vmem:[%s8589_s0 + $0x584] ss:$8 sps:$4 sm:$0xff]  }
  0x69   :  { %1995 = vmatmul.mubr.bf16.gmra.mrb[32].mxu0 %v5999_v49  ;;  %2507 = vmatmul.mubr.bf16.gmra.mrb[32].mxu1 %v6000_v50  ;;  %v6095_v49 = vld [vmem:[%s8589_s0 + $0x180] ss:$8 sps:$4 sm:$0xff]  }
  0x6a   :  { %5284 = vmatprep.mubr.msk.bf16.mxu0 %vm1506_vm0, %v6001_v51  ;;  %5348 = vmatprep.mubr.msk.bf16.mxu1 %vm1506_vm0, %v6003_v52  ;;  %v6096_v50 = vld [vmem:[%s8589_s0 + $0x580] ss:$8 sps:$4 sm:$0xff]   ;;  %v6097_v51 = vld [vmem:[%s8589_s0 + $0x194] ss:$8 sps:$4 sm:$0xff]  }
  0x6b   :  { %v6099_v52 = vld [vmem:[%s8589_s0 + $0x594] ss:$8 sps:$4 sm:$0xff]  }
  0x71   :  { %2003 = vmatmul.mubr.bf16.gmra.mrb[36].mxu0 %v6005_v53  ;;  %2515 = vmatmul.mubr.bf16.gmra.mrb[36].mxu1 %v6006_v54  ;;  %v6101_v53 = vld [vmem:[%s8589_s0 + $0x190] ss:$8 sps:$4 sm:$0xff]  }
  0x72   :  { %5285 = vmatprep.mubr.msk.bf16.mxu0 %vm1506_vm0, %v6007_v55  ;;  %5349 = vmatprep.mubr.msk.bf16.mxu1 %vm1506_vm0, %v6009_v56  ;;  %v6102_v54 = vld [vmem:[%s8589_s0 + $0x590] ss:$8 sps:$4 sm:$0xff]   ;;  %v6103_v55 = vld [vmem:[%s8589_s0 + $0x1a4] ss:$8 sps:$4 sm:$0xff]  }
  0x73   :  { %v6105_v56 = vld [vmem:[%s8589_s0 + $0x5a4] ss:$8 sps:$4 sm:$0xff]  }
  0x79   :  { %2011 = vmatmul.mubr.bf16.gmra.mrb[40].mxu0 %v6011_v57  ;;  %2523 = vmatmul.mubr.bf16.gmra.mrb[40].mxu1 %v6012_v58  ;;  %v6107_v57 = vld [vmem:[%s8589_s0 + $0x1a0] ss:$8 sps:$4 sm:$0xff]  }
  0x7a   :  { %5286 = vmatprep.mubr.msk.bf16.mxu0 %vm1506_vm0, %v6013_v59  ;;  %5350 = vmatprep.mubr.msk.bf16.mxu1 %vm1506_vm0, %v6015_v60  ;;  %v6108_v58 = vld [vmem:[%s8589_s0 + $0x5a0] ss:$8 sps:$4 sm:$0xff]   ;;  %v6109_v59 = vld [vmem:[%s8589_s0 + $0x1b4] ss:$8 sps:$4 sm:$0xff]  }
  0x7b   :  { %v6111_v60 = vld [vmem:[%s8589_s0 + $0x5b4] ss:$8 sps:$4 sm:$0xff]  }
  0x81   :  { %2019 = vmatmul.mubr.bf16.gmra.mrb[44].mxu0 %v6017_v61  ;;  %2531 = vmatmul.mubr.bf16.gmra.mrb[44].mxu1 %v6018_v62  ;;  %v6774_v61 = vld [vmem:[%s8590_s2] ss:$0 sm:$0xff] }
  0x82   :  { %5287 = vmatprep.mubr.msk.bf16.mxu0 %vm1506_vm0, %v6019_v63  ;;  %5351 = vmatprep.mubr.msk.bf16.mxu1 %vm1506_vm0, %v6021_v0 }
  0x89   :  { %2027 = vmatmul.mubr.bf16.gmra.mrb[48].mxu0 %v6023_v1  ;;  %2539 = vmatmul.mubr.bf16.gmra.mrb[48].mxu1 %v6024_v2 }
  0x8a   :  { %5288 = vmatprep.mubr.msk.bf16.mxu0 %vm1506_vm0, %v6025_v3  ;;  %5352 = vmatprep.mubr.msk.bf16.mxu1 %vm1506_vm0, %v6027_v4  ;;  %v6113_v4 = vld [vmem:[%s8589_s0 + $0x1b0] ss:$8 sps:$4 sm:$0xff]  }
  0x91   :  { %2035 = vmatmul.mubr.bf16.gmra.mrb[52].mxu0 %v6029_v5  ;;  %2547 = vmatmul.mubr.bf16.gmra.mrb[52].mxu1 %v6030_v6  ;;  %v6114_v5 = vld [vmem:[%s8589_s0 + $0x5b0] ss:$8 sps:$4 sm:$0xff]  }
  0x92   :  { %5289 = vmatprep.mubr.msk.bf16.mxu0 %vm1506_vm0, %v6031_v7  ;;  %5353 = vmatprep.mubr.msk.bf16.mxu1 %vm1506_vm0, %v6033_v8  ;;  %v6115_v8 = vld [vmem:[%s8589_s0 + $0x1c4] ss:$8 sps:$4 sm:$0xff]  }
  0x99   :  { %2043 = vmatmul.mubr.bf16.gmra.mrb[56].mxu0 %v6035_v9  ;;  %2555 = vmatmul.mubr.bf16.gmra.mrb[56].mxu1 %v6036_v10  ;;  %v6117_v9 = vld [vmem:[%s8589_s0 + $0x5c4] ss:$8 sps:$4 sm:$0xff]  }
  0x9a   :  { %5290 = vmatprep.mubr.msk.bf16.mxu0 %vm1506_vm0, %v6037_v11  ;;  %5354 = vmatprep.mubr.msk.bf16.mxu1 %vm1506_vm0, %v6039_v12 }
  0xa1   :  { %2051 = vmatmul.mubr.bf16.gmra.mrb[60].mxu0 %v6041_v13  ;;  %2563 = vmatmul.mubr.bf16.gmra.mrb[60].mxu1 %v6042_v14 }
  0xa2   :  { %5291 = vmatprep.mubr.msk.bf16.mxu0 %vm1506_vm0, %v6043_v15  ;;  %5355 = vmatprep.mubr.msk.bf16.mxu1 %vm1506_vm0, %v6045_v16 }
  0xa9   :  { %2059 = vmatmul.mubr.bf16.gmra.mrb[64].mxu0 %v6047_v17  ;;  %2571 = vmatmul.mubr.bf16.gmra.mrb[64].mxu1 %v6048_v18 }
  0xaa   :  { %5292 = vmatprep.mubr.msk.bf16.mxu0 %vm1506_vm0, %v6049_v19  ;;  %5356 = vmatprep.mubr.msk.bf16.mxu1 %vm1506_vm0, %v6051_v20 }
  0xb1   :  { %2067 = vmatmul.mubr.bf16.gmra.mrb[68].mxu0 %v6053_v21  ;;  %2579 = vmatmul.mubr.bf16.gmra.mrb[68].mxu1 %v6054_v22 }
  0xb2   :  { %5293 = vmatprep.mubr.msk.bf16.mxu0 %vm1506_vm0, %v6055_v23  ;;  %5357 = vmatprep.mubr.msk.bf16.mxu1 %vm1506_vm0, %v6057_v24 }
  0xb9   :  { %2075 = vmatmul.mubr.bf16.gmra.mrb[72].mxu0 %v6059_v25  ;;  %2587 = vmatmul.mubr.bf16.gmra.mrb[72].mxu1 %v6060_v26 }
  0xba   :  { %5294 = vmatprep.mubr.msk.bf16.mxu0 %vm1506_vm0, %v6061_v27  ;;  %5358 = vmatprep.mubr.msk.bf16.mxu1 %vm1506_vm0, %v6063_v28 }
  0xc1   :  { %2083 = vmatmul.mubr.bf16.gmra.mrb[76].mxu0 %v6065_v29  ;;  %2595 = vmatmul.mubr.bf16.gmra.mrb[76].mxu1 %v6066_v30 }
  0xc2   :  { %5295 = vmatprep.mubr.msk.bf16.mxu0 %vm1506_vm0, %v6067_v31  ;;  %5359 = vmatprep.mubr.msk.bf16.mxu1 %vm1506_vm0, %v6069_v32  ;;  %v6119_v31 = vld [vmem:[%s8589_s0 + $0x1c0] ss:$8 sps:$4 sm:$0xff]  }
  0xc3   :  { %v6120_v32 = vld [vmem:[%s8589_s0 + $0x5c0] ss:$8 sps:$4 sm:$0xff]  }
  0xc9   :  { %2091 = vmatmul.mubr.bf16.gmra.mrb[80].mxu0 %v6071_v33  ;;  %2603 = vmatmul.mubr.bf16.gmra.mrb[80].mxu1 %v6072_v34 }
  0xca   :  { %5296 = vmatprep.mubr.msk.bf16.mxu0 %vm1506_vm0, %v6073_v35  ;;  %5360 = vmatprep.mubr.msk.bf16.mxu1 %vm1506_vm0, %v6075_v36  ;;  %v6121_v36 = vld [vmem:[%s8589_s0 + $0x1d4] ss:$8 sps:$4 sm:$0xff]  }
  0xd1   :  { %2099 = vmatmul.mubr.bf16.gmra.mrb[84].mxu0 %v6077_v37  ;;  %2611 = vmatmul.mubr.bf16.gmra.mrb[84].mxu1 %v6078_v38  ;;  %v6123_v37 = vld [vmem:[%s8589_s0 + $0x5d4] ss:$8 sps:$4 sm:$0xff]  }
  0xd2   :  { %5297 = vmatprep.mubr.msk.bf16.mxu0 %vm1506_vm0, %v6079_v39  ;;  %5361 = vmatprep.mubr.msk.bf16.mxu1 %vm1506_vm0, %v6081_v40 }
  0xd9   :  { %2107 = vmatmul.mubr.bf16.gmra.mrb[88].mxu0 %v6083_v41  ;;  %2619 = vmatmul.mubr.bf16.gmra.mrb[88].mxu1 %v6084_v42 }
  0xda   :  { %5298 = vmatprep.mubr.msk.bf16.mxu0 %vm1506_vm0, %v6085_v43  ;;  %5362 = vmatprep.mubr.msk.bf16.mxu1 %vm1506_vm0, %v6087_v44 }
  0xe1   :  { %2115 = vmatmul.mubr.bf16.gmra.mrb[92].mxu0 %v6089_v45  ;;  %2627 = vmatmul.mubr.bf16.gmra.mrb[92].mxu1 %v6090_v46 }
  0xe2   :  { %5299 = vmatprep.mubr.msk.bf16.mxu0 %vm1506_vm0, %v6091_v47  ;;  %5363 = vmatprep.mubr.msk.bf16.mxu1 %vm1506_vm0, %v6093_v48 }
  0xe9   :  { %2123 = vmatmul.mubr.bf16.gmra.mrb[96].mxu0 %v6095_v49  ;;  %2635 = vmatmul.mubr.bf16.gmra.mrb[96].mxu1 %v6096_v50 }
  0xea   :  { %5300 = vmatprep.mubr.msk.bf16.mxu0 %vm1506_vm0, %v6097_v51  ;;  %5364 = vmatprep.mubr.msk.bf16.mxu1 %vm1506_vm0, %v6099_v52 }
  0xf1   :  { %2131 = vmatmul.mubr.bf16.gmra.mrb[100].mxu0 %v6101_v53  ;;  %2643 = vmatmul.mubr.bf16.gmra.mrb[100].mxu1 %v6102_v54 }
  0xf2   :  { %5301 = vmatprep.mubr.msk.bf16.mxu0 %vm1506_vm0, %v6103_v55  ;;  %5365 = vmatprep.mubr.msk.bf16.mxu1 %vm1506_vm0, %v6105_v56 }
  0xf9   :  { %2139 = vmatmul.mubr.bf16.gmra.mrb[104].mxu0 %v6107_v57  ;;  %2651 = vmatmul.mubr.bf16.gmra.mrb[104].mxu1 %v6108_v58 }
  0xfa   :  { %5302 = vmatprep.mubr.msk.bf16.mxu0 %vm1506_vm0, %v6109_v59  ;;  %5366 = vmatprep.mubr.msk.bf16.mxu1 %vm1506_vm0, %v6111_v60  ;;  %v6125_v59 = vld [vmem:[%s8589_s0 + $0x1d0] ss:$8 sps:$4 sm:$0xff]  }
  0xfb   :  { %v6126_v60 = vld [vmem:[%s8589_s0 + $0x5d0] ss:$8 sps:$4 sm:$0xff]  }
  0xfc   :  { %v1932_v62 = vpop.f32.mrb[0].mxu0  ;;  %v2444_v63 = vpop.f32.mrb[0].mxu1 }
  0xfd   :  { %v1933_v0 = vadd.f32 %v6774_v61, %v1932_v62  ;;  %v2445_v1 = vadd.f32 %v6774_v61, %v2444_v63  ;;  %v1934_v2 = vpop.f32.mrb[1].mxu0  ;;  %v2446_v3 = vpop.f32.mrb[1].mxu1 }
  0xfe   :  { %v1935_v6 = vpop.f32.mrb[2].mxu0  ;;  %v2447_v7 = vpop.f32.mrb[2].mxu1  ;;  %v6129_v2 = vld [vmem:[%s8589_s0 + $0x5e4] ss:$8 sps:$4 sm:$0xff]  }
  0xff   :  { %vm2955_vm3 = vcmp.ge.f32.partialorder %v1933_v0, 0.0  ;;  %v3211_v10 = vmul.f32 0.1, %v1933_v0  ;;  %vm3083_vm4 = vcmp.ge.f32.partialorder %v2445_v1, 0.0  ;;  %v3339_v11 = vmul.f32 0.1, %v2445_v1 }
 0x100   :  { %v1936_v12 = vadd.f32 %v6774_v61, %v1935_v6  ;;  %v2448_v13 = vadd.f32 %v6774_v61, %v2447_v7  ;;  %v1937_v14 = vpop.f32.mrb[3].mxu0  ;;  %v2449_v15 = vpop.f32.mrb[3].mxu1 }
 0x101   :  { %v3467_v16 = vsel %vm2955_vm3, %v1933_v0, %v3211_v10  ;;  %v3595_v17 = vsel %vm3083_vm4, %v2445_v1, %v3339_v11  ;;  %2147 = vmatmul.mubr.bf16.gmra.mrb[108].mxu0 %v6113_v4  ;;  %2659 = vmatmul.mubr.bf16.gmra.mrb[108].mxu1 %v6114_v5  ;;  %v6127_v1 = vld [vmem:[%s8589_s0 + $0x1e4] ss:$8 sps:$4 sm:$0xff]  }
 0x102   :  { %v5659_v18 = vpack.c.bf16 %v3467_v16, %v3467_v16  ;;  %v5787_v19 = vpack.c.bf16 %v3595_v17, %v3595_v17  ;;  %vm2956_vm6 = vcmp.ge.f32.partialorder %v1936_v12, 0.0  ;;  %v3212_v20 = vmul.f32 0.1, %v1936_v12  ;;  %5303 = vmatprep.mubr.msk.bf16.mxu0 %vm1506_vm0, %v6115_v8  ;;  %5367 = vmatprep.mubr.msk.bf16.mxu1 %vm1506_vm0, %v6117_v9 }
 0x103   :  { %vm3084_vm7 = vcmp.ge.f32.partialorder %v2448_v13, 0.0  ;;  %v3340_v21 = vmul.f32 0.1, %v2448_v13 }
 0x104   :  { %4748 = vst.msk [vmem:[%s8591_s3] sm:$0xf] %vm4747_vm5, %v5659_v18  ;;  %4876 = vst.msk [vmem:[%s8591_s3 + $0x200] sm:$0xf] %vm4747_vm5, %v5787_v19  ;;  %v3468_v22 = vsel %vm2956_vm6, %v1936_v12, %v3212_v20  ;;  %v1940_v23 = vpop.f32.mrb[4].mxu0  ;;  %v2452_v24 = vpop.f32.mrb[4].mxu1 }
 0x105   :  { %v5660_v25 = vpack.c.bf16 %v3468_v22, %v3468_v22  ;;  %v3596_v26 = vsel %vm3084_vm7, %v2448_v13, %v3340_v21  ;;  %v1941_v27 = vadd.f32 %v6774_v61, %v1940_v23  ;;  %v2453_v28 = vadd.f32 %v6774_v61, %v2452_v24  ;;  %v1942_v29 = vpop.f32.mrb[5].mxu0  ;;  %v2454_v30 = vpop.f32.mrb[5].mxu1  ;;  %v6131_v24 = vld [vmem:[%s8589_s0 + $0x1e0] ss:$8 sps:$4 sm:$0xff]  }
 0x106   :  { %v5788_v33 = vpack.c.bf16 %v3596_v26, %v3596_v26  ;;  %v1943_v34 = vpop.f32.mrb[6].mxu0  ;;  %v2455_v35 = vpop.f32.mrb[6].mxu1  ;;  %v6133_v29 = vld [vmem:[%s8589_s0 + $0x1f4] ss:$8 sps:$4 sm:$0xff]  }
 0x107   :  { %4749 = vst.msk [vmem:[%s8591_s3 + $0x4] sm:$0xf] %vm4747_vm5, %v5660_v25  ;;  %vm2957_vm8 = vcmp.ge.f32.partialorder %v1941_v27, 0.0  ;;  %v3213_v38 = vmul.f32 0.1, %v1941_v27  ;;  %vm3085_vm9 = vcmp.ge.f32.partialorder %v2453_v28, 0.0  ;;  %v1944_v40 = vadd.f32 %v6774_v61, %v1943_v34 }
 0x108   :  { %v3341_v39 = vmul.f32 0.1, %v2453_v28  ;;  %4877 = vst.msk [vmem:[%s8591_s3 + $0x204] sm:$0xf] %vm4747_vm5, %v5788_v33  ;;  %v2456_v41 = vadd.f32 %v6774_v61, %v2455_v35  ;;  %v1945_v42 = vpop.f32.mrb[7].mxu0  ;;  %v2457_v43 = vpop.f32.mrb[7].mxu1 }
 0x109   :  { %v3469_v44 = vsel %vm2957_vm8, %v1941_v27, %v3213_v38  ;;  %2155 = vmatmul.mubr.bf16.gmra.mrb[112].mxu0 %v6119_v31  ;;  %2667 = vmatmul.mubr.bf16.gmra.mrb[112].mxu1 %v6120_v32  ;;  %vm2958_vm10 = vcmp.ge.f32.partialorder %v1944_v40, 0.0  ;;  %v3214_v48 = vmul.f32 0.1, %v1944_v40  ;;  %v6132_v25 = vld [vmem:[%s8589_s0 + $0x5e0] ss:$8 sps:$4 sm:$0xff]  }
 0x10a   :  { %v3597_v45 = vsel %vm3085_vm9, %v2453_v28, %v3341_v39  ;;  %v5661_v46 = vpack.c.bf16 %v3469_v44, %v3469_v44  ;;  %5304 = vmatprep.mubr.msk.bf16.mxu0 %vm1506_vm0, %v6121_v36  ;;  %5368 = vmatprep.mubr.msk.bf16.mxu1 %vm1506_vm0, %v6123_v37  ;;  %vm3086_vm11 = vcmp.ge.f32.partialorder %v2456_v41, 0.0  ;;  %v3342_v49 = vmul.f32 0.1, %v2456_v41  ;;  %v6135_v30 = vld [vmem:[%s8589_s0 + $0x5f4] ss:$8 sps:$4 sm:$0xff]  }
 0x10b   :  { %v5789_v47 = vpack.c.bf16 %v3597_v45, %v3597_v45  ;;  %v3470_v50 = vsel %vm2958_vm10, %v1944_v40, %v3214_v48 }
 0x10c   :  { %4750 = vst.msk [vmem:[%s8591_s3 + $0x8] sm:$0xf] %vm4747_vm5, %v5661_v46  ;;  %v1948_v51 = vpop.f32.mrb[8].mxu0  ;;  %v2460_v52 = vpop.f32.mrb[8].mxu1  ;;  %v5662_v53 = vpack.c.bf16 %v3470_v50, %v3470_v50  ;;  %v3598_v54 = vsel %vm3086_vm11, %v2456_v41, %v3342_v49 }
 0x10d   :  { %4878 = vst.msk [vmem:[%s8591_s3 + $0x208] sm:$0xf] %vm4747_vm5, %v5789_v47  ;;  %v1949_v55 = vadd.f32 %v6774_v61, %v1948_v51  ;;  %v2461_v56 = vadd.f32 %v6774_v61, %v2460_v52  ;;  %v1950_v57 = vpop.f32.mrb[9].mxu0  ;;  %v2462_v58 = vpop.f32.mrb[9].mxu1  ;;  %v5790_v62 = vpack.c.bf16 %v3598_v54, %v3598_v54  ;;  %v6137_v52 = vld [vmem:[%s8589_s0 + $0x1f0] ss:$8 sps:$4 sm:$0xff]  }
 0x10e   :  { %v1951_v63 = vpop.f32.mrb[10].mxu0  ;;  %v2463_v0 = vpop.f32.mrb[10].mxu1  ;;  %4751 = vst.msk [vmem:[%s8591_s3 + $0xc] sm:$0xf] %vm4747_vm5, %v5662_v53  ;;  %v6138_v53 = vld [vmem:[%s8589_s0 + $0x5f0] ss:$8 sps:$4 sm:$0xff]  }
 0x10f   :  { %vm2959_vm12 = vcmp.ge.f32.partialorder %v1949_v55, 0.0  ;;  %v3215_v3 = vmul.f32 0.1, %v1949_v55  ;;  %vm3087_vm13 = vcmp.ge.f32.partialorder %v2461_v56, 0.0  ;;  %v3343_v4 = vmul.f32 0.1, %v2461_v56 }
 0x110   :  { %4879 = vst.msk [vmem:[%s8591_s3 + $0x20c] sm:$0xf] %vm4747_vm5, %v5790_v62  ;;  %v1952_v5 = vadd.f32 %v6774_v61, %v1951_v63  ;;  %v2464_v6 = vadd.f32 %v6774_v61, %v2463_v0  ;;  %v1953_v7 = vpop.f32.mrb[11].mxu0  ;;  %v2465_v8 = vpop.f32.mrb[11].mxu1  ;;  %v6139_v57 = vld [vmem:[%s8589_s0 + $0x204] ss:$8 sps:$4 sm:$0xff]  }
 0x111   :  { %v3471_v9 = vsel %vm2959_vm12, %v1949_v55, %v3215_v3  ;;  %v3599_v10 = vsel %vm3087_vm13, %v2461_v56, %v3343_v4  ;;  %2163 = vmatmul.mubr.bf16.gmra.mrb[116].mxu0 %v6125_v59  ;;  %2675 = vmatmul.mubr.bf16.gmra.mrb[116].mxu1 %v6126_v60  ;;  %v6141_v58 = vld [vmem:[%s8589_s0 + $0x604] ss:$8 sps:$4 sm:$0xff]  }
 0x112   :  { %v5663_v11 = vpack.c.bf16 %v3471_v9, %v3471_v9  ;;  %v5791_v12 = vpack.c.bf16 %v3599_v10, %v3599_v10  ;;  %vm2960_vm14 = vcmp.ge.f32.partialorder %v1952_v5, 0.0  ;;  %v3216_v13 = vmul.f32 0.1, %v1952_v5  ;;  %5305 = vmatprep.mubr.msk.bf16.mxu0 %vm1506_vm0, %v6127_v1  ;;  %5369 = vmatprep.mubr.msk.bf16.mxu1 %vm1506_vm0, %v6129_v2 }
 0x113   :  { %vm3088_vm15 = vcmp.ge.f32.partialorder %v2464_v6, 0.0  ;;  %v3344_v14 = vmul.f32 0.1, %v2464_v6 }
 0x114   :  { %4752 = vst.msk [vmem:[%s8591_s3 + $0x10] sm:$0xf] %vm4747_vm5, %v5663_v11  ;;  %4880 = vst.msk [vmem:[%s8591_s3 + $0x210] sm:$0xf] %vm4747_vm5, %v5791_v12  ;;  %v3472_v15 = vsel %vm2960_vm14, %v1952_v5, %v3216_v13  ;;  %v1956_v16 = vpop.f32.mrb[12].mxu0  ;;  %v2468_v17 = vpop.f32.mrb[12].mxu1 }
 0x115   :  { %v5664_v18 = vpack.c.bf16 %v3472_v15, %v3472_v15  ;;  %v3600_v19 = vsel %vm3088_vm15, %v2464_v6, %v3344_v14  ;;  %v1957_v20 = vadd.f32 %v6774_v61, %v1956_v16  ;;  %v2469_v21 = vadd.f32 %v6774_v61, %v2468_v17  ;;  %v1958_v22 = vpop.f32.mrb[13].mxu0  ;;  %v2470_v23 = vpop.f32.mrb[13].mxu1  ;;  %v6143_v17 = vld [vmem:[%s8589_s0 + $0x200] ss:$8 sps:$4 sm:$0xff]  }
 0x116   :  { %v5792_v26 = vpack.c.bf16 %v3600_v19, %v3600_v19  ;;  %v1959_v27 = vpop.f32.mrb[14].mxu0  ;;  %v2471_v28 = vpop.f32.mrb[14].mxu1  ;;  %v6145_v22 = vld [vmem:[%s8589_s0 + $0x214] ss:$8 sps:$4 sm:$0xff]  }
 0x117   :  { %4753 = vst.msk [vmem:[%s8591_s3 + $0x14] sm:$0xf] %vm4747_vm5, %v5664_v18  ;;  %vm2961_vm1 = vcmp.ge.f32.partialorder %v1957_v20, 0.0  ;;  %v3217_v31 = vmul.f32 0.1, %v1957_v20  ;;  %vm3089_vm2 = vcmp.ge.f32.partialorder %v2469_v21, 0.0  ;;  %v1960_v33 = vadd.f32 %v6774_v61, %v1959_v27 }
 0x118   :  { %v3345_v32 = vmul.f32 0.1, %v2469_v21  ;;  %4881 = vst.msk [vmem:[%s8591_s3 + $0x214] sm:$0xf] %vm4747_vm5, %v5792_v26  ;;  %v2472_v34 = vadd.f32 %v6774_v61, %v2471_v28  ;;  %v1961_v35 = vpop.f32.mrb[15].mxu0  ;;  %v2473_v36 = vpop.f32.mrb[15].mxu1 }
 0x119   :  { %v3473_v37 = vsel %vm2961_vm1, %v1957_v20, %v3217_v31  ;;  %2171 = vmatmul.mubr.bf16.gmra.mrb[120].mxu0 %v6131_v24  ;;  %2683 = vmatmul.mubr.bf16.gmra.mrb[120].mxu1 %v6132_v25  ;;  %vm2962_vm3 = vcmp.ge.f32.partialorder %v1960_v33, 0.0  ;;  %v3218_v41 = vmul.f32 0.1, %v1960_v33  ;;  %v6144_v18 = vld [vmem:[%s8589_s0 + $0x600] ss:$8 sps:$4 sm:$0xff]  }
 0x11a   :  { %v3601_v38 = vsel %vm3089_vm2, %v2469_v21, %v3345_v32  ;;  %v5665_v39 = vpack.c.bf16 %v3473_v37, %v3473_v37  ;;  %5306 = vmatprep.mubr.msk.bf16.mxu0 %vm1506_vm0, %v6133_v29  ;;  %5370 = vmatprep.mubr.msk.bf16.mxu1 %vm1506_vm0, %v6135_v30  ;;  %vm3090_vm4 = vcmp.ge.f32.partialorder %v2472_v34, 0.0  ;;  %v3346_v42 = vmul.f32 0.1, %v2472_v34  ;;  %v6147_v23 = vld [vmem:[%s8589_s0 + $0x614] ss:$8 sps:$4 sm:$0xff]  }
 0x11b   :  { %v5793_v40 = vpack.c.bf16 %v3601_v38, %v3601_v38  ;;  %v3474_v43 = vsel %vm2962_vm3, %v1960_v33, %v3218_v41 }
 0x11c   :  { %4754 = vst.msk [vmem:[%s8591_s3 + $0x18] sm:$0xf] %vm4747_vm5, %v5665_v39  ;;  %v1964_v44 = vpop.f32.mrb[16].mxu0  ;;  %v2476_v45 = vpop.f32.mrb[16].mxu1  ;;  %v5666_v46 = vpack.c.bf16 %v3474_v43, %v3474_v43  ;;  %v3602_v47 = vsel %vm3090_vm4, %v2472_v34, %v3346_v42 }
 0x11d   :  { %4882 = vst.msk [vmem:[%s8591_s3 + $0x218] sm:$0xf] %vm4747_vm5, %v5793_v40  ;;  %v1965_v48 = vadd.f32 %v6774_v61, %v1964_v44  ;;  %v2477_v49 = vadd.f32 %v6774_v61, %v2476_v45  ;;  %v1966_v50 = vpop.f32.mrb[17].mxu0  ;;  %v2478_v51 = vpop.f32.mrb[17].mxu1  ;;  %v5794_v54 = vpack.c.bf16 %v3602_v47, %v3602_v47  ;;  %v6149_v45 = vld [vmem:[%s8589_s0 + $0x210] ss:$8 sps:$4 sm:$0xff]  }
 0x11e   :  { %v1967_v55 = vpop.f32.mrb[18].mxu0  ;;  %v2479_v56 = vpop.f32.mrb[18].mxu1  ;;  %4755 = vst.msk [vmem:[%s8591_s3 + $0x1c] sm:$0xf] %vm4747_vm5, %v5666_v46  ;;  %v6150_v46 = vld [vmem:[%s8589_s0 + $0x610] ss:$8 sps:$4 sm:$0xff]  }
 0x11f   :  { %vm2963_vm6 = vcmp.ge.f32.partialorder %v1965_v48, 0.0  ;;  %v3219_v59 = vmul.f32 0.1, %v1965_v48  ;;  %vm3091_vm7 = vcmp.ge.f32.partialorder %v2477_v49, 0.0  ;;  %v3347_v60 = vmul.f32 0.1, %v2477_v49 }
 0x120   :  { %4883 = vst.msk [vmem:[%s8591_s3 + $0x21c] sm:$0xf] %vm4747_vm5, %v5794_v54  ;;  %v1968_v62 = vadd.f32 %v6774_v61, %v1967_v55  ;;  %v2480_v63 = vadd.f32 %v6774_v61, %v2479_v56  ;;  %v1969_v0 = vpop.f32.mrb[19].mxu0  ;;  %v2481_v1 = vpop.f32.mrb[19].mxu1  ;;  %v6151_v50 = vld [vmem:[%s8589_s0 + $0x224] ss:$8 sps:$4 sm:$0xff]  }
 0x121   :  { %v3475_v2 = vsel %vm2963_vm6, %v1965_v48, %v3219_v59  ;;  %v3603_v3 = vsel %vm3091_vm7, %v2477_v49, %v3347_v60  ;;  %2179 = vmatmul.mubr.bf16.gmra.mrb[124].mxu0 %v6137_v52  ;;  %2691 = vmatmul.mubr.bf16.gmra.mrb[124].mxu1 %v6138_v53  ;;  %v6153_v51 = vld [vmem:[%s8589_s0 + $0x624] ss:$8 sps:$4 sm:$0xff]  }
 0x122   :  { %v5667_v4 = vpack.c.bf16 %v3475_v2, %v3475_v2  ;;  %v5795_v5 = vpack.c.bf16 %v3603_v3, %v3603_v3  ;;  %vm2964_vm8 = vcmp.ge.f32.partialorder %v1968_v62, 0.0  ;;  %v3220_v6 = vmul.f32 0.1, %v1968_v62  ;;  %5307 = vmatprep.mubr.msk.bf16.mxu0 %vm1506_vm0, %v6139_v57  ;;  %5371 = vmatprep.mubr.msk.bf16.mxu1 %vm1506_vm0, %v6141_v58 }
 0x123   :  { %vm3092_vm9 = vcmp.ge.f32.partialorder %v2480_v63, 0.0  ;;  %v3348_v7 = vmul.f32 0.1, %v2480_v63 }
 0x124   :  { %4756 = vst.msk [vmem:[%s8591_s3 + $0x20] sm:$0xf] %vm4747_vm5, %v5667_v4  ;;  %4884 = vst.msk [vmem:[%s8591_s3 + $0x220] sm:$0xf] %vm4747_vm5, %v5795_v5  ;;  %v3476_v8 = vsel %vm2964_vm8, %v1968_v62, %v3220_v6  ;;  %v1972_v9 = vpop.f32.mrb[20].mxu0  ;;  %v2484_v10 = vpop.f32.mrb[20].mxu1 }
 0x125   :  { %v5668_v11 = vpack.c.bf16 %v3476_v8, %v3476_v8  ;;  %v3604_v12 = vsel %vm3092_vm9, %v2480_v63, %v3348_v7  ;;  %v1973_v13 = vadd.f32 %v6774_v61, %v1972_v9  ;;  %v2485_v14 = vadd.f32 %v6774_v61, %v2484_v10  ;;  %v1974_v15 = vpop.f32.mrb[21].mxu0  ;;  %v2486_v16 = vpop.f32.mrb[21].mxu1  ;;  %v6155_v10 = vld [vmem:[%s8589_s0 + $0x220] ss:$8 sps:$4 sm:$0xff]  }
 0x126   :  { %v5796_v19 = vpack.c.bf16 %v3604_v12, %v3604_v12  ;;  %v1975_v20 = vpop.f32.mrb[22].mxu0  ;;  %v2487_v21 = vpop.f32.mrb[22].mxu1  ;;  %v6157_v15 = vld [vmem:[%s8589_s0 + $0x234] ss:$8 sps:$4 sm:$0xff]  }
 0x127   :  { %4757 = vst.msk [vmem:[%s8591_s3 + $0x24] sm:$0xf] %vm4747_vm5, %v5668_v11  ;;  %vm2965_vm10 = vcmp.ge.f32.partialorder %v1973_v13, 0.0  ;;  %v3221_v24 = vmul.f32 0.1, %v1973_v13  ;;  %vm3093_vm11 = vcmp.ge.f32.partialorder %v2485_v14, 0.0  ;;  %v1976_v26 = vadd.f32 %v6774_v61, %v1975_v20 }
 0x128   :  { %v3349_v25 = vmul.f32 0.1, %v2485_v14  ;;  %4885 = vst.msk [vmem:[%s8591_s3 + $0x224] sm:$0xf] %vm4747_vm5, %v5796_v19  ;;  %v2488_v27 = vadd.f32 %v6774_v61, %v2487_v21  ;;  %v1977_v28 = vpop.f32.mrb[23].mxu0  ;;  %v2489_v29 = vpop.f32.mrb[23].mxu1 }
 0x129   :  { %v3477_v30 = vsel %vm2965_vm10, %v1973_v13, %v3221_v24  ;;  %2187 = vmatmul.mubr.bf16.gmra.mrb[128].mxu0 %v6143_v17  ;;  %2699 = vmatmul.mubr.bf16.gmra.mrb[128].mxu1 %v6144_v18  ;;  %vm2966_vm12 = vcmp.ge.f32.partialorder %v1976_v26, 0.0  ;;  %v3222_v34 = vmul.f32 0.1, %v1976_v26  ;;  %v6156_v11 = vld [vmem:[%s8589_s0 + $0x620] ss:$8 sps:$4 sm:$0xff]  }
 0x12a   :  { %v3605_v31 = vsel %vm3093_vm11, %v2485_v14, %v3349_v25  ;;  %v5669_v32 = vpack.c.bf16 %v3477_v30, %v3477_v30  ;;  %5308 = vmatprep.mubr.msk.bf16.mxu0 %vm1506_vm0, %v6145_v22  ;;  %5372 = vmatprep.mubr.msk.bf16.mxu1 %vm1506_vm0, %v6147_v23  ;;  %vm3094_vm13 = vcmp.ge.f32.partialorder %v2488_v27, 0.0  ;;  %v3350_v35 = vmul.f32 0.1, %v2488_v27  ;;  %v6159_v16 = vld [vmem:[%s8589_s0 + $0x634] ss:$8 sps:$4 sm:$0xff]  }
 0x12b   :  { %v5797_v33 = vpack.c.bf16 %v3605_v31, %v3605_v31  ;;  %v3478_v36 = vsel %vm2966_vm12, %v1976_v26, %v3222_v34 }
 0x12c   :  { %4758 = vst.msk [vmem:[%s8591_s3 + $0x28] sm:$0xf] %vm4747_vm5, %v5669_v32  ;;  %v1980_v37 = vpop.f32.mrb[24].mxu0  ;;  %v2492_v38 = vpop.f32.mrb[24].mxu1  ;;  %v5670_v39 = vpack.c.bf16 %v3478_v36, %v3478_v36  ;;  %v3606_v40 = vsel %vm3094_vm13, %v2488_v27, %v3350_v35 }
 0x12d   :  { %4886 = vst.msk [vmem:[%s8591_s3 + $0x228] sm:$0xf] %vm4747_vm5, %v5797_v33  ;;  %v1981_v41 = vadd.f32 %v6774_v61, %v1980_v37  ;;  %v2493_v42 = vadd.f32 %v6774_v61, %v2492_v38  ;;  %v1982_v43 = vpop.f32.mrb[25].mxu0  ;;  %v2494_v44 = vpop.f32.mrb[25].mxu1  ;;  %v5798_v47 = vpack.c.bf16 %v3606_v40, %v3606_v40  ;;  %v6161_v38 = vld [vmem:[%s8589_s0 + $0x230] ss:$8 sps:$4 sm:$0xff]  }
 0x12e   :  { %v1983_v48 = vpop.f32.mrb[26].mxu0  ;;  %v2495_v49 = vpop.f32.mrb[26].mxu1  ;;  %4759 = vst.msk [vmem:[%s8591_s3 + $0x2c] sm:$0xf] %vm4747_vm5, %v5670_v39  ;;  %v6162_v39 = vld [vmem:[%s8589_s0 + $0x630] ss:$8 sps:$4 sm:$0xff]  }
 0x12f   :  { %vm2967_vm14 = vcmp.ge.f32.partialorder %v1981_v41, 0.0  ;;  %v3223_v52 = vmul.f32 0.1, %v1981_v41  ;;  %vm3095_vm15 = vcmp.ge.f32.partialorder %v2493_v42, 0.0  ;;  %v3351_v53 = vmul.f32 0.1, %v2493_v42 }
 0x130   :  { %4887 = vst.msk [vmem:[%s8591_s3 + $0x22c] sm:$0xf] %vm4747_vm5, %v5798_v47  ;;  %v1984_v54 = vadd.f32 %v6774_v61, %v1983_v48  ;;  %v2496_v55 = vadd.f32 %v6774_v61, %v2495_v49  ;;  %v1985_v56 = vpop.f32.mrb[27].mxu0  ;;  %v2497_v57 = vpop.f32.mrb[27].mxu1  ;;  %v6163_v43 = vld [vmem:[%s8589_s0 + $0x244] ss:$8 sps:$4 sm:$0xff]  }
 0x131   :  { %v3479_v58 = vsel %vm2967_vm14, %v1981_v41, %v3223_v52  ;;  %v3607_v59 = vsel %vm3095_vm15, %v2493_v42, %v3351_v53  ;;  %2195 = vmatmul.mubr.bf16.gmra.mrb[132].mxu0 %v6149_v45  ;;  %2707 = vmatmul.mubr.bf16.gmra.mrb[132].mxu1 %v6150_v46  ;;  %v6165_v44 = vld [vmem:[%s8589_s0 + $0x644] ss:$8 sps:$4 sm:$0xff]  }
 0x132   :  { %v5671_v60 = vpack.c.bf16 %v3479_v58, %v3479_v58  ;;  %v5799_v62 = vpack.c.bf16 %v3607_v59, %v3607_v59  ;;  %vm2968_vm1 = vcmp.ge.f32.partialorder %v1984_v54, 0.0  ;;  %v3224_v63 = vmul.f32 0.1, %v1984_v54  ;;  %5309 = vmatprep.mubr.msk.bf16.mxu0 %vm1506_vm0, %v6151_v50  ;;  %5373 = vmatprep.mubr.msk.bf16.mxu1 %vm1506_vm0, %v6153_v51 }
 0x133   :  { %vm3096_vm2 = vcmp.ge.f32.partialorder %v2496_v55, 0.0  ;;  %v3352_v0 = vmul.f32 0.1, %v2496_v55 }
 0x134   :  { %4760 = vst.msk [vmem:[%s8591_s3 + $0x30] sm:$0xf] %vm4747_vm5, %v5671_v60  ;;  %4888 = vst.msk [vmem:[%s8591_s3 + $0x230] sm:$0xf] %vm4747_vm5, %v5799_v62  ;;  %v3480_v1 = vsel %vm2968_vm1, %v1984_v54, %v3224_v63  ;;  %v1988_v2 = vpop.f32.mrb[28].mxu0  ;;  %v2500_v3 = vpop.f32.mrb[28].mxu1 }
 0x135   :  { %v5672_v4 = vpack.c.bf16 %v3480_v1, %v3480_v1  ;;  %v3608_v5 = vsel %vm3096_vm2, %v2496_v55, %v3352_v0  ;;  %v1989_v6 = vadd.f32 %v6774_v61, %v1988_v2  ;;  %v2501_v7 = vadd.f32 %v6774_v61, %v2500_v3  ;;  %v1990_v8 = vpop.f32.mrb[29].mxu0  ;;  %v2502_v9 = vpop.f32.mrb[29].mxu1  ;;  %v6167_v3 = vld [vmem:[%s8589_s0 + $0x240] ss:$8 sps:$4 sm:$0xff]  }
 0x136   :  { %v5800_v12 = vpack.c.bf16 %v3608_v5, %v3608_v5  ;;  %v1991_v13 = vpop.f32.mrb[30].mxu0  ;;  %v2503_v14 = vpop.f32.mrb[30].mxu1  ;;  %v6169_v8 = vld [vmem:[%s8589_s0 + $0x254] ss:$8 sps:$4 sm:$0xff]  }
 0x137   :  { %4761 = vst.msk [vmem:[%s8591_s3 + $0x34] sm:$0xf] %vm4747_vm5, %v5672_v4  ;;  %vm2969_vm3 = vcmp.ge.f32.partialorder %v1989_v6, 0.0  ;;  %v3225_v17 = vmul.f32 0.1, %v1989_v6  ;;  %vm3097_vm4 = vcmp.ge.f32.partialorder %v2501_v7, 0.0  ;;  %v1992_v19 = vadd.f32 %v6774_v61, %v1991_v13 }
 0x138   :  { %v3353_v18 = vmul.f32 0.1, %v2501_v7  ;;  %4889 = vst.msk [vmem:[%s8591_s3 + $0x234] sm:$0xf] %vm4747_vm5, %v5800_v12  ;;  %v2504_v20 = vadd.f32 %v6774_v61, %v2503_v14  ;;  %v1993_v21 = vpop.f32.mrb[31].mxu0  ;;  %v2505_v22 = vpop.f32.mrb[31].mxu1 }
 0x139   :  { %v3481_v23 = vsel %vm2969_vm3, %v1989_v6, %v3225_v17  ;;  %2203 = vmatmul.mubr.bf16.gmra.mrb[136].mxu0 %v6155_v10  ;;  %2715 = vmatmul.mubr.bf16.gmra.mrb[136].mxu1 %v6156_v11  ;;  %vm2970_vm6 = vcmp.ge.f32.partialorder %v1992_v19, 0.0  ;;  %v3226_v27 = vmul.f32 0.1, %v1992_v19  ;;  %v6168_v4 = vld [vmem:[%s8589_s0 + $0x640] ss:$8 sps:$4 sm:$0xff]  }
 0x13a   :  { %v3609_v24 = vsel %vm3097_vm4, %v2501_v7, %v3353_v18  ;;  %v5673_v25 = vpack.c.bf16 %v3481_v23, %v3481_v23  ;;  %5310 = vmatprep.mubr.msk.bf16.mxu0 %vm1506_vm0, %v6157_v15  ;;  %5374 = vmatprep.mubr.msk.bf16.mxu1 %vm1506_vm0, %v6159_v16  ;;  %vm3098_vm7 = vcmp.ge.f32.partialorder %v2504_v20, 0.0  ;;  %v3354_v28 = vmul.f32 0.1, %v2504_v20  ;;  %v6171_v9 = vld [vmem:[%s8589_s0 + $0x654] ss:$8 sps:$4 sm:$0xff]  }
 0x13b   :  { %v5801_v26 = vpack.c.bf16 %v3609_v24, %v3609_v24  ;;  %v3482_v29 = vsel %vm2970_vm6, %v1992_v19, %v3226_v27 }
 0x13c   :  { %4762 = vst.msk [vmem:[%s8591_s3 + $0x38] sm:$0xf] %vm4747_vm5, %v5673_v25  ;;  %v1996_v30 = vpop.f32.mrb[32].mxu0  ;;  %v2508_v31 = vpop.f32.mrb[32].mxu1  ;;  %v5674_v32 = vpack.c.bf16 %v3482_v29, %v3482_v29  ;;  %v3610_v33 = vsel %vm3098_vm7, %v2504_v20, %v3354_v28 }
 0x13d   :  { %4890 = vst.msk [vmem:[%s8591_s3 + $0x238] sm:$0xf] %vm4747_vm5, %v5801_v26  ;;  %v1997_v34 = vadd.f32 %v6774_v61, %v1996_v30  ;;  %v2509_v35 = vadd.f32 %v6774_v61, %v2508_v31  ;;  %v1998_v36 = vpop.f32.mrb[33].mxu0  ;;  %v2510_v37 = vpop.f32.mrb[33].mxu1  ;;  %v5802_v40 = vpack.c.bf16 %v3610_v33, %v3610_v33  ;;  %v6173_v31 = vld [vmem:[%s8589_s0 + $0x250] ss:$8 sps:$4 sm:$0xff]  }
 0x13e   :  { %v1999_v41 = vpop.f32.mrb[34].mxu0  ;;  %v2511_v42 = vpop.f32.mrb[34].mxu1  ;;  %4763 = vst.msk [vmem:[%s8591_s3 + $0x3c] sm:$0xf] %vm4747_vm5, %v5674_v32  ;;  %v6174_v32 = vld [vmem:[%s8589_s0 + $0x650] ss:$8 sps:$4 sm:$0xff]  }
 0x13f   :  { %vm2971_vm8 = vcmp.ge.f32.partialorder %v1997_v34, 0.0  ;;  %v3227_v45 = vmul.f32 0.1, %v1997_v34  ;;  %vm3099_vm9 = vcmp.ge.f32.partialorder %v2509_v35, 0.0  ;;  %v3355_v46 = vmul.f32 0.1, %v2509_v35 }
 0x140   :  { %4891 = vst.msk [vmem:[%s8591_s3 + $0x23c] sm:$0xf] %vm4747_vm5, %v5802_v40  ;;  %v2000_v47 = vadd.f32 %v6774_v61, %v1999_v41  ;;  %v2512_v48 = vadd.f32 %v6774_v61, %v2511_v42  ;;  %v2001_v49 = vpop.f32.mrb[35].mxu0  ;;  %v2513_v50 = vpop.f32.mrb[35].mxu1  ;;  %v6175_v36 = vld [vmem:[%s8589_s0 + $0x264] ss:$8 sps:$4 sm:$0xff]  }
 0x141   :  { %v3483_v51 = vsel %vm2971_vm8, %v1997_v34, %v3227_v45  ;;  %v3611_v52 = vsel %vm3099_vm9, %v2509_v35, %v3355_v46  ;;  %2211 = vmatmul.mubr.bf16.gmra.mrb[140].mxu0 %v6161_v38  ;;  %2723 = vmatmul.mubr.bf16.gmra.mrb[140].mxu1 %v6162_v39  ;;  %v6177_v37 = vld [vmem:[%s8589_s0 + $0x664] ss:$8 sps:$4 sm:$0xff]  }
 0x142   :  { %v5675_v53 = vpack.c.bf16 %v3483_v51, %v3483_v51  ;;  %v5803_v54 = vpack.c.bf16 %v3611_v52, %v3611_v52  ;;  %vm2972_vm10 = vcmp.ge.f32.partialorder %v2000_v47, 0.0  ;;  %v3228_v55 = vmul.f32 0.1, %v2000_v47  ;;  %5311 = vmatprep.mubr.msk.bf16.mxu0 %vm1506_vm0, %v6163_v43  ;;  %5375 = vmatprep.mubr.msk.bf16.mxu1 %vm1506_vm0, %v6165_v44 }
 0x143   :  { %vm3100_vm11 = vcmp.ge.f32.partialorder %v2512_v48, 0.0  ;;  %v3356_v56 = vmul.f32 0.1, %v2512_v48 }
 0x144   :  { %4764 = vst.msk [vmem:[%s8591_s3 + $0x40] sm:$0xf] %vm4747_vm5, %v5675_v53  ;;  %4892 = vst.msk [vmem:[%s8591_s3 + $0x240] sm:$0xf] %vm4747_vm5, %v5803_v54  ;;  %v3484_v57 = vsel %vm2972_vm10, %v2000_v47, %v3228_v55  ;;  %v2004_v58 = vpop.f32.mrb[36].mxu0  ;;  %v2516_v59 = vpop.f32.mrb[36].mxu1 }
 0x145   :  { %v5676_v60 = vpack.c.bf16 %v3484_v57, %v3484_v57  ;;  %v3612_v62 = vsel %vm3100_vm11, %v2512_v48, %v3356_v56  ;;  %v2005_v63 = vadd.f32 %v6774_v61, %v2004_v58  ;;  %v2517_v0 = vadd.f32 %v6774_v61, %v2516_v59  ;;  %v2006_v1 = vpop.f32.mrb[37].mxu0  ;;  %v2518_v2 = vpop.f32.mrb[37].mxu1  ;;  %v6179_v59 = vld [vmem:[%s8589_s0 + $0x260] ss:$8 sps:$4 sm:$0xff]  }
 0x146   :  { %v5804_v5 = vpack.c.bf16 %v3612_v62, %v3612_v62  ;;  %v2007_v6 = vpop.f32.mrb[38].mxu0  ;;  %v2519_v7 = vpop.f32.mrb[38].mxu1  ;;  %v6181_v1 = vld [vmem:[%s8589_s0 + $0x274] ss:$8 sps:$4 sm:$0xff]  }
 0x147   :  { %4765 = vst.msk [vmem:[%s8591_s3 + $0x44] sm:$0xf] %vm4747_vm5, %v5676_v60  ;;  %vm2973_vm12 = vcmp.ge.f32.partialorder %v2005_v63, 0.0  ;;  %v3229_v10 = vmul.f32 0.1, %v2005_v63  ;;  %vm3101_vm13 = vcmp.ge.f32.partialorder %v2517_v0, 0.0  ;;  %v2008_v12 = vadd.f32 %v6774_v61, %v2007_v6 }
 0x148   :  { %v3357_v11 = vmul.f32 0.1, %v2517_v0  ;;  %4893 = vst.msk [vmem:[%s8591_s3 + $0x244] sm:$0xf] %vm4747_vm5, %v5804_v5  ;;  %v2520_v13 = vadd.f32 %v6774_v61, %v2519_v7  ;;  %v2009_v14 = vpop.f32.mrb[39].mxu0  ;;  %v2521_v15 = vpop.f32.mrb[39].mxu1 }
 0x149   :  { %v3485_v16 = vsel %vm2973_vm12, %v2005_v63, %v3229_v10  ;;  %2219 = vmatmul.mubr.bf16.gmra.mrb[144].mxu0 %v6167_v3  ;;  %2731 = vmatmul.mubr.bf16.gmra.mrb[144].mxu1 %v6168_v4  ;;  %vm2974_vm14 = vcmp.ge.f32.partialorder %v2008_v12, 0.0  ;;  %v3230_v20 = vmul.f32 0.1, %v2008_v12  ;;  %v6180_v60 = vld [vmem:[%s8589_s0 + $0x660] ss:$8 sps:$4 sm:$0xff]  }
 0x14a   :  { %v3613_v17 = vsel %vm3101_vm13, %v2517_v0, %v3357_v11  ;;  %v5677_v18 = vpack.c.bf16 %v3485_v16, %v3485_v16  ;;  %5312 = vmatprep.mubr.msk.bf16.mxu0 %vm1506_vm0, %v6169_v8  ;;  %5376 = vmatprep.mubr.msk.bf16.mxu1 %vm1506_vm0, %v6171_v9  ;;  %vm3102_vm15 = vcmp.ge.f32.partialorder %v2520_v13, 0.0  ;;  %v3358_v21 = vmul.f32 0.1, %v2520_v13  ;;  %v6183_v2 = vld [vmem:[%s8589_s0 + $0x674] ss:$8 sps:$4 sm:$0xff]  }
 0x14b   :  { %v5805_v19 = vpack.c.bf16 %v3613_v17, %v3613_v17  ;;  %v3486_v22 = vsel %vm2974_vm14, %v2008_v12, %v3230_v20 }
 0x14c   :  { %4766 = vst.msk [vmem:[%s8591_s3 + $0x48] sm:$0xf] %vm4747_vm5, %v5677_v18  ;;  %v2012_v23 = vpop.f32.mrb[40].mxu0  ;;  %v2524_v24 = vpop.f32.mrb[40].mxu1  ;;  %v5678_v25 = vpack.c.bf16 %v3486_v22, %v3486_v22  ;;  %v3614_v26 = vsel %vm3102_vm15, %v2520_v13, %v3358_v21 }
 0x14d   :  { %4894 = vst.msk [vmem:[%s8591_s3 + $0x248] sm:$0xf] %vm4747_vm5, %v5805_v19  ;;  %v2013_v27 = vadd.f32 %v6774_v61, %v2012_v23  ;;  %v2525_v28 = vadd.f32 %v6774_v61, %v2524_v24  ;;  %v2014_v29 = vpop.f32.mrb[41].mxu0  ;;  %v2526_v30 = vpop.f32.mrb[41].mxu1  ;;  %v5806_v33 = vpack.c.bf16 %v3614_v26, %v3614_v26  ;;  %v6185_v24 = vld [vmem:[%s8589_s0 + $0x270] ss:$8 sps:$4 sm:$0xff]  }
 0x14e   :  { %v2015_v34 = vpop.f32.mrb[42].mxu0  ;;  %v2527_v35 = vpop.f32.mrb[42].mxu1  ;;  %4767 = vst.msk [vmem:[%s8591_s3 + $0x4c] sm:$0xf] %vm4747_vm5, %v5678_v25  ;;  %v6186_v25 = vld [vmem:[%s8589_s0 + $0x670] ss:$8 sps:$4 sm:$0xff]  }
 0x14f   :  { %vm2975_vm1 = vcmp.ge.f32.partialorder %v2013_v27, 0.0  ;;  %v3231_v38 = vmul.f32 0.1, %v2013_v27  ;;  %vm3103_vm2 = vcmp.ge.f32.partialorder %v2525_v28, 0.0  ;;  %v3359_v39 = vmul.f32 0.1, %v2525_v28 }
 0x150   :  { %4895 = vst.msk [vmem:[%s8591_s3 + $0x24c] sm:$0xf] %vm4747_vm5, %v5806_v33  ;;  %v2016_v40 = vadd.f32 %v6774_v61, %v2015_v34  ;;  %v2528_v41 = vadd.f32 %v6774_v61, %v2527_v35  ;;  %v2017_v42 = vpop.f32.mrb[43].mxu0  ;;  %v2529_v43 = vpop.f32.mrb[43].mxu1  ;;  %v6187_v29 = vld [vmem:[%s8589_s0 + $0x284] ss:$8 sps:$4 sm:$0xff]  }
 0x151   :  { %v3487_v44 = vsel %vm2975_vm1, %v2013_v27, %v3231_v38  ;;  %v3615_v45 = vsel %vm3103_vm2, %v2525_v28, %v3359_v39  ;;  %2227 = vmatmul.mubr.bf16.gmra.mrb[148].mxu0 %v6173_v31  ;;  %2739 = vmatmul.mubr.bf16.gmra.mrb[148].mxu1 %v6174_v32  ;;  %v6189_v30 = vld [vmem:[%s8589_s0 + $0x684] ss:$8 sps:$4 sm:$0xff]  }
 0x152   :  { %v5679_v46 = vpack.c.bf16 %v3487_v44, %v3487_v44  ;;  %v5807_v47 = vpack.c.bf16 %v3615_v45, %v3615_v45  ;;  %vm2976_vm3 = vcmp.ge.f32.partialorder %v2016_v40, 0.0  ;;  %v3232_v48 = vmul.f32 0.1, %v2016_v40  ;;  %5313 = vmatprep.mubr.msk.bf16.mxu0 %vm1506_vm0, %v6175_v36  ;;  %5377 = vmatprep.mubr.msk.bf16.mxu1 %vm1506_vm0, %v6177_v37 }
 0x153   :  { %vm3104_vm4 = vcmp.ge.f32.partialorder %v2528_v41, 0.0  ;;  %v3360_v49 = vmul.f32 0.1, %v2528_v41 }
 0x154   :  { %4768 = vst.msk [vmem:[%s8591_s3 + $0x50] sm:$0xf] %vm4747_vm5, %v5679_v46  ;;  %4896 = vst.msk [vmem:[%s8591_s3 + $0x250] sm:$0xf] %vm4747_vm5, %v5807_v47  ;;  %v3488_v50 = vsel %vm2976_vm3, %v2016_v40, %v3232_v48  ;;  %v2020_v51 = vpop.f32.mrb[44].mxu0  ;;  %v2532_v52 = vpop.f32.mrb[44].mxu1 }
 0x155   :  { %v5680_v53 = vpack.c.bf16 %v3488_v50, %v3488_v50  ;;  %v3616_v54 = vsel %vm3104_vm4, %v2528_v41, %v3360_v49  ;;  %v2021_v55 = vadd.f32 %v6774_v61, %v2020_v51  ;;  %v2533_v56 = vadd.f32 %v6774_v61, %v2532_v52  ;;  %v2022_v57 = vpop.f32.mrb[45].mxu0  ;;  %v2534_v58 = vpop.f32.mrb[45].mxu1  ;;  %v7215_v47 = vld [vmem:[%s8590_s2] ss:$0 sm:$0xff] }
 0x156   :  { %v5808_v62 = vpack.c.bf16 %v3616_v54, %v3616_v54  ;;  %v2023_v63 = vpop.f32.mrb[46].mxu0  ;;  %v2535_v0 = vpop.f32.mrb[46].mxu1  ;;  %v6191_v52 = vld [vmem:[%s8589_s0 + $0x280] ss:$8 sps:$4 sm:$0xff]   ;;  %v6193_v57 = vld [vmem:[%s8589_s0 + $0x294] ss:$8 sps:$4 sm:$0xff]  }
 0x157   :  { %4769 = vst.msk [vmem:[%s8591_s3 + $0x54] sm:$0xf] %vm4747_vm5, %v5680_v53  ;;  %vm2977_vm6 = vcmp.ge.f32.partialorder %v2021_v55, 0.0  ;;  %v3233_v3 = vmul.f32 0.1, %v2021_v55  ;;  %vm3105_vm7 = vcmp.ge.f32.partialorder %v2533_v56, 0.0  ;;  %v2024_v5 = vadd.f32 %v6774_v61, %v2023_v63 }
 0x158   :  { %v3361_v4 = vmul.f32 0.1, %v2533_v56  ;;  %4897 = vst.msk [vmem:[%s8591_s3 + $0x254] sm:$0xf] %vm4747_vm5, %v5808_v62  ;;  %v2536_v6 = vadd.f32 %v6774_v61, %v2535_v0  ;;  %v2025_v7 = vpop.f32.mrb[47].mxu0  ;;  %v2537_v8 = vpop.f32.mrb[47].mxu1 }
 0x159   :  { %v3489_v9 = vsel %vm2977_vm6, %v2021_v55, %v3233_v3  ;;  %2235 = vmatmul.mubr.bf16.gmra.mrb[152].mxu0 %v6179_v59  ;;  %2747 = vmatmul.mubr.bf16.gmra.mrb[152].mxu1 %v6180_v60  ;;  %vm2978_vm8 = vcmp.ge.f32.partialorder %v2024_v5, 0.0  ;;  %v3234_v13 = vmul.f32 0.1, %v2024_v5  ;;  %v6192_v53 = vld [vmem:[%s8589_s0 + $0x680] ss:$8 sps:$4 sm:$0xff]  }
 0x15a   :  { %v3617_v10 = vsel %vm3105_vm7, %v2533_v56, %v3361_v4  ;;  %v5681_v11 = vpack.c.bf16 %v3489_v9, %v3489_v9  ;;  %5314 = vmatprep.mubr.msk.bf16.mxu0 %vm1506_vm0, %v6181_v1  ;;  %5378 = vmatprep.mubr.msk.bf16.mxu1 %vm1506_vm0, %v6183_v2  ;;  %vm3106_vm9 = vcmp.ge.f32.partialorder %v2536_v6, 0.0  ;;  %v3362_v14 = vmul.f32 0.1, %v2536_v6  ;;  %v6195_v58 = vld [vmem:[%s8589_s0 + $0x694] ss:$8 sps:$4 sm:$0xff]  }
 0x15b   :  { %v5809_v12 = vpack.c.bf16 %v3617_v10, %v3617_v10  ;;  %v3490_v15 = vsel %vm2978_vm8, %v2024_v5, %v3234_v13 }
 0x15c   :  { %4770 = vst.msk [vmem:[%s8591_s3 + $0x58] sm:$0xf] %vm4747_vm5, %v5681_v11  ;;  %v2028_v16 = vpop.f32.mrb[48].mxu0  ;;  %v2540_v17 = vpop.f32.mrb[48].mxu1  ;;  %v5682_v18 = vpack.c.bf16 %v3490_v15, %v3490_v15  ;;  %v3618_v19 = vsel %vm3106_vm9, %v2536_v6, %v3362_v14 }
 0x15d   :  { %4898 = vst.msk [vmem:[%s8591_s3 + $0x258] sm:$0xf] %vm4747_vm5, %v5809_v12  ;;  %v2029_v20 = vadd.f32 %v6774_v61, %v2028_v16  ;;  %v2541_v21 = vadd.f32 %v6774_v61, %v2540_v17  ;;  %v2030_v22 = vpop.f32.mrb[49].mxu0  ;;  %v2542_v23 = vpop.f32.mrb[49].mxu1  ;;  %v5810_v26 = vpack.c.bf16 %v3618_v19, %v3618_v19  ;;  %v6197_v17 = vld [vmem:[%s8589_s0 + $0x290] ss:$8 sps:$4 sm:$0xff]  }
 0x15e   :  { %v2031_v27 = vpop.f32.mrb[50].mxu0  ;;  %v2543_v28 = vpop.f32.mrb[50].mxu1  ;;  %4771 = vst.msk [vmem:[%s8591_s3 + $0x5c] sm:$0xf] %vm4747_vm5, %v5682_v18  ;;  %v6198_v18 = vld [vmem:[%s8589_s0 + $0x690] ss:$8 sps:$4 sm:$0xff]  }
 0x15f   :  { %vm2979_vm10 = vcmp.ge.f32.partialorder %v2029_v20, 0.0  ;;  %v3235_v31 = vmul.f32 0.1, %v2029_v20  ;;  %vm3107_vm11 = vcmp.ge.f32.partialorder %v2541_v21, 0.0  ;;  %v3363_v32 = vmul.f32 0.1, %v2541_v21 }
 0x160   :  { %4899 = vst.msk [vmem:[%s8591_s3 + $0x25c] sm:$0xf] %vm4747_vm5, %v5810_v26  ;;  %v2032_v33 = vadd.f32 %v6774_v61, %v2031_v27  ;;  %v2544_v34 = vadd.f32 %v6774_v61, %v2543_v28  ;;  %v2033_v35 = vpop.f32.mrb[51].mxu0  ;;  %v2545_v36 = vpop.f32.mrb[51].mxu1  ;;  %v6199_v22 = vld [vmem:[%s8589_s0 + $0x2a4] ss:$8 sps:$4 sm:$0xff]  }
 0x161   :  { %v3491_v37 = vsel %vm2979_vm10, %v2029_v20, %v3235_v31  ;;  %v3619_v38 = vsel %vm3107_vm11, %v2541_v21, %v3363_v32  ;;  %2243 = vmatmul.mubr.bf16.gmra.mrb[156].mxu0 %v6185_v24  ;;  %2755 = vmatmul.mubr.bf16.gmra.mrb[156].mxu1 %v6186_v25  ;;  %v6201_v23 = vld [vmem:[%s8589_s0 + $0x6a4] ss:$8 sps:$4 sm:$0xff]  }
 0x162   :  { %v5683_v39 = vpack.c.bf16 %v3491_v37, %v3491_v37  ;;  %v5811_v40 = vpack.c.bf16 %v3619_v38, %v3619_v38  ;;  %vm2980_vm12 = vcmp.ge.f32.partialorder %v2032_v33, 0.0  ;;  %v3236_v41 = vmul.f32 0.1, %v2032_v33  ;;  %5315 = vmatprep.mubr.msk.bf16.mxu0 %vm1506_vm0, %v6187_v29  ;;  %5379 = vmatprep.mubr.msk.bf16.mxu1 %vm1506_vm0, %v6189_v30 }
 0x163   :  { %vm3108_vm13 = vcmp.ge.f32.partialorder %v2544_v34, 0.0  ;;  %v3364_v42 = vmul.f32 0.1, %v2544_v34 }
 0x164   :  { %4772 = vst.msk [vmem:[%s8591_s3 + $0x60] sm:$0xf] %vm4747_vm5, %v5683_v39  ;;  %4900 = vst.msk [vmem:[%s8591_s3 + $0x260] sm:$0xf] %vm4747_vm5, %v5811_v40  ;;  %v3492_v61 = vsel %vm2980_vm12, %v2032_v33, %v3236_v41  ;;  %v2036_v43 = vpop.f32.mrb[52].mxu0  ;;  %v2548_v44 = vpop.f32.mrb[52].mxu1 }
 0x165   :  { %v5684_v45 = vpack.c.bf16 %v3492_v61, %v3492_v61  ;;  %v3620_v46 = vsel %vm3108_vm13, %v2544_v34, %v3364_v42  ;;  %v2037_v48 = vadd.f32 %v7215_v47, %v2036_v43  ;;  %v2549_v49 = vadd.f32 %v7215_v47, %v2548_v44  ;;  %v2038_v50 = vpop.f32.mrb[53].mxu0  ;;  %v2550_v51 = vpop.f32.mrb[53].mxu1  ;;  %v6203_v44 = vld [vmem:[%s8589_s0 + $0x2a0] ss:$8 sps:$4 sm:$0xff]  }
 0x166   :  { %v5812_v54 = vpack.c.bf16 %v3620_v46, %v3620_v46  ;;  %v2039_v55 = vpop.f32.mrb[54].mxu0  ;;  %v2551_v56 = vpop.f32.mrb[54].mxu1  ;;  %v6205_v50 = vld [vmem:[%s8589_s0 + $0x2b4] ss:$8 sps:$4 sm:$0xff]  }
 0x167   :  { %4773 = vst.msk [vmem:[%s8591_s3 + $0x64] sm:$0xf] %vm4747_vm5, %v5684_v45  ;;  %vm2981_vm14 = vcmp.ge.f32.partialorder %v2037_v48, 0.0  ;;  %v3237_v59 = vmul.f32 0.1, %v2037_v48  ;;  %vm3109_vm15 = vcmp.ge.f32.partialorder %v2549_v49, 0.0  ;;  %v2040_v62 = vadd.f32 %v7215_v47, %v2039_v55 }
 0x168   :  { %v3365_v60 = vmul.f32 0.1, %v2549_v49  ;;  %4901 = vst.msk [vmem:[%s8591_s3 + $0x264] sm:$0xf] %vm4747_vm5, %v5812_v54  ;;  %v2552_v63 = vadd.f32 %v7215_v47, %v2551_v56  ;;  %v2041_v0 = vpop.f32.mrb[55].mxu0  ;;  %v2553_v1 = vpop.f32.mrb[55].mxu1 }
 0x169   :  { %v3493_v2 = vsel %vm2981_vm14, %v2037_v48, %v3237_v59  ;;  %2251 = vmatmul.mubr.bf16.gmra.mrb[160].mxu0 %v6191_v52  ;;  %2763 = vmatmul.mubr.bf16.gmra.mrb[160].mxu1 %v6192_v53  ;;  %vm2982_vm1 = vcmp.ge.f32.partialorder %v2040_v62, 0.0  ;;  %v3238_v6 = vmul.f32 0.1, %v2040_v62  ;;  %v6204_v45 = vld [vmem:[%s8589_s0 + $0x6a0] ss:$8 sps:$4 sm:$0xff]  }
 0x16a   :  { %v3621_v3 = vsel %vm3109_vm15, %v2549_v49, %v3365_v60  ;;  %v5685_v4 = vpack.c.bf16 %v3493_v2, %v3493_v2  ;;  %5316 = vmatprep.mubr.msk.bf16.mxu0 %vm1506_vm0, %v6193_v57  ;;  %5380 = vmatprep.mubr.msk.bf16.mxu1 %vm1506_vm0, %v6195_v58  ;;  %vm3110_vm2 = vcmp.ge.f32.partialorder %v2552_v63, 0.0  ;;  %v3366_v7 = vmul.f32 0.1, %v2552_v63  ;;  %v6207_v51 = vld [vmem:[%s8589_s0 + $0x6b4] ss:$8 sps:$4 sm:$0xff]  }
 0x16b   :  { %v5813_v5 = vpack.c.bf16 %v3621_v3, %v3621_v3  ;;  %v3494_v8 = vsel %vm2982_vm1, %v2040_v62, %v3238_v6 }
 0x16c   :  { %4774 = vst.msk [vmem:[%s8591_s3 + $0x68] sm:$0xf] %vm4747_vm5, %v5685_v4  ;;  %v2044_v9 = vpop.f32.mrb[56].mxu0  ;;  %v2556_v10 = vpop.f32.mrb[56].mxu1  ;;  %v5686_v11 = vpack.c.bf16 %v3494_v8, %v3494_v8  ;;  %v3622_v12 = vsel %vm3110_vm2, %v2552_v63, %v3366_v7 }
 0x16d   :  { %4902 = vst.msk [vmem:[%s8591_s3 + $0x268] sm:$0xf] %vm4747_vm5, %v5813_v5  ;;  %v2045_v13 = vadd.f32 %v7215_v47, %v2044_v9  ;;  %v2557_v14 = vadd.f32 %v7215_v47, %v2556_v10  ;;  %v2046_v15 = vpop.f32.mrb[57].mxu0  ;;  %v2558_v16 = vpop.f32.mrb[57].mxu1  ;;  %v5814_v19 = vpack.c.bf16 %v3622_v12, %v3622_v12  ;;  %v6209_v10 = vld [vmem:[%s8589_s0 + $0x2b0] ss:$8 sps:$4 sm:$0xff]  }
 0x16e   :  { %v2047_v20 = vpop.f32.mrb[58].mxu0  ;;  %v2559_v21 = vpop.f32.mrb[58].mxu1  ;;  %4775 = vst.msk [vmem:[%s8591_s3 + $0x6c] sm:$0xf] %vm4747_vm5, %v5686_v11  ;;  %v6210_v11 = vld [vmem:[%s8589_s0 + $0x6b0] ss:$8 sps:$4 sm:$0xff]  }
 0x16f   :  { %vm2983_vm3 = vcmp.ge.f32.partialorder %v2045_v13, 0.0  ;;  %v3239_v24 = vmul.f32 0.1, %v2045_v13  ;;  %vm3111_vm4 = vcmp.ge.f32.partialorder %v2557_v14, 0.0  ;;  %v3367_v25 = vmul.f32 0.1, %v2557_v14 }
 0x170   :  { %4903 = vst.msk [vmem:[%s8591_s3 + $0x26c] sm:$0xf] %vm4747_vm5, %v5814_v19  ;;  %v2048_v26 = vadd.f32 %v7215_v47, %v2047_v20  ;;  %v2560_v27 = vadd.f32 %v7215_v47, %v2559_v21  ;;  %v2049_v28 = vpop.f32.mrb[59].mxu0  ;;  %v2561_v29 = vpop.f32.mrb[59].mxu1  ;;  %v6211_v15 = vld [vmem:[%s8589_s0 + $0x2c4] ss:$8 sps:$4 sm:$0xff]  }
 0x171   :  { %v3495_v30 = vsel %vm2983_vm3, %v2045_v13, %v3239_v24  ;;  %v3623_v31 = vsel %vm3111_vm4, %v2557_v14, %v3367_v25  ;;  %2259 = vmatmul.mubr.bf16.gmra.mrb[164].mxu0 %v6197_v17  ;;  %2771 = vmatmul.mubr.bf16.gmra.mrb[164].mxu1 %v6198_v18  ;;  %v6213_v16 = vld [vmem:[%s8589_s0 + $0x6c4] ss:$8 sps:$4 sm:$0xff]  }
 0x172   :  { %v5687_v32 = vpack.c.bf16 %v3495_v30, %v3495_v30  ;;  %v5815_v33 = vpack.c.bf16 %v3623_v31, %v3623_v31  ;;  %vm2984_vm6 = vcmp.ge.f32.partialorder %v2048_v26, 0.0  ;;  %v3240_v34 = vmul.f32 0.1, %v2048_v26  ;;  %5317 = vmatprep.mubr.msk.bf16.mxu0 %vm1506_vm0, %v6199_v22  ;;  %5381 = vmatprep.mubr.msk.bf16.mxu1 %vm1506_vm0, %v6201_v23 }
 0x173   :  { %vm3112_vm7 = vcmp.ge.f32.partialorder %v2560_v27, 0.0  ;;  %v3368_v35 = vmul.f32 0.1, %v2560_v27 }
 0x174   :  { %4776 = vst.msk [vmem:[%s8591_s3 + $0x70] sm:$0xf] %vm4747_vm5, %v5687_v32  ;;  %4904 = vst.msk [vmem:[%s8591_s3 + $0x270] sm:$0xf] %vm4747_vm5, %v5815_v33  ;;  %v3496_v36 = vsel %vm2984_vm6, %v2048_v26, %v3240_v34  ;;  %v2052_v37 = vpop.f32.mrb[60].mxu0  ;;  %v2564_v38 = vpop.f32.mrb[60].mxu1 }
 0x175   :  { %v5688_v39 = vpack.c.bf16 %v3496_v36, %v3496_v36  ;;  %v3624_v40 = vsel %vm3112_vm7, %v2560_v27, %v3368_v35  ;;  %v2053_v41 = vadd.f32 %v7215_v47, %v2052_v37  ;;  %v2565_v42 = vadd.f32 %v7215_v47, %v2564_v38  ;;  %v2054_v61 = vpop.f32.mrb[61].mxu0  ;;  %v2566_v43 = vpop.f32.mrb[61].mxu1  ;;  %v6215_v38 = vld [vmem:[%s8589_s0 + $0x2c0] ss:$8 sps:$4 sm:$0xff]  }
 0x176   :  { %v5816_v46 = vpack.c.bf16 %v3624_v40, %v3624_v40  ;;  %v2055_v48 = vpop.f32.mrb[62].mxu0  ;;  %v2567_v49 = vpop.f32.mrb[62].mxu1  ;;  %v6217_v61 = vld [vmem:[%s8589_s0 + $0x2d4] ss:$8 sps:$4 sm:$0xff]  }
 0x177   :  { %4777 = vst.msk [vmem:[%s8591_s3 + $0x74] sm:$0xf] %vm4747_vm5, %v5688_v39  ;;  %vm2985_vm8 = vcmp.ge.f32.partialorder %v2053_v41, 0.0  ;;  %v3241_v52 = vmul.f32 0.1, %v2053_v41  ;;  %vm3113_vm9 = vcmp.ge.f32.partialorder %v2565_v42, 0.0  ;;  %v2056_v54 = vadd.f32 %v7215_v47, %v2055_v48 }
 0x178   :  { %v3369_v53 = vmul.f32 0.1, %v2565_v42  ;;  %4905 = vst.msk [vmem:[%s8591_s3 + $0x274] sm:$0xf] %vm4747_vm5, %v5816_v46  ;;  %v2568_v55 = vadd.f32 %v7215_v47, %v2567_v49  ;;  %v2057_v56 = vpop.f32.mrb[63].mxu0  ;;  %v2569_v57 = vpop.f32.mrb[63].mxu1 }
 0x179   :  { %v3497_v58 = vsel %vm2985_vm8, %v2053_v41, %v3241_v52  ;;  %2267 = vmatmul.mubr.bf16.gmra.mrb[168].mxu0 %v6203_v44  ;;  %2779 = vmatmul.mubr.bf16.gmra.mrb[168].mxu1 %v6204_v45  ;;  %vm2986_vm10 = vcmp.ge.f32.partialorder %v2056_v54, 0.0  ;;  %v3242_v63 = vmul.f32 0.1, %v2056_v54  ;;  %v6216_v39 = vld [vmem:[%s8589_s0 + $0x6c0] ss:$8 sps:$4 sm:$0xff]  }
 0x17a   :  { %v3625_v59 = vsel %vm3113_vm9, %v2565_v42, %v3369_v53  ;;  %v5689_v60 = vpack.c.bf16 %v3497_v58, %v3497_v58  ;;  %5318 = vmatprep.mubr.msk.bf16.mxu0 %vm1506_vm0, %v6205_v50  ;;  %5382 = vmatprep.mubr.msk.bf16.mxu1 %vm1506_vm0, %v6207_v51  ;;  %vm3114_vm11 = vcmp.ge.f32.partialorder %v2568_v55, 0.0  ;;  %v3370_v0 = vmul.f32 0.1, %v2568_v55  ;;  %v6219_v43 = vld [vmem:[%s8589_s0 + $0x6d4] ss:$8 sps:$4 sm:$0xff]  }
 0x17b   :  { %v5817_v62 = vpack.c.bf16 %v3625_v59, %v3625_v59  ;;  %v3498_v1 = vsel %vm2986_vm10, %v2056_v54, %v3242_v63 }
 0x17c   :  { %4778 = vst.msk [vmem:[%s8591_s3 + $0x78] sm:$0xf] %vm4747_vm5, %v5689_v60  ;;  %v2060_v2 = vpop.f32.mrb[64].mxu0  ;;  %v2572_v3 = vpop.f32.mrb[64].mxu1  ;;  %v5690_v4 = vpack.c.bf16 %v3498_v1, %v3498_v1  ;;  %v3626_v5 = vsel %vm3114_vm11, %v2568_v55, %v3370_v0 }
 0x17d   :  { %4906 = vst.msk [vmem:[%s8591_s3 + $0x278] sm:$0xf] %vm4747_vm5, %v5817_v62  ;;  %v2061_v6 = vadd.f32 %v7215_v47, %v2060_v2  ;;  %v2573_v7 = vadd.f32 %v7215_v47, %v2572_v3  ;;  %v2062_v8 = vpop.f32.mrb[65].mxu0  ;;  %v2574_v9 = vpop.f32.mrb[65].mxu1  ;;  %v5818_v12 = vpack.c.bf16 %v3626_v5, %v3626_v5  ;;  %v6221_v3 = vld [vmem:[%s8589_s0 + $0x2d0] ss:$8 sps:$4 sm:$0xff]  }
 0x17e   :  { %v2063_v13 = vpop.f32.mrb[66].mxu0  ;;  %v2575_v14 = vpop.f32.mrb[66].mxu1  ;;  %4779 = vst.msk [vmem:[%s8591_s3 + $0x7c] sm:$0xf] %vm4747_vm5, %v5690_v4  ;;  %v6222_v4 = vld [vmem:[%s8589_s0 + $0x6d0] ss:$8 sps:$4 sm:$0xff]  }
 0x17f   :  { %vm2987_vm12 = vcmp.ge.f32.partialorder %v2061_v6, 0.0  ;;  %v3243_v17 = vmul.f32 0.1, %v2061_v6  ;;  %vm3115_vm13 = vcmp.ge.f32.partialorder %v2573_v7, 0.0  ;;  %v3371_v18 = vmul.f32 0.1, %v2573_v7 }
 0x180   :  { %4907 = vst.msk [vmem:[%s8591_s3 + $0x27c] sm:$0xf] %vm4747_vm5, %v5818_v12  ;;  %v2064_v19 = vadd.f32 %v7215_v47, %v2063_v13  ;;  %v2576_v20 = vadd.f32 %v7215_v47, %v2575_v14  ;;  %v2065_v21 = vpop.f32.mrb[67].mxu0  ;;  %v2577_v22 = vpop.f32.mrb[67].mxu1  ;;  %v6223_v8 = vld [vmem:[%s8589_s0 + $0x2e4] ss:$8 sps:$4 sm:$0xff]  }
 0x181   :  { %v3499_v23 = vsel %vm2987_vm12, %v2061_v6, %v3243_v17  ;;  %v3627_v24 = vsel %vm3115_vm13, %v2573_v7, %v3371_v18  ;;  %2275 = vmatmul.mubr.bf16.gmra.mrb[172].mxu0 %v6209_v10  ;;  %2787 = vmatmul.mubr.bf16.gmra.mrb[172].mxu1 %v6210_v11  ;;  %v6225_v9 = vld [vmem:[%s8589_s0 + $0x6e4] ss:$8 sps:$4 sm:$0xff]  }
 0x182   :  { %v5691_v25 = vpack.c.bf16 %v3499_v23, %v3499_v23  ;;  %v5819_v26 = vpack.c.bf16 %v3627_v24, %v3627_v24  ;;  %vm2988_vm14 = vcmp.ge.f32.partialorder %v2064_v19, 0.0  ;;  %v3244_v27 = vmul.f32 0.1, %v2064_v19  ;;  %5319 = vmatprep.mubr.msk.bf16.mxu0 %vm1506_vm0, %v6211_v15  ;;  %5383 = vmatprep.mubr.msk.bf16.mxu1 %vm1506_vm0, %v6213_v16 }
 0x183   :  { %vm3116_vm15 = vcmp.ge.f32.partialorder %v2576_v20, 0.0  ;;  %v3372_v28 = vmul.f32 0.1, %v2576_v20 }
 0x184   :  { %4780 = vst.msk [vmem:[%s8591_s3 + $0x80] sm:$0xf] %vm4747_vm5, %v5691_v25  ;;  %4908 = vst.msk [vmem:[%s8591_s3 + $0x280] sm:$0xf] %vm4747_vm5, %v5819_v26  ;;  %v3500_v29 = vsel %vm2988_vm14, %v2064_v19, %v3244_v27  ;;  %v2068_v30 = vpop.f32.mrb[68].mxu0  ;;  %v2580_v31 = vpop.f32.mrb[68].mxu1 }
 0x185   :  { %v5692_v32 = vpack.c.bf16 %v3500_v29, %v3500_v29  ;;  %v3628_v33 = vsel %vm3116_vm15, %v2576_v20, %v3372_v28  ;;  %v2069_v34 = vadd.f32 %v7215_v47, %v2068_v30  ;;  %v2581_v35 = vadd.f32 %v7215_v47, %v2580_v31  ;;  %v2070_v36 = vpop.f32.mrb[69].mxu0  ;;  %v2582_v37 = vpop.f32.mrb[69].mxu1  ;;  %v6227_v31 = vld [vmem:[%s8589_s0 + $0x2e0] ss:$8 sps:$4 sm:$0xff]  }
 0x186   :  { %v5820_v40 = vpack.c.bf16 %v3628_v33, %v3628_v33  ;;  %v2071_v41 = vpop.f32.mrb[70].mxu0  ;;  %v2583_v42 = vpop.f32.mrb[70].mxu1  ;;  %v6229_v36 = vld [vmem:[%s8589_s0 + $0x2f4] ss:$8 sps:$4 sm:$0xff]  }
 0x187   :  { %4781 = vst.msk [vmem:[%s8591_s3 + $0x84] sm:$0xf] %vm4747_vm5, %v5692_v32  ;;  %vm2989_vm1 = vcmp.ge.f32.partialorder %v2069_v34, 0.0  ;;  %v3245_v44 = vmul.f32 0.1, %v2069_v34  ;;  %vm3117_vm2 = vcmp.ge.f32.partialorder %v2581_v35, 0.0  ;;  %v2072_v46 = vadd.f32 %v7215_v47, %v2071_v41 }
 0x188   :  { %v3373_v45 = vmul.f32 0.1, %v2581_v35  ;;  %4909 = vst.msk [vmem:[%s8591_s3 + $0x284] sm:$0xf] %vm4747_vm5, %v5820_v40  ;;  %v2584_v48 = vadd.f32 %v7215_v47, %v2583_v42  ;;  %v2073_v49 = vpop.f32.mrb[71].mxu0  ;;  %v2585_v50 = vpop.f32.mrb[71].mxu1 }
 0x189   :  { %v3501_v51 = vsel %vm2989_vm1, %v2069_v34, %v3245_v44  ;;  %2283 = vmatmul.mubr.bf16.gmra.mrb[176].mxu0 %v6215_v38  ;;  %2795 = vmatmul.mubr.bf16.gmra.mrb[176].mxu1 %v6216_v39  ;;  %vm2990_vm3 = vcmp.ge.f32.partialorder %v2072_v46, 0.0  ;;  %v3246_v55 = vmul.f32 0.1, %v2072_v46  ;;  %v6228_v32 = vld [vmem:[%s8589_s0 + $0x6e0] ss:$8 sps:$4 sm:$0xff]  }
 0x18a   :  { %v3629_v52 = vsel %vm3117_vm2, %v2581_v35, %v3373_v45  ;;  %v5693_v53 = vpack.c.bf16 %v3501_v51, %v3501_v51  ;;  %5320 = vmatprep.mubr.msk.bf16.mxu0 %vm1506_vm0, %v6217_v61  ;;  %5384 = vmatprep.mubr.msk.bf16.mxu1 %vm1506_vm0, %v6219_v43  ;;  %vm3118_vm4 = vcmp.ge.f32.partialorder %v2584_v48, 0.0  ;;  %v3374_v56 = vmul.f32 0.1, %v2584_v48  ;;  %v6231_v37 = vld [vmem:[%s8589_s0 + $0x6f4] ss:$8 sps:$4 sm:$0xff]  }
 0x18b   :  { %v5821_v54 = vpack.c.bf16 %v3629_v52, %v3629_v52  ;;  %v3502_v57 = vsel %vm2990_vm3, %v2072_v46, %v3246_v55 }
 0x18c   :  { %4782 = vst.msk [vmem:[%s8591_s3 + $0x88] sm:$0xf] %vm4747_vm5, %v5693_v53  ;;  %v2076_v58 = vpop.f32.mrb[72].mxu0  ;;  %v2588_v59 = vpop.f32.mrb[72].mxu1  ;;  %v5694_v60 = vpack.c.bf16 %v3502_v57, %v3502_v57  ;;  %v3630_v62 = vsel %vm3118_vm4, %v2584_v48, %v3374_v56 }
 0x18d   :  { %4910 = vst.msk [vmem:[%s8591_s3 + $0x288] sm:$0xf] %vm4747_vm5, %v5821_v54  ;;  %v2077_v63 = vadd.f32 %v7215_v47, %v2076_v58  ;;  %v2589_v0 = vadd.f32 %v7215_v47, %v2588_v59  ;;  %v2078_v1 = vpop.f32.mrb[73].mxu0  ;;  %v2590_v2 = vpop.f32.mrb[73].mxu1  ;;  %v5822_v5 = vpack.c.bf16 %v3630_v62, %v3630_v62  ;;  %v6233_v59 = vld [vmem:[%s8589_s0 + $0x2f0] ss:$8 sps:$4 sm:$0xff]  }
 0x18e   :  { %v2079_v6 = vpop.f32.mrb[74].mxu0  ;;  %v2591_v7 = vpop.f32.mrb[74].mxu1  ;;  %4783 = vst.msk [vmem:[%s8591_s3 + $0x8c] sm:$0xf] %vm4747_vm5, %v5694_v60  ;;  %v6234_v60 = vld [vmem:[%s8589_s0 + $0x6f0] ss:$8 sps:$4 sm:$0xff]  }
 0x18f   :  { %vm2991_vm6 = vcmp.ge.f32.partialorder %v2077_v63, 0.0  ;;  %v3247_v10 = vmul.f32 0.1, %v2077_v63  ;;  %vm3119_vm7 = vcmp.ge.f32.partialorder %v2589_v0, 0.0  ;;  %v3375_v11 = vmul.f32 0.1, %v2589_v0 }
 0x190   :  { %4911 = vst.msk [vmem:[%s8591_s3 + $0x28c] sm:$0xf] %vm4747_vm5, %v5822_v5  ;;  %v2080_v12 = vadd.f32 %v7215_v47, %v2079_v6  ;;  %v2592_v13 = vadd.f32 %v7215_v47, %v2591_v7  ;;  %v2081_v14 = vpop.f32.mrb[75].mxu0  ;;  %v2593_v15 = vpop.f32.mrb[75].mxu1  ;;  %v6235_v1 = vld [vmem:[%s8589_s0 + $0x304] ss:$8 sps:$4 sm:$0xff]  }
 0x191   :  { %v3503_v16 = vsel %vm2991_vm6, %v2077_v63, %v3247_v10  ;;  %v3631_v17 = vsel %vm3119_vm7, %v2589_v0, %v3375_v11  ;;  %2291 = vmatmul.mubr.bf16.gmra.mrb[180].mxu0 %v6221_v3  ;;  %2803 = vmatmul.mubr.bf16.gmra.mrb[180].mxu1 %v6222_v4  ;;  %v6237_v2 = vld [vmem:[%s8589_s0 + $0x704] ss:$8 sps:$4 sm:$0xff]  }
 0x192   :  { %v5695_v18 = vpack.c.bf16 %v3503_v16, %v3503_v16  ;;  %v5823_v19 = vpack.c.bf16 %v3631_v17, %v3631_v17  ;;  %vm2992_vm8 = vcmp.ge.f32.partialorder %v2080_v12, 0.0  ;;  %v3248_v20 = vmul.f32 0.1, %v2080_v12  ;;  %5321 = vmatprep.mubr.msk.bf16.mxu0 %vm1506_vm0, %v6223_v8  ;;  %5385 = vmatprep.mubr.msk.bf16.mxu1 %vm1506_vm0, %v6225_v9 }
 0x193   :  { %vm3120_vm9 = vcmp.ge.f32.partialorder %v2592_v13, 0.0  ;;  %v3376_v21 = vmul.f32 0.1, %v2592_v13 }
 0x194   :  { %4784 = vst.msk [vmem:[%s8591_s3 + $0x90] sm:$0xf] %vm4747_vm5, %v5695_v18  ;;  %4912 = vst.msk [vmem:[%s8591_s3 + $0x290] sm:$0xf] %vm4747_vm5, %v5823_v19  ;;  %v3504_v22 = vsel %vm2992_vm8, %v2080_v12, %v3248_v20  ;;  %v2084_v23 = vpop.f32.mrb[76].mxu0  ;;  %v2596_v24 = vpop.f32.mrb[76].mxu1 }
 0x195   :  { %v5696_v25 = vpack.c.bf16 %v3504_v22, %v3504_v22  ;;  %v3632_v26 = vsel %vm3120_vm9, %v2592_v13, %v3376_v21  ;;  %v2085_v27 = vadd.f32 %v7215_v47, %v2084_v23  ;;  %v2597_v28 = vadd.f32 %v7215_v47, %v2596_v24  ;;  %v2086_v29 = vpop.f32.mrb[77].mxu0  ;;  %v2598_v30 = vpop.f32.mrb[77].mxu1  ;;  %v6239_v24 = vld [vmem:[%s8589_s0 + $0x300] ss:$8 sps:$4 sm:$0xff]  }
 0x196   :  { %v5824_v33 = vpack.c.bf16 %v3632_v26, %v3632_v26  ;;  %v2087_v34 = vpop.f32.mrb[78].mxu0  ;;  %v2599_v35 = vpop.f32.mrb[78].mxu1  ;;  %v6241_v29 = vld [vmem:[%s8589_s0 + $0x314] ss:$8 sps:$4 sm:$0xff]  }
 0x197   :  { %4785 = vst.msk [vmem:[%s8591_s3 + $0x94] sm:$0xf] %vm4747_vm5, %v5696_v25  ;;  %vm2993_vm10 = vcmp.ge.f32.partialorder %v2085_v27, 0.0  ;;  %v3249_v38 = vmul.f32 0.1, %v2085_v27  ;;  %vm3121_vm11 = vcmp.ge.f32.partialorder %v2597_v28, 0.0  ;;  %v2088_v40 = vadd.f32 %v7215_v47, %v2087_v34 }
 0x198   :  { %v3377_v39 = vmul.f32 0.1, %v2597_v28  ;;  %4913 = vst.msk [vmem:[%s8591_s3 + $0x294] sm:$0xf] %vm4747_vm5, %v5824_v33  ;;  %v2600_v41 = vadd.f32 %v7215_v47, %v2599_v35  ;;  %v2089_v42 = vpop.f32.mrb[79].mxu0  ;;  %v2601_v61 = vpop.f32.mrb[79].mxu1 }
 0x199   :  { %v3505_v43 = vsel %vm2993_vm10, %v2085_v27, %v3249_v38  ;;  %2299 = vmatmul.mubr.bf16.gmra.mrb[184].mxu0 %v6227_v31  ;;  %2811 = vmatmul.mubr.bf16.gmra.mrb[184].mxu1 %v6228_v32  ;;  %vm2994_vm12 = vcmp.ge.f32.partialorder %v2088_v40, 0.0  ;;  %v3250_v48 = vmul.f32 0.1, %v2088_v40  ;;  %v6240_v25 = vld [vmem:[%s8589_s0 + $0x700] ss:$8 sps:$4 sm:$0xff]  }
 0x19a   :  { %v3633_v44 = vsel %vm3121_vm11, %v2597_v28, %v3377_v39  ;;  %v5697_v45 = vpack.c.bf16 %v3505_v43, %v3505_v43  ;;  %5322 = vmatprep.mubr.msk.bf16.mxu0 %vm1506_vm0, %v6229_v36  ;;  %5386 = vmatprep.mubr.msk.bf16.mxu1 %vm1506_vm0, %v6231_v37  ;;  %vm3122_vm13 = vcmp.ge.f32.partialorder %v2600_v41, 0.0  ;;  %v3378_v49 = vmul.f32 0.1, %v2600_v41  ;;  %v6243_v30 = vld [vmem:[%s8589_s0 + $0x714] ss:$8 sps:$4 sm:$0xff]  }
 0x19b   :  { %v5825_v46 = vpack.c.bf16 %v3633_v44, %v3633_v44  ;;  %v3506_v50 = vsel %vm2994_vm12, %v2088_v40, %v3250_v48 }
 0x19c   :  { %4786 = vst.msk [vmem:[%s8591_s3 + $0x98] sm:$0xf] %vm4747_vm5, %v5697_v45  ;;  %v2092_v51 = vpop.f32.mrb[80].mxu0  ;;  %v2604_v52 = vpop.f32.mrb[80].mxu1  ;;  %v5698_v53 = vpack.c.bf16 %v3506_v50, %v3506_v50  ;;  %v3634_v54 = vsel %vm3122_vm13, %v2600_v41, %v3378_v49 }
 0x19d   :  { %4914 = vst.msk [vmem:[%s8591_s3 + $0x298] sm:$0xf] %vm4747_vm5, %v5825_v46  ;;  %v2093_v55 = vadd.f32 %v7215_v47, %v2092_v51  ;;  %v2605_v56 = vadd.f32 %v7215_v47, %v2604_v52  ;;  %v2094_v57 = vpop.f32.mrb[81].mxu0  ;;  %v2606_v58 = vpop.f32.mrb[81].mxu1  ;;  %v5826_v62 = vpack.c.bf16 %v3634_v54, %v3634_v54  ;;  %v6245_v52 = vld [vmem:[%s8589_s0 + $0x310] ss:$8 sps:$4 sm:$0xff]  }
 0x19e   :  { %v2095_v63 = vpop.f32.mrb[82].mxu0  ;;  %v2607_v0 = vpop.f32.mrb[82].mxu1  ;;  %4787 = vst.msk [vmem:[%s8591_s3 + $0x9c] sm:$0xf] %vm4747_vm5, %v5698_v53  ;;  %v6246_v53 = vld [vmem:[%s8589_s0 + $0x710] ss:$8 sps:$4 sm:$0xff]  }
 0x19f   :  { %vm2995_vm14 = vcmp.ge.f32.partialorder %v2093_v55, 0.0  ;;  %v3251_v3 = vmul.f32 0.1, %v2093_v55  ;;  %vm3123_vm15 = vcmp.ge.f32.partialorder %v2605_v56, 0.0  ;;  %v3379_v4 = vmul.f32 0.1, %v2605_v56 }
 0x1a0   :  { %4915 = vst.msk [vmem:[%s8591_s3 + $0x29c] sm:$0xf] %vm4747_vm5, %v5826_v62  ;;  %v2096_v5 = vadd.f32 %v7215_v47, %v2095_v63  ;;  %v2608_v6 = vadd.f32 %v7215_v47, %v2607_v0  ;;  %v2097_v7 = vpop.f32.mrb[83].mxu0  ;;  %v2609_v8 = vpop.f32.mrb[83].mxu1  ;;  %v6247_v57 = vld [vmem:[%s8589_s0 + $0x324] ss:$8 sps:$4 sm:$0xff]  }
 0x1a1   :  { %v3507_v9 = vsel %vm2995_vm14, %v2093_v55, %v3251_v3  ;;  %v3635_v10 = vsel %vm3123_vm15, %v2605_v56, %v3379_v4  ;;  %2307 = vmatmul.mubr.bf16.gmra.mrb[188].mxu0 %v6233_v59  ;;  %2819 = vmatmul.mubr.bf16.gmra.mrb[188].mxu1 %v6234_v60  ;;  %v6249_v58 = vld [vmem:[%s8589_s0 + $0x724] ss:$8 sps:$4 sm:$0xff]  }
 0x1a2   :  { %v5699_v11 = vpack.c.bf16 %v3507_v9, %v3507_v9  ;;  %v5827_v12 = vpack.c.bf16 %v3635_v10, %v3635_v10  ;;  %vm2996_vm1 = vcmp.ge.f32.partialorder %v2096_v5, 0.0  ;;  %v3252_v13 = vmul.f32 0.1, %v2096_v5  ;;  %5323 = vmatprep.mubr.msk.bf16.mxu0 %vm1506_vm0, %v6235_v1  ;;  %5387 = vmatprep.mubr.msk.bf16.mxu1 %vm1506_vm0, %v6237_v2 }
 0x1a3   :  { %vm3124_vm2 = vcmp.ge.f32.partialorder %v2608_v6, 0.0  ;;  %v3380_v14 = vmul.f32 0.1, %v2608_v6 }
 0x1a4   :  { %4788 = vst.msk [vmem:[%s8591_s3 + $0xa0] sm:$0xf] %vm4747_vm5, %v5699_v11  ;;  %4916 = vst.msk [vmem:[%s8591_s3 + $0x2a0] sm:$0xf] %vm4747_vm5, %v5827_v12  ;;  %v3508_v15 = vsel %vm2996_vm1, %v2096_v5, %v3252_v13  ;;  %v2100_v16 = vpop.f32.mrb[84].mxu0  ;;  %v2612_v17 = vpop.f32.mrb[84].mxu1 }
 0x1a5   :  { %v5700_v18 = vpack.c.bf16 %v3508_v15, %v3508_v15  ;;  %v3636_v19 = vsel %vm3124_vm2, %v2608_v6, %v3380_v14  ;;  %v2101_v20 = vadd.f32 %v7215_v47, %v2100_v16  ;;  %v2613_v21 = vadd.f32 %v7215_v47, %v2612_v17  ;;  %v2102_v22 = vpop.f32.mrb[85].mxu0  ;;  %v2614_v23 = vpop.f32.mrb[85].mxu1  ;;  %v6251_v17 = vld [vmem:[%s8589_s0 + $0x320] ss:$8 sps:$4 sm:$0xff]  }
 0x1a6   :  { %v5828_v26 = vpack.c.bf16 %v3636_v19, %v3636_v19  ;;  %v2103_v27 = vpop.f32.mrb[86].mxu0  ;;  %v2615_v28 = vpop.f32.mrb[86].mxu1  ;;  %v6253_v22 = vld [vmem:[%s8589_s0 + $0x334] ss:$8 sps:$4 sm:$0xff]  }
 0x1a7   :  { %4789 = vst.msk [vmem:[%s8591_s3 + $0xa4] sm:$0xf] %vm4747_vm5, %v5700_v18  ;;  %vm2997_vm3 = vcmp.ge.f32.partialorder %v2101_v20, 0.0  ;;  %v3253_v31 = vmul.f32 0.1, %v2101_v20  ;;  %vm3125_vm4 = vcmp.ge.f32.partialorder %v2613_v21, 0.0  ;;  %v2104_v33 = vadd.f32 %v7215_v47, %v2103_v27 }
 0x1a8   :  { %v3381_v32 = vmul.f32 0.1, %v2613_v21  ;;  %4917 = vst.msk [vmem:[%s8591_s3 + $0x2a4] sm:$0xf] %vm4747_vm5, %v5828_v26  ;;  %v2616_v34 = vadd.f32 %v7215_v47, %v2615_v28  ;;  %v2105_v35 = vpop.f32.mrb[87].mxu0  ;;  %v2617_v36 = vpop.f32.mrb[87].mxu1 }
 0x1a9   :  { %v3509_v37 = vsel %vm2997_vm3, %v2101_v20, %v3253_v31  ;;  %2315 = vmatmul.mubr.bf16.gmra.mrb[192].mxu0 %v6239_v24  ;;  %2827 = vmatmul.mubr.bf16.gmra.mrb[192].mxu1 %v6240_v25  ;;  %vm2998_vm6 = vcmp.ge.f32.partialorder %v2104_v33, 0.0  ;;  %v3254_v41 = vmul.f32 0.1, %v2104_v33  ;;  %v6252_v18 = vld [vmem:[%s8589_s0 + $0x720] ss:$8 sps:$4 sm:$0xff]  }
 0x1aa   :  { %v3637_v38 = vsel %vm3125_vm4, %v2613_v21, %v3381_v32  ;;  %v5701_v39 = vpack.c.bf16 %v3509_v37, %v3509_v37  ;;  %5324 = vmatprep.mubr.msk.bf16.mxu0 %vm1506_vm0, %v6241_v29  ;;  %5388 = vmatprep.mubr.msk.bf16.mxu1 %vm1506_vm0, %v6243_v30  ;;  %vm3126_vm7 = vcmp.ge.f32.partialorder %v2616_v34, 0.0  ;;  %v3382_v42 = vmul.f32 0.1, %v2616_v34  ;;  %v6255_v23 = vld [vmem:[%s8589_s0 + $0x734] ss:$8 sps:$4 sm:$0xff]  }
 0x1ab   :  { %v5829_v40 = vpack.c.bf16 %v3637_v38, %v3637_v38  ;;  %v3510_v61 = vsel %vm2998_vm6, %v2104_v33, %v3254_v41 }
 0x1ac   :  { %4790 = vst.msk [vmem:[%s8591_s3 + $0xa8] sm:$0xf] %vm4747_vm5, %v5701_v39  ;;  %v2108_v43 = vpop.f32.mrb[88].mxu0  ;;  %v2620_v44 = vpop.f32.mrb[88].mxu1  ;;  %v5702_v45 = vpack.c.bf16 %v3510_v61, %v3510_v61  ;;  %v3638_v46 = vsel %vm3126_vm7, %v2616_v34, %v3382_v42 }
 0x1ad   :  { %4918 = vst.msk [vmem:[%s8591_s3 + $0x2a8] sm:$0xf] %vm4747_vm5, %v5829_v40  ;;  %v2109_v48 = vadd.f32 %v7215_v47, %v2108_v43  ;;  %v2621_v49 = vadd.f32 %v7215_v47, %v2620_v44  ;;  %v2110_v50 = vpop.f32.mrb[89].mxu0  ;;  %v2622_v51 = vpop.f32.mrb[89].mxu1  ;;  %v5830_v54 = vpack.c.bf16 %v3638_v46, %v3638_v46  ;;  %v6257_v44 = vld [vmem:[%s8589_s0 + $0x330] ss:$8 sps:$4 sm:$0xff]  }
 0x1ae   :  { %v2111_v55 = vpop.f32.mrb[90].mxu0  ;;  %v2623_v56 = vpop.f32.mrb[90].mxu1  ;;  %4791 = vst.msk [vmem:[%s8591_s3 + $0xac] sm:$0xf] %vm4747_vm5, %v5702_v45  ;;  %v6258_v45 = vld [vmem:[%s8589_s0 + $0x730] ss:$8 sps:$4 sm:$0xff]  }
 0x1af   :  { %vm2999_vm8 = vcmp.ge.f32.partialorder %v2109_v48, 0.0  ;;  %v3255_v59 = vmul.f32 0.1, %v2109_v48  ;;  %vm3127_vm9 = vcmp.ge.f32.partialorder %v2621_v49, 0.0  ;;  %v3383_v60 = vmul.f32 0.1, %v2621_v49 }
 0x1b0   :  { %4919 = vst.msk [vmem:[%s8591_s3 + $0x2ac] sm:$0xf] %vm4747_vm5, %v5830_v54  ;;  %v2112_v62 = vadd.f32 %v7215_v47, %v2111_v55  ;;  %v2624_v63 = vadd.f32 %v7215_v47, %v2623_v56  ;;  %v2113_v0 = vpop.f32.mrb[91].mxu0  ;;  %v2625_v1 = vpop.f32.mrb[91].mxu1  ;;  %v6259_v50 = vld [vmem:[%s8589_s0 + $0x344] ss:$8 sps:$4 sm:$0xff]  }
 0x1b1   :  { %v3511_v2 = vsel %vm2999_vm8, %v2109_v48, %v3255_v59  ;;  %v3639_v3 = vsel %vm3127_vm9, %v2621_v49, %v3383_v60  ;;  %2323 = vmatmul.mubr.bf16.gmra.mrb[196].mxu0 %v6245_v52  ;;  %2835 = vmatmul.mubr.bf16.gmra.mrb[196].mxu1 %v6246_v53  ;;  %v6261_v51 = vld [vmem:[%s8589_s0 + $0x744] ss:$8 sps:$4 sm:$0xff]  }
 0x1b2   :  { %v5703_v4 = vpack.c.bf16 %v3511_v2, %v3511_v2  ;;  %v5831_v5 = vpack.c.bf16 %v3639_v3, %v3639_v3  ;;  %vm3000_vm10 = vcmp.ge.f32.partialorder %v2112_v62, 0.0  ;;  %v3256_v6 = vmul.f32 0.1, %v2112_v62  ;;  %5325 = vmatprep.mubr.msk.bf16.mxu0 %vm1506_vm0, %v6247_v57  ;;  %5389 = vmatprep.mubr.msk.bf16.mxu1 %vm1506_vm0, %v6249_v58 }
 0x1b3   :  { %vm3128_vm11 = vcmp.ge.f32.partialorder %v2624_v63, 0.0  ;;  %v3384_v7 = vmul.f32 0.1, %v2624_v63 }
 0x1b4   :  { %4792 = vst.msk [vmem:[%s8591_s3 + $0xb0] sm:$0xf] %vm4747_vm5, %v5703_v4  ;;  %4920 = vst.msk [vmem:[%s8591_s3 + $0x2b0] sm:$0xf] %vm4747_vm5, %v5831_v5  ;;  %v3512_v8 = vsel %vm3000_vm10, %v2112_v62, %v3256_v6  ;;  %v2116_v9 = vpop.f32.mrb[92].mxu0  ;;  %v2628_v10 = vpop.f32.mrb[92].mxu1 }
 0x1b5   :  { %v5704_v11 = vpack.c.bf16 %v3512_v8, %v3512_v8  ;;  %v3640_v12 = vsel %vm3128_vm11, %v2624_v63, %v3384_v7  ;;  %v2117_v13 = vadd.f32 %v7215_v47, %v2116_v9  ;;  %v2629_v14 = vadd.f32 %v7215_v47, %v2628_v10  ;;  %v2118_v15 = vpop.f32.mrb[93].mxu0  ;;  %v2630_v16 = vpop.f32.mrb[93].mxu1  ;;  %v6263_v10 = vld [vmem:[%s8589_s0 + $0x340] ss:$8 sps:$4 sm:$0xff]  }
 0x1b6   :  { %v5832_v19 = vpack.c.bf16 %v3640_v12, %v3640_v12  ;;  %v2119_v20 = vpop.f32.mrb[94].mxu0  ;;  %v2631_v21 = vpop.f32.mrb[94].mxu1  ;;  %v6265_v15 = vld [vmem:[%s8589_s0 + $0x354] ss:$8 sps:$4 sm:$0xff]  }
 0x1b7   :  { %4793 = vst.msk [vmem:[%s8591_s3 + $0xb4] sm:$0xf] %vm4747_vm5, %v5704_v11  ;;  %vm3001_vm12 = vcmp.ge.f32.partialorder %v2117_v13, 0.0  ;;  %v3257_v24 = vmul.f32 0.1, %v2117_v13  ;;  %vm3129_vm13 = vcmp.ge.f32.partialorder %v2629_v14, 0.0  ;;  %v2120_v26 = vadd.f32 %v7215_v47, %v2119_v20 }
 0x1b8   :  { %v3385_v25 = vmul.f32 0.1, %v2629_v14  ;;  %4921 = vst.msk [vmem:[%s8591_s3 + $0x2b4] sm:$0xf] %vm4747_vm5, %v5832_v19  ;;  %v2632_v27 = vadd.f32 %v7215_v47, %v2631_v21  ;;  %v2121_v28 = vpop.f32.mrb[95].mxu0  ;;  %v2633_v29 = vpop.f32.mrb[95].mxu1 }
 0x1b9   :  { %v3513_v30 = vsel %vm3001_vm12, %v2117_v13, %v3257_v24  ;;  %2331 = vmatmul.mubr.bf16.gmra.mrb[200].mxu0 %v6251_v17  ;;  %2843 = vmatmul.mubr.bf16.gmra.mrb[200].mxu1 %v6252_v18  ;;  %vm3002_vm14 = vcmp.ge.f32.partialorder %v2120_v26, 0.0  ;;  %v3258_v34 = vmul.f32 0.1, %v2120_v26  ;;  %v6264_v11 = vld [vmem:[%s8589_s0 + $0x740] ss:$8 sps:$4 sm:$0xff]  }
 0x1ba   :  { %v3641_v31 = vsel %vm3129_vm13, %v2629_v14, %v3385_v25  ;;  %v5705_v32 = vpack.c.bf16 %v3513_v30, %v3513_v30  ;;  %5326 = vmatprep.mubr.msk.bf16.mxu0 %vm1506_vm0, %v6253_v22  ;;  %5390 = vmatprep.mubr.msk.bf16.mxu1 %vm1506_vm0, %v6255_v23  ;;  %vm3130_vm15 = vcmp.ge.f32.partialorder %v2632_v27, 0.0  ;;  %v3386_v35 = vmul.f32 0.1, %v2632_v27  ;;  %v6267_v16 = vld [vmem:[%s8589_s0 + $0x754] ss:$8 sps:$4 sm:$0xff]  }
 0x1bb   :  { %v5833_v33 = vpack.c.bf16 %v3641_v31, %v3641_v31  ;;  %v3514_v36 = vsel %vm3002_vm14, %v2120_v26, %v3258_v34 }
 0x1bc   :  { %4794 = vst.msk [vmem:[%s8591_s3 + $0xb8] sm:$0xf] %vm4747_vm5, %v5705_v32  ;;  %v2124_v37 = vpop.f32.mrb[96].mxu0  ;;  %v2636_v38 = vpop.f32.mrb[96].mxu1  ;;  %v5706_v39 = vpack.c.bf16 %v3514_v36, %v3514_v36  ;;  %v3642_v40 = vsel %vm3130_vm15, %v2632_v27, %v3386_v35 }
 0x1bd   :  { %4922 = vst.msk [vmem:[%s8591_s3 + $0x2b8] sm:$0xf] %vm4747_vm5, %v5833_v33  ;;  %v2125_v41 = vadd.f32 %v7215_v47, %v2124_v37  ;;  %v2637_v42 = vadd.f32 %v7215_v47, %v2636_v38  ;;  %v2126_v61 = vpop.f32.mrb[97].mxu0  ;;  %v2638_v43 = vpop.f32.mrb[97].mxu1  ;;  %v5834_v46 = vpack.c.bf16 %v3642_v40, %v3642_v40  ;;  %v7662_v33 = vld [vmem:[%s8590_s2] ss:$0 sm:$0xff] }
 0x1be   :  { %v2127_v48 = vpop.f32.mrb[98].mxu0  ;;  %v2639_v49 = vpop.f32.mrb[98].mxu1  ;;  %4795 = vst.msk [vmem:[%s8591_s3 + $0xbc] sm:$0xf] %vm4747_vm5, %v5706_v39  ;;  %v6269_v38 = vld [vmem:[%s8589_s0 + $0x350] ss:$8 sps:$4 sm:$0xff]  }
 0x1bf   :  { %vm3003_vm1 = vcmp.ge.f32.partialorder %v2125_v41, 0.0  ;;  %v3259_v52 = vmul.f32 0.1, %v2125_v41  ;;  %vm3131_vm2 = vcmp.ge.f32.partialorder %v2637_v42, 0.0  ;;  %v3387_v53 = vmul.f32 0.1, %v2637_v42 }
 0x1c0   :  { %4923 = vst.msk [vmem:[%s8591_s3 + $0x2bc] sm:$0xf] %vm4747_vm5, %v5834_v46  ;;  %v2128_v54 = vadd.f32 %v7215_v47, %v2127_v48  ;;  %v2640_v55 = vadd.f32 %v7215_v47, %v2639_v49  ;;  %v2129_v56 = vpop.f32.mrb[99].mxu0  ;;  %v2641_v57 = vpop.f32.mrb[99].mxu1  ;;  %v6270_v39 = vld [vmem:[%s8589_s0 + $0x750] ss:$8 sps:$4 sm:$0xff]  }
 0x1c1   :  { %v3515_v58 = vsel %vm3003_vm1, %v2125_v41, %v3259_v52  ;;  %v3643_v59 = vsel %vm3131_vm2, %v2637_v42, %v3387_v53  ;;  %2339 = vmatmul.mubr.bf16.gmra.mrb[204].mxu0 %v6257_v44  ;;  %2851 = vmatmul.mubr.bf16.gmra.mrb[204].mxu1 %v6258_v45  ;;  %v6271_v61 = vld [vmem:[%s8589_s0 + $0x364] ss:$8 sps:$4 sm:$0xff]  }
 0x1c2   :  { %v5707_v60 = vpack.c.bf16 %v3515_v58, %v3515_v58  ;;  %v5835_v62 = vpack.c.bf16 %v3643_v59, %v3643_v59  ;;  %vm3004_vm3 = vcmp.ge.f32.partialorder %v2128_v54, 0.0  ;;  %v3260_v63 = vmul.f32 0.1, %v2128_v54  ;;  %5327 = vmatprep.mubr.msk.bf16.mxu0 %vm1506_vm0, %v6259_v50  ;;  %5391 = vmatprep.mubr.msk.bf16.mxu1 %vm1506_vm0, %v6261_v51  ;;  %v6273_v43 = vld [vmem:[%s8589_s0 + $0x764] ss:$8 sps:$4 sm:$0xff]  }
 0x1c3   :  { %vm3132_vm4 = vcmp.ge.f32.partialorder %v2640_v55, 0.0  ;;  %v3388_v0 = vmul.f32 0.1, %v2640_v55 }
 0x1c4   :  { %4796 = vst.msk [vmem:[%s8591_s3 + $0xc0] sm:$0xf] %vm4747_vm5, %v5707_v60  ;;  %4924 = vst.msk [vmem:[%s8591_s3 + $0x2c0] sm:$0xf] %vm4747_vm5, %v5835_v62  ;;  %v3516_v1 = vsel %vm3004_vm3, %v2128_v54, %v3260_v63  ;;  %v2132_v2 = vpop.f32.mrb[100].mxu0  ;;  %v2644_v3 = vpop.f32.mrb[100].mxu1 }
 0x1c5   :  { %v5708_v4 = vpack.c.bf16 %v3516_v1, %v3516_v1  ;;  %v3644_v5 = vsel %vm3132_vm4, %v2640_v55, %v3388_v0  ;;  %v2133_v6 = vadd.f32 %v7215_v47, %v2132_v2  ;;  %v2645_v7 = vadd.f32 %v7215_v47, %v2644_v3  ;;  %v2134_v8 = vpop.f32.mrb[101].mxu0  ;;  %v2646_v9 = vpop.f32.mrb[101].mxu1  ;;  %v6275_v3 = vld [vmem:[%s8589_s0 + $0x360] ss:$8 sps:$4 sm:$0xff]  }
 0x1c6   :  { %v5836_v12 = vpack.c.bf16 %v3644_v5, %v3644_v5  ;;  %v2135_v13 = vpop.f32.mrb[102].mxu0  ;;  %v2647_v14 = vpop.f32.mrb[102].mxu1  ;;  %v6277_v8 = vld [vmem:[%s8589_s0 + $0x374] ss:$8 sps:$4 sm:$0xff]  }
 0x1c7   :  { %4797 = vst.msk [vmem:[%s8591_s3 + $0xc4] sm:$0xf] %vm4747_vm5, %v5708_v4  ;;  %vm3005_vm6 = vcmp.ge.f32.partialorder %v2133_v6, 0.0  ;;  %v3261_v17 = vmul.f32 0.1, %v2133_v6  ;;  %vm3133_vm7 = vcmp.ge.f32.partialorder %v2645_v7, 0.0  ;;  %v2136_v19 = vadd.f32 %v7215_v47, %v2135_v13 }
 0x1c8   :  { %v3389_v18 = vmul.f32 0.1, %v2645_v7  ;;  %4925 = vst.msk [vmem:[%s8591_s3 + $0x2c4] sm:$0xf] %vm4747_vm5, %v5836_v12  ;;  %v2648_v20 = vadd.f32 %v7215_v47, %v2647_v14  ;;  %v2137_v21 = vpop.f32.mrb[103].mxu0  ;;  %v2649_v22 = vpop.f32.mrb[103].mxu1 }
 0x1c9   :  { %v3517_v23 = vsel %vm3005_vm6, %v2133_v6, %v3261_v17  ;;  %2347 = vmatmul.mubr.bf16.gmra.mrb[208].mxu0 %v6263_v10  ;;  %2859 = vmatmul.mubr.bf16.gmra.mrb[208].mxu1 %v6264_v11  ;;  %vm3006_vm8 = vcmp.ge.f32.partialorder %v2136_v19, 0.0  ;;  %v3262_v27 = vmul.f32 0.1, %v2136_v19  ;;  %v6276_v4 = vld [vmem:[%s8589_s0 + $0x760] ss:$8 sps:$4 sm:$0xff]  }
 0x1ca   :  { %v3645_v24 = vsel %vm3133_vm7, %v2645_v7, %v3389_v18  ;;  %v5709_v25 = vpack.c.bf16 %v3517_v23, %v3517_v23  ;;  %5328 = vmatprep.mubr.msk.bf16.mxu0 %vm1506_vm0, %v6265_v15  ;;  %5392 = vmatprep.mubr.msk.bf16.mxu1 %vm1506_vm0, %v6267_v16  ;;  %vm3134_vm9 = vcmp.ge.f32.partialorder %v2648_v20, 0.0  ;;  %v3390_v28 = vmul.f32 0.1, %v2648_v20  ;;  %v6279_v9 = vld [vmem:[%s8589_s0 + $0x774] ss:$8 sps:$4 sm:$0xff]  }
 0x1cb   :  { %v5837_v26 = vpack.c.bf16 %v3645_v24, %v3645_v24  ;;  %v3518_v47 = vsel %vm3006_vm8, %v2136_v19, %v3262_v27 }
 0x1cc   :  { %4798 = vst.msk [vmem:[%s8591_s3 + $0xc8] sm:$0xf] %vm4747_vm5, %v5709_v25  ;;  %v2140_v29 = vpop.f32.mrb[104].mxu0  ;;  %v2652_v30 = vpop.f32.mrb[104].mxu1  ;;  %v5710_v31 = vpack.c.bf16 %v3518_v47, %v3518_v47  ;;  %v3646_v32 = vsel %vm3134_vm9, %v2648_v20, %v3390_v28 }
 0x1cd   :  { %4926 = vst.msk [vmem:[%s8591_s3 + $0x2c8] sm:$0xf] %vm4747_vm5, %v5837_v26  ;;  %v2141_v34 = vadd.f32 %v7662_v33, %v2140_v29  ;;  %v2653_v35 = vadd.f32 %v7662_v33, %v2652_v30  ;;  %v2142_v36 = vpop.f32.mrb[105].mxu0  ;;  %v2654_v37 = vpop.f32.mrb[105].mxu1  ;;  %v5838_v40 = vpack.c.bf16 %v3646_v32, %v3646_v32  ;;  %v6281_v30 = vld [vmem:[%s8589_s0 + $0x370] ss:$8 sps:$4 sm:$0xff]  }
 0x1ce   :  { %v2143_v41 = vpop.f32.mrb[106].mxu0  ;;  %v2655_v42 = vpop.f32.mrb[106].mxu1  ;;  %4799 = vst.msk [vmem:[%s8591_s3 + $0xcc] sm:$0xf] %vm4747_vm5, %v5710_v31  ;;  %v6282_v31 = vld [vmem:[%s8589_s0 + $0x770] ss:$8 sps:$4 sm:$0xff]  }
 0x1cf   :  { %vm3007_vm10 = vcmp.ge.f32.partialorder %v2141_v34, 0.0  ;;  %v3263_v44 = vmul.f32 0.1, %v2141_v34  ;;  %vm3135_vm11 = vcmp.ge.f32.partialorder %v2653_v35, 0.0  ;;  %v3391_v45 = vmul.f32 0.1, %v2653_v35 }
 0x1d0   :  { %4927 = vst.msk [vmem:[%s8591_s3 + $0x2cc] sm:$0xf] %vm4747_vm5, %v5838_v40  ;;  %v2144_v46 = vadd.f32 %v7662_v33, %v2143_v41  ;;  %v2656_v48 = vadd.f32 %v7662_v33, %v2655_v42  ;;  %v2145_v49 = vpop.f32.mrb[107].mxu0  ;;  %v2657_v50 = vpop.f32.mrb[107].mxu1  ;;  %v6283_v36 = vld [vmem:[%s8589_s0 + $0x384] ss:$8 sps:$4 sm:$0xff]  }
 0x1d1   :  { %v3519_v51 = vsel %vm3007_vm10, %v2141_v34, %v3263_v44  ;;  %v3647_v52 = vsel %vm3135_vm11, %v2653_v35, %v3391_v45  ;;  %2355 = vmatmul.mubr.bf16.gmra.mrb[212].mxu0 %v6269_v38  ;;  %2867 = vmatmul.mubr.bf16.gmra.mrb[212].mxu1 %v6270_v39  ;;  %v6285_v37 = vld [vmem:[%s8589_s0 + $0x784] ss:$8 sps:$4 sm:$0xff]  }
 0x1d2   :  { %v5711_v53 = vpack.c.bf16 %v3519_v51, %v3519_v51  ;;  %v5839_v54 = vpack.c.bf16 %v3647_v52, %v3647_v52  ;;  %vm3008_vm12 = vcmp.ge.f32.partialorder %v2144_v46, 0.0  ;;  %v3264_v55 = vmul.f32 0.1, %v2144_v46  ;;  %5329 = vmatprep.mubr.msk.bf16.mxu0 %vm1506_vm0, %v6271_v61  ;;  %5393 = vmatprep.mubr.msk.bf16.mxu1 %vm1506_vm0, %v6273_v43 }
 0x1d3   :  { %vm3136_vm13 = vcmp.ge.f32.partialorder %v2656_v48, 0.0  ;;  %v3392_v56 = vmul.f32 0.1, %v2656_v48 }
 0x1d4   :  { %4800 = vst.msk [vmem:[%s8591_s3 + $0xd0] sm:$0xf] %vm4747_vm5, %v5711_v53  ;;  %4928 = vst.msk [vmem:[%s8591_s3 + $0x2d0] sm:$0xf] %vm4747_vm5, %v5839_v54  ;;  %v3520_v57 = vsel %vm3008_vm12, %v2144_v46, %v3264_v55  ;;  %v2148_v58 = vpop.f32.mrb[108].mxu0  ;;  %v2660_v59 = vpop.f32.mrb[108].mxu1 }
 0x1d5   :  { %v5712_v60 = vpack.c.bf16 %v3520_v57, %v3520_v57  ;;  %v3648_v62 = vsel %vm3136_vm13, %v2656_v48, %v3392_v56  ;;  %v2149_v63 = vadd.f32 %v7662_v33, %v2148_v58  ;;  %v2661_v0 = vadd.f32 %v7662_v33, %v2660_v59  ;;  %v2150_v1 = vpop.f32.mrb[109].mxu0  ;;  %v2662_v2 = vpop.f32.mrb[109].mxu1  ;;  %v6287_v59 = vld [vmem:[%s8589_s0 + $0x380] ss:$8 sps:$4 sm:$0xff]  }
 0x1d6   :  { %v5840_v5 = vpack.c.bf16 %v3648_v62, %v3648_v62  ;;  %v2151_v6 = vpop.f32.mrb[110].mxu0  ;;  %v2663_v7 = vpop.f32.mrb[110].mxu1  ;;  %v6289_v1 = vld [vmem:[%s8589_s0 + $0x394] ss:$8 sps:$4 sm:$0xff]  }
 0x1d7   :  { %4801 = vst.msk [vmem:[%s8591_s3 + $0xd4] sm:$0xf] %vm4747_vm5, %v5712_v60  ;;  %vm3009_vm14 = vcmp.ge.f32.partialorder %v2149_v63, 0.0  ;;  %v3265_v10 = vmul.f32 0.1, %v2149_v63  ;;  %vm3137_vm15 = vcmp.ge.f32.partialorder %v2661_v0, 0.0  ;;  %v2152_v12 = vadd.f32 %v7662_v33, %v2151_v6 }
 0x1d8   :  { %v3393_v11 = vmul.f32 0.1, %v2661_v0  ;;  %4929 = vst.msk [vmem:[%s8591_s3 + $0x2d4] sm:$0xf] %vm4747_vm5, %v5840_v5  ;;  %v2664_v13 = vadd.f32 %v7662_v33, %v2663_v7  ;;  %v2153_v14 = vpop.f32.mrb[111].mxu0  ;;  %v2665_v15 = vpop.f32.mrb[111].mxu1 }
 0x1d9   :  { %v3521_v16 = vsel %vm3009_vm14, %v2149_v63, %v3265_v10  ;;  %2363 = vmatmul.mubr.bf16.gmra.mrb[216].mxu0 %v6275_v3  ;;  %2875 = vmatmul.mubr.bf16.gmra.mrb[216].mxu1 %v6276_v4  ;;  %vm3010_vm1 = vcmp.ge.f32.partialorder %v2152_v12, 0.0  ;;  %v3266_v20 = vmul.f32 0.1, %v2152_v12  ;;  %v6288_v60 = vld [vmem:[%s8589_s0 + $0x780] ss:$8 sps:$4 sm:$0xff]  }
 0x1da   :  { %v3649_v17 = vsel %vm3137_vm15, %v2661_v0, %v3393_v11  ;;  %v5713_v18 = vpack.c.bf16 %v3521_v16, %v3521_v16  ;;  %5330 = vmatprep.mubr.msk.bf16.mxu0 %vm1506_vm0, %v6277_v8  ;;  %5394 = vmatprep.mubr.msk.bf16.mxu1 %vm1506_vm0, %v6279_v9  ;;  %vm3138_vm2 = vcmp.ge.f32.partialorder %v2664_v13, 0.0  ;;  %v3394_v21 = vmul.f32 0.1, %v2664_v13  ;;  %v6291_v2 = vld [vmem:[%s8589_s0 + $0x794] ss:$8 sps:$4 sm:$0xff]  }
 0x1db   :  { %v5841_v19 = vpack.c.bf16 %v3649_v17, %v3649_v17  ;;  %v3522_v22 = vsel %vm3010_vm1, %v2152_v12, %v3266_v20 }
 0x1dc   :  { %4802 = vst.msk [vmem:[%s8591_s3 + $0xd8] sm:$0xf] %vm4747_vm5, %v5713_v18  ;;  %v2156_v23 = vpop.f32.mrb[112].mxu0  ;;  %v2668_v24 = vpop.f32.mrb[112].mxu1  ;;  %v5714_v25 = vpack.c.bf16 %v3522_v22, %v3522_v22  ;;  %v3650_v26 = vsel %vm3138_vm2, %v2664_v13, %v3394_v21 }
 0x1dd   :  { %4930 = vst.msk [vmem:[%s8591_s3 + $0x2d8] sm:$0xf] %vm4747_vm5, %v5841_v19  ;;  %v2157_v27 = vadd.f32 %v7662_v33, %v2156_v23  ;;  %v2669_v28 = vadd.f32 %v7662_v33, %v2668_v24  ;;  %v2158_v47 = vpop.f32.mrb[113].mxu0  ;;  %v2670_v29 = vpop.f32.mrb[113].mxu1  ;;  %v5842_v32 = vpack.c.bf16 %v3650_v26, %v3650_v26  ;;  %v6293_v24 = vld [vmem:[%s8589_s0 + $0x390] ss:$8 sps:$4 sm:$0xff]  }
 0x1de   :  { %v2159_v34 = vpop.f32.mrb[114].mxu0  ;;  %v2671_v35 = vpop.f32.mrb[114].mxu1  ;;  %4803 = vst.msk [vmem:[%s8591_s3 + $0xdc] sm:$0xf] %vm4747_vm5, %v5714_v25  ;;  %v6294_v25 = vld [vmem:[%s8589_s0 + $0x790] ss:$8 sps:$4 sm:$0xff]  }
 0x1df   :  { %vm3011_vm3 = vcmp.ge.f32.partialorder %v2157_v27, 0.0  ;;  %v3267_v38 = vmul.f32 0.1, %v2157_v27  ;;  %vm3139_vm4 = vcmp.ge.f32.partialorder %v2669_v28, 0.0  ;;  %v3395_v39 = vmul.f32 0.1, %v2669_v28 }
 0x1e0   :  { %4931 = vst.msk [vmem:[%s8591_s3 + $0x2dc] sm:$0xf] %vm4747_vm5, %v5842_v32  ;;  %v2160_v40 = vadd.f32 %v7662_v33, %v2159_v34  ;;  %v2672_v41 = vadd.f32 %v7662_v33, %v2671_v35  ;;  %v2161_v42 = vpop.f32.mrb[115].mxu0  ;;  %v2673_v61 = vpop.f32.mrb[115].mxu1  ;;  %v6295_v47 = vld [vmem:[%s8589_s0 + $0x3a4] ss:$8 sps:$4 sm:$0xff]  }
 0x1e1   :  { %v3523_v43 = vsel %vm3011_vm3, %v2157_v27, %v3267_v38  ;;  %v3651_v44 = vsel %vm3139_vm4, %v2669_v28, %v3395_v39  ;;  %2371 = vmatmul.mubr.bf16.gmra.mrb[220].mxu0 %v6281_v30  ;;  %2883 = vmatmul.mubr.bf16.gmra.mrb[220].mxu1 %v6282_v31  ;;  %v6297_v29 = vld [vmem:[%s8589_s0 + $0x7a4] ss:$8 sps:$4 sm:$0xff]  }
 0x1e2   :  { %v5715_v45 = vpack.c.bf16 %v3523_v43, %v3523_v43  ;;  %v5843_v46 = vpack.c.bf16 %v3651_v44, %v3651_v44  ;;  %vm3012_vm6 = vcmp.ge.f32.partialorder %v2160_v40, 0.0  ;;  %v3268_v48 = vmul.f32 0.1, %v2160_v40  ;;  %5331 = vmatprep.mubr.msk.bf16.mxu0 %vm1506_vm0, %v6283_v36  ;;  %5395 = vmatprep.mubr.msk.bf16.mxu1 %vm1506_vm0, %v6285_v37 }
 0x1e3   :  { %vm3140_vm7 = vcmp.ge.f32.partialorder %v2672_v41, 0.0  ;;  %v3396_v49 = vmul.f32 0.1, %v2672_v41 }
 0x1e4   :  { %4804 = vst.msk [vmem:[%s8591_s3 + $0xe0] sm:$0xf] %vm4747_vm5, %v5715_v45  ;;  %4932 = vst.msk [vmem:[%s8591_s3 + $0x2e0] sm:$0xf] %vm4747_vm5, %v5843_v46  ;;  %v3524_v50 = vsel %vm3012_vm6, %v2160_v40, %v3268_v48  ;;  %v2164_v51 = vpop.f32.mrb[116].mxu0  ;;  %v2676_v52 = vpop.f32.mrb[116].mxu1 }
 0x1e5   :  { %v5716_v53 = vpack.c.bf16 %v3524_v50, %v3524_v50  ;;  %v3652_v54 = vsel %vm3140_vm7, %v2672_v41, %v3396_v49  ;;  %v2165_v55 = vadd.f32 %v7662_v33, %v2164_v51  ;;  %v2677_v56 = vadd.f32 %v7662_v33, %v2676_v52  ;;  %v2166_v57 = vpop.f32.mrb[117].mxu0  ;;  %v2678_v58 = vpop.f32.mrb[117].mxu1  ;;  %v6299_v52 = vld [vmem:[%s8589_s0 + $0x3a0] ss:$8 sps:$4 sm:$0xff]  }
 0x1e6   :  { %v5844_v62 = vpack.c.bf16 %v3652_v54, %v3652_v54  ;;  %v2167_v63 = vpop.f32.mrb[118].mxu0  ;;  %v2679_v0 = vpop.f32.mrb[118].mxu1  ;;  %v6301_v57 = vld [vmem:[%s8589_s0 + $0x3b4] ss:$8 sps:$4 sm:$0xff]  }
 0x1e7   :  { %4805 = vst.msk [vmem:[%s8591_s3 + $0xe4] sm:$0xf] %vm4747_vm5, %v5716_v53  ;;  %vm3013_vm8 = vcmp.ge.f32.partialorder %v2165_v55, 0.0  ;;  %v3269_v3 = vmul.f32 0.1, %v2165_v55  ;;  %vm3141_vm9 = vcmp.ge.f32.partialorder %v2677_v56, 0.0  ;;  %v2168_v5 = vadd.f32 %v7662_v33, %v2167_v63 }
 0x1e8   :  { %v3397_v4 = vmul.f32 0.1, %v2677_v56  ;;  %4933 = vst.msk [vmem:[%s8591_s3 + $0x2e4] sm:$0xf] %vm4747_vm5, %v5844_v62  ;;  %v2680_v6 = vadd.f32 %v7662_v33, %v2679_v0  ;;  %v2169_v7 = vpop.f32.mrb[119].mxu0  ;;  %v2681_v8 = vpop.f32.mrb[119].mxu1 }
 0x1e9   :  { %v3525_v9 = vsel %vm3013_vm8, %v2165_v55, %v3269_v3  ;;  %2379 = vmatmul.mubr.bf16.gmra.mrb[224].mxu0 %v6287_v59  ;;  %2891 = vmatmul.mubr.bf16.gmra.mrb[224].mxu1 %v6288_v60  ;;  %vm3014_vm10 = vcmp.ge.f32.partialorder %v2168_v5, 0.0  ;;  %v3270_v13 = vmul.f32 0.1, %v2168_v5  ;;  %v6300_v53 = vld [vmem:[%s8589_s0 + $0x7a0] ss:$8 sps:$4 sm:$0xff]  }
 0x1ea   :  { %v3653_v10 = vsel %vm3141_vm9, %v2677_v56, %v3397_v4  ;;  %v5717_v11 = vpack.c.bf16 %v3525_v9, %v3525_v9  ;;  %5332 = vmatprep.mubr.msk.bf16.mxu0 %vm1506_vm0, %v6289_v1  ;;  %5396 = vmatprep.mubr.msk.bf16.mxu1 %vm1506_vm0, %v6291_v2  ;;  %vm3142_vm11 = vcmp.ge.f32.partialorder %v2680_v6, 0.0  ;;  %v3398_v14 = vmul.f32 0.1, %v2680_v6  ;;  %v6303_v58 = vld [vmem:[%s8589_s0 + $0x7b4] ss:$8 sps:$4 sm:$0xff]  }
 0x1eb   :  { %v5845_v12 = vpack.c.bf16 %v3653_v10, %v3653_v10  ;;  %v3526_v15 = vsel %vm3014_vm10, %v2168_v5, %v3270_v13 }
 0x1ec   :  { %4806 = vst.msk [vmem:[%s8591_s3 + $0xe8] sm:$0xf] %vm4747_vm5, %v5717_v11  ;;  %v2172_v16 = vpop.f32.mrb[120].mxu0  ;;  %v2684_v17 = vpop.f32.mrb[120].mxu1  ;;  %v5718_v18 = vpack.c.bf16 %v3526_v15, %v3526_v15  ;;  %v3654_v19 = vsel %vm3142_vm11, %v2680_v6, %v3398_v14 }
 0x1ed   :  { %4934 = vst.msk [vmem:[%s8591_s3 + $0x2e8] sm:$0xf] %vm4747_vm5, %v5845_v12  ;;  %v2173_v20 = vadd.f32 %v7662_v33, %v2172_v16  ;;  %v2685_v21 = vadd.f32 %v7662_v33, %v2684_v17  ;;  %v2174_v22 = vpop.f32.mrb[121].mxu0  ;;  %v2686_v23 = vpop.f32.mrb[121].mxu1  ;;  %v5846_v26 = vpack.c.bf16 %v3654_v19, %v3654_v19  ;;  %v6305_v17 = vld [vmem:[%s8589_s0 + $0x3b0] ss:$8 sps:$4 sm:$0xff]  }
 0x1ee   :  { %v2175_v27 = vpop.f32.mrb[122].mxu0  ;;  %v2687_v28 = vpop.f32.mrb[122].mxu1  ;;  %4807 = vst.msk [vmem:[%s8591_s3 + $0xec] sm:$0xf] %vm4747_vm5, %v5718_v18  ;;  %v6306_v18 = vld [vmem:[%s8589_s0 + $0x7b0] ss:$8 sps:$4 sm:$0xff]  }
 0x1ef   :  { %vm3015_vm12 = vcmp.ge.f32.partialorder %v2173_v20, 0.0  ;;  %v3271_v30 = vmul.f32 0.1, %v2173_v20  ;;  %vm3143_vm13 = vcmp.ge.f32.partialorder %v2685_v21, 0.0  ;;  %v3399_v31 = vmul.f32 0.1, %v2685_v21 }
 0x1f0   :  { %4935 = vst.msk [vmem:[%s8591_s3 + $0x2ec] sm:$0xf] %vm4747_vm5, %v5846_v26  ;;  %v2176_v32 = vadd.f32 %v7662_v33, %v2175_v27  ;;  %v2688_v34 = vadd.f32 %v7662_v33, %v2687_v28  ;;  %v2177_v35 = vpop.f32.mrb[123].mxu0  ;;  %v2689_v36 = vpop.f32.mrb[123].mxu1  ;;  %v6307_v22 = vld [vmem:[%s8589_s0 + $0x3c4] ss:$8 sps:$4 sm:$0xff]  }
 0x1f1   :  { %v3527_v37 = vsel %vm3015_vm12, %v2173_v20, %v3271_v30  ;;  %v3655_v38 = vsel %vm3143_vm13, %v2685_v21, %v3399_v31  ;;  %2387 = vmatmul.mubr.bf16.gmra.mrb[228].mxu0 %v6293_v24  ;;  %2899 = vmatmul.mubr.bf16.gmra.mrb[228].mxu1 %v6294_v25  ;;  %v6309_v23 = vld [vmem:[%s8589_s0 + $0x7c4] ss:$8 sps:$4 sm:$0xff]  }
 0x1f2   :  { %v5719_v39 = vpack.c.bf16 %v3527_v37, %v3527_v37  ;;  %v5847_v40 = vpack.c.bf16 %v3655_v38, %v3655_v38  ;;  %vm3016_vm14 = vcmp.ge.f32.partialorder %v2176_v32, 0.0  ;;  %v3272_v41 = vmul.f32 0.1, %v2176_v32  ;;  %5333 = vmatprep.mubr.msk.bf16.mxu0 %vm1506_vm0, %v6295_v47  ;;  %5397 = vmatprep.mubr.msk.bf16.mxu1 %vm1506_vm0, %v6297_v29 }
 0x1f3   :  { %vm3144_vm15 = vcmp.ge.f32.partialorder %v2688_v34, 0.0  ;;  %v3400_v42 = vmul.f32 0.1, %v2688_v34 }
 0x1f4   :  { %4808 = vst.msk [vmem:[%s8591_s3 + $0xf0] sm:$0xf] %vm4747_vm5, %v5719_v39  ;;  %4936 = vst.msk [vmem:[%s8591_s3 + $0x2f0] sm:$0xf] %vm4747_vm5, %v5847_v40  ;;  %v3528_v61 = vsel %vm3016_vm14, %v2176_v32, %v3272_v41  ;;  %v2180_v43 = vpop.f32.mrb[124].mxu0  ;;  %v2692_v44 = vpop.f32.mrb[124].mxu1 }
 0x1f5   :  { %v5720_v45 = vpack.c.bf16 %v3528_v61, %v3528_v61  ;;  %v3656_v46 = vsel %vm3144_vm15, %v2688_v34, %v3400_v42  ;;  %v2181_v48 = vadd.f32 %v7662_v33, %v2180_v43  ;;  %v2693_v49 = vadd.f32 %v7662_v33, %v2692_v44  ;;  %v2182_v50 = vpop.f32.mrb[125].mxu0  ;;  %v2694_v51 = vpop.f32.mrb[125].mxu1  ;;  %v6311_v44 = vld [vmem:[%s8589_s0 + $0x3c0] ss:$8 sps:$4 sm:$0xff]  }
 0x1f6   :  { %v5848_v54 = vpack.c.bf16 %v3656_v46, %v3656_v46  ;;  %v2183_v55 = vpop.f32.mrb[126].mxu0  ;;  %v2695_v56 = vpop.f32.mrb[126].mxu1  ;;  %v6313_v50 = vld [vmem:[%s8589_s0 + $0x3d4] ss:$8 sps:$4 sm:$0xff]  }
 0x1f7   :  { %4809 = vst.msk [vmem:[%s8591_s3 + $0xf4] sm:$0xf] %vm4747_vm5, %v5720_v45  ;;  %vm3017_vm1 = vcmp.ge.f32.partialorder %v2181_v48, 0.0  ;;  %v3273_v59 = vmul.f32 0.1, %v2181_v48  ;;  %vm3145_vm2 = vcmp.ge.f32.partialorder %v2693_v49, 0.0  ;;  %v2184_v62 = vadd.f32 %v7662_v33, %v2183_v55 }
 0x1f8   :  { %v3401_v60 = vmul.f32 0.1, %v2693_v49  ;;  %4937 = vst.msk [vmem:[%s8591_s3 + $0x2f4] sm:$0xf] %vm4747_vm5, %v5848_v54  ;;  %v2696_v63 = vadd.f32 %v7662_v33, %v2695_v56  ;;  %v2185_v0 = vpop.f32.mrb[127].mxu0  ;;  %v2697_v1 = vpop.f32.mrb[127].mxu1 }
 0x1f9   :  { %v3529_v2 = vsel %vm3017_vm1, %v2181_v48, %v3273_v59  ;;  %2395 = vmatmul.mubr.bf16.gmra.mrb[232].mxu0 %v6299_v52  ;;  %2907 = vmatmul.mubr.bf16.gmra.mrb[232].mxu1 %v6300_v53  ;;  %vm3018_vm3 = vcmp.ge.f32.partialorder %v2184_v62, 0.0  ;;  %v3274_v6 = vmul.f32 0.1, %v2184_v62  ;;  %v6312_v45 = vld [vmem:[%s8589_s0 + $0x7c0] ss:$8 sps:$4 sm:$0xff]  }
 0x1fa   :  { %v3657_v3 = vsel %vm3145_vm2, %v2693_v49, %v3401_v60  ;;  %v5721_v4 = vpack.c.bf16 %v3529_v2, %v3529_v2  ;;  %5334 = vmatprep.mubr.msk.bf16.mxu0 %vm1506_vm0, %v6301_v57  ;;  %5398 = vmatprep.mubr.msk.bf16.mxu1 %vm1506_vm0, %v6303_v58  ;;  %vm3146_vm4 = vcmp.ge.f32.partialorder %v2696_v63, 0.0  ;;  %v3402_v7 = vmul.f32 0.1, %v2696_v63  ;;  %v6315_v51 = vld [vmem:[%s8589_s0 + $0x7d4] ss:$8 sps:$4 sm:$0xff]  }
 0x1fb   :  { %v5849_v5 = vpack.c.bf16 %v3657_v3, %v3657_v3  ;;  %v3530_v8 = vsel %vm3018_vm3, %v2184_v62, %v3274_v6 }
 0x1fc   :  { %4810 = vst.msk [vmem:[%s8591_s3 + $0xf8] sm:$0xf] %vm4747_vm5, %v5721_v4  ;;  %v2188_v9 = vpop.f32.mrb[128].mxu0  ;;  %v2700_v10 = vpop.f32.mrb[128].mxu1  ;;  %v5722_v11 = vpack.c.bf16 %v3530_v8, %v3530_v8  ;;  %v3658_v12 = vsel %vm3146_vm4, %v2696_v63, %v3402_v7 }
 0x1fd   :  { %4938 = vst.msk [vmem:[%s8591_s3 + $0x2f8] sm:$0xf] %vm4747_vm5, %v5849_v5  ;;  %v2189_v13 = vadd.f32 %v7662_v33, %v2188_v9  ;;  %v2701_v14 = vadd.f32 %v7662_v33, %v2700_v10  ;;  %v2190_v15 = vpop.f32.mrb[129].mxu0  ;;  %v2702_v16 = vpop.f32.mrb[129].mxu1  ;;  %v5850_v19 = vpack.c.bf16 %v3658_v12, %v3658_v12  ;;  %v6317_v10 = vld [vmem:[%s8589_s0 + $0x3d0] ss:$8 sps:$4 sm:$0xff]  }
 0x1fe   :  { %v2191_v20 = vpop.f32.mrb[130].mxu0  ;;  %v2703_v21 = vpop.f32.mrb[130].mxu1  ;;  %4811 = vst.msk [vmem:[%s8591_s3 + $0xfc] sm:$0xf] %vm4747_vm5, %v5722_v11  ;;  %v6318_v11 = vld [vmem:[%s8589_s0 + $0x7d0] ss:$8 sps:$4 sm:$0xff]  }
 0x1ff   :  { %vm3019_vm6 = vcmp.ge.f32.partialorder %v2189_v13, 0.0  ;;  %v3275_v24 = vmul.f32 0.1, %v2189_v13  ;;  %vm3147_vm7 = vcmp.ge.f32.partialorder %v2701_v14, 0.0  ;;  %v3403_v25 = vmul.f32 0.1, %v2701_v14 }
 0x200   :  { %4939 = vst.msk [vmem:[%s8591_s3 + $0x2fc] sm:$0xf] %vm4747_vm5, %v5850_v19  ;;  %v2192_v26 = vadd.f32 %v7662_v33, %v2191_v20  ;;  %v2704_v27 = vadd.f32 %v7662_v33, %v2703_v21  ;;  %v2193_v28 = vpop.f32.mrb[131].mxu0  ;;  %v2705_v47 = vpop.f32.mrb[131].mxu1  ;;  %v6319_v15 = vld [vmem:[%s8589_s0 + $0x3e4] ss:$8 sps:$4 sm:$0xff]  }
 0x201   :  { %v3531_v29 = vsel %vm3019_vm6, %v2189_v13, %v3275_v24  ;;  %v3659_v30 = vsel %vm3147_vm7, %v2701_v14, %v3403_v25  ;;  %2403 = vmatmul.mubr.bf16.gmra.mrb[236].mxu0 %v6305_v17  ;;  %2915 = vmatmul.mubr.bf16.gmra.mrb[236].mxu1 %v6306_v18  ;;  %v6321_v16 = vld [vmem:[%s8589_s0 + $0x7e4] ss:$8 sps:$4 sm:$0xff]  }
 0x202   :  { %v5723_v31 = vpack.c.bf16 %v3531_v29, %v3531_v29  ;;  %v5851_v32 = vpack.c.bf16 %v3659_v30, %v3659_v30  ;;  %vm3020_vm8 = vcmp.ge.f32.partialorder %v2192_v26, 0.0  ;;  %v3276_v34 = vmul.f32 0.1, %v2192_v26  ;;  %5335 = vmatprep.mubr.msk.bf16.mxu0 %vm1506_vm0, %v6307_v22  ;;  %5399 = vmatprep.mubr.msk.bf16.mxu1 %vm1506_vm0, %v6309_v23 }
 0x203   :  { %vm3148_vm9 = vcmp.ge.f32.partialorder %v2704_v27, 0.0  ;;  %v3404_v35 = vmul.f32 0.1, %v2704_v27 }
 0x204   :  { %4812 = vst.msk [vmem:[%s8591_s3 + $0x100] sm:$0xf] %vm4747_vm5, %v5723_v31  ;;  %4940 = vst.msk [vmem:[%s8591_s3 + $0x300] sm:$0xf] %vm4747_vm5, %v5851_v32  ;;  %v3532_v36 = vsel %vm3020_vm8, %v2192_v26, %v3276_v34  ;;  %v2196_v37 = vpop.f32.mrb[132].mxu0  ;;  %v2708_v38 = vpop.f32.mrb[132].mxu1 }
 0x205   :  { %v5724_v39 = vpack.c.bf16 %v3532_v36, %v3532_v36  ;;  %v3660_v40 = vsel %vm3148_vm9, %v2704_v27, %v3404_v35  ;;  %v2197_v41 = vadd.f32 %v7662_v33, %v2196_v37  ;;  %v2709_v42 = vadd.f32 %v7662_v33, %v2708_v38  ;;  %v2198_v61 = vpop.f32.mrb[133].mxu0  ;;  %v2710_v43 = vpop.f32.mrb[133].mxu1  ;;  %v6323_v38 = vld [vmem:[%s8589_s0 + $0x3e0] ss:$8 sps:$4 sm:$0xff]  }
 0x206   :  { %v5852_v46 = vpack.c.bf16 %v3660_v40, %v3660_v40  ;;  %v2199_v48 = vpop.f32.mrb[134].mxu0  ;;  %v2711_v49 = vpop.f32.mrb[134].mxu1  ;;  %v6325_v61 = vld [vmem:[%s8589_s0 + $0x3f4] ss:$8 sps:$4 sm:$0xff]  }
 0x207   :  { %4813 = vst.msk [vmem:[%s8591_s3 + $0x104] sm:$0xf] %vm4747_vm5, %v5724_v39  ;;  %vm3021_vm10 = vcmp.ge.f32.partialorder %v2197_v41, 0.0  ;;  %v3277_v52 = vmul.f32 0.1, %v2197_v41  ;;  %vm3149_vm11 = vcmp.ge.f32.partialorder %v2709_v42, 0.0  ;;  %v2200_v54 = vadd.f32 %v7662_v33, %v2199_v48 }
 0x208   :  { %v3405_v53 = vmul.f32 0.1, %v2709_v42  ;;  %4941 = vst.msk [vmem:[%s8591_s3 + $0x304] sm:$0xf] %vm4747_vm5, %v5852_v46  ;;  %v2712_v55 = vadd.f32 %v7662_v33, %v2711_v49  ;;  %v2201_v56 = vpop.f32.mrb[135].mxu0  ;;  %v2713_v57 = vpop.f32.mrb[135].mxu1 }
 0x209   :  { %v3533_v58 = vsel %vm3021_vm10, %v2197_v41, %v3277_v52  ;;  %2411 = vmatmul.mubr.bf16.gmra.mrb[240].mxu0 %v6311_v44  ;;  %2923 = vmatmul.mubr.bf16.gmra.mrb[240].mxu1 %v6312_v45  ;;  %vm3022_vm12 = vcmp.ge.f32.partialorder %v2200_v54, 0.0  ;;  %v3278_v63 = vmul.f32 0.1, %v2200_v54  ;;  %v6324_v39 = vld [vmem:[%s8589_s0 + $0x7e0] ss:$8 sps:$4 sm:$0xff]  }
 0x20a   :  { %v3661_v59 = vsel %vm3149_vm11, %v2709_v42, %v3405_v53  ;;  %v5725_v60 = vpack.c.bf16 %v3533_v58, %v3533_v58  ;;  %5336 = vmatprep.mubr.msk.bf16.mxu0 %vm1506_vm0, %v6313_v50  ;;  %5400 = vmatprep.mubr.msk.bf16.mxu1 %vm1506_vm0, %v6315_v51  ;;  %vm3150_vm13 = vcmp.ge.f32.partialorder %v2712_v55, 0.0  ;;  %v3406_v0 = vmul.f32 0.1, %v2712_v55  ;;  %v6327_v43 = vld [vmem:[%s8589_s0 + $0x7f4] ss:$8 sps:$4 sm:$0xff]  }
 0x20b   :  { %v5853_v62 = vpack.c.bf16 %v3661_v59, %v3661_v59  ;;  %v3534_v1 = vsel %vm3022_vm12, %v2200_v54, %v3278_v63 }
 0x20c   :  { %4814 = vst.msk [vmem:[%s8591_s3 + $0x108] sm:$0xf] %vm4747_vm5, %v5725_v60  ;;  %v2204_v2 = vpop.f32.mrb[136].mxu0  ;;  %v2716_v3 = vpop.f32.mrb[136].mxu1  ;;  %v5726_v4 = vpack.c.bf16 %v3534_v1, %v3534_v1  ;;  %v3662_v5 = vsel %vm3150_vm13, %v2712_v55, %v3406_v0 }
 0x20d   :  { %4942 = vst.msk [vmem:[%s8591_s3 + $0x308] sm:$0xf] %vm4747_vm5, %v5853_v62  ;;  %v2205_v6 = vadd.f32 %v7662_v33, %v2204_v2  ;;  %v2717_v7 = vadd.f32 %v7662_v33, %v2716_v3  ;;  %v2206_v8 = vpop.f32.mrb[137].mxu0  ;;  %v2718_v9 = vpop.f32.mrb[137].mxu1  ;;  %v5854_v12 = vpack.c.bf16 %v3662_v5, %v3662_v5  ;;  %v6329_v3 = vld [vmem:[%s8589_s0 + $0x3f0] ss:$8 sps:$4 sm:$0xff]  }
 0x20e   :  { %v2207_v13 = vpop.f32.mrb[138].mxu0  ;;  %v2719_v14 = vpop.f32.mrb[138].mxu1  ;;  %4815 = vst.msk [vmem:[%s8591_s3 + $0x10c] sm:$0xf] %vm4747_vm5, %v5726_v4  ;;  %v6330_v4 = vld [vmem:[%s8589_s0 + $0x7f0] ss:$8 sps:$4 sm:$0xff]  }
 0x20f   :  { %vm3023_vm14 = vcmp.ge.f32.partialorder %v2205_v6, 0.0  ;;  %v3279_v17 = vmul.f32 0.1, %v2205_v6  ;;  %vm3151_vm15 = vcmp.ge.f32.partialorder %v2717_v7, 0.0  ;;  %v3407_v18 = vmul.f32 0.1, %v2717_v7 }
 0x210   :  { %4943 = vst.msk [vmem:[%s8591_s3 + $0x30c] sm:$0xf] %vm4747_vm5, %v5854_v12  ;;  %v2208_v19 = vadd.f32 %v7662_v33, %v2207_v13  ;;  %v2720_v20 = vadd.f32 %v7662_v33, %v2719_v14  ;;  %v2209_v21 = vpop.f32.mrb[139].mxu0  ;;  %v2721_v22 = vpop.f32.mrb[139].mxu1 }
 0x211   :  { %v3535_v23 = vsel %vm3023_vm14, %v2205_v6, %v3279_v17  ;;  %v3663_v24 = vsel %vm3151_vm15, %v2717_v7, %v3407_v18  ;;  %2419 = vmatmul.mubr.bf16.gmra.mrb[244].mxu0 %v6317_v10  ;;  %2931 = vmatmul.mubr.bf16.gmra.mrb[244].mxu1 %v6318_v11 }
 0x212   :  { %v5727_v25 = vpack.c.bf16 %v3535_v23, %v3535_v23  ;;  %v5855_v26 = vpack.c.bf16 %v3663_v24, %v3663_v24  ;;  %vm3024_vm1 = vcmp.ge.f32.partialorder %v2208_v19, 0.0  ;;  %v3280_v27 = vmul.f32 0.1, %v2208_v19  ;;  %5337 = vmatprep.mubr.msk.bf16.mxu0 %vm1506_vm0, %v6319_v15  ;;  %5401 = vmatprep.mubr.msk.bf16.mxu1 %vm1506_vm0, %v6321_v16 }
 0x213   :  { %vm3152_vm2 = vcmp.ge.f32.partialorder %v2720_v20, 0.0  ;;  %v3408_v28 = vmul.f32 0.1, %v2720_v20 }
 0x214   :  { %4816 = vst.msk [vmem:[%s8591_s3 + $0x110] sm:$0xf] %vm4747_vm5, %v5727_v25  ;;  %4944 = vst.msk [vmem:[%s8591_s3 + $0x310] sm:$0xf] %vm4747_vm5, %v5855_v26  ;;  %v3536_v47 = vsel %vm3024_vm1, %v2208_v19, %v3280_v27  ;;  %v2212_v29 = vpop.f32.mrb[140].mxu0  ;;  %v2724_v30 = vpop.f32.mrb[140].mxu1 }
 0x215   :  { %v5728_v31 = vpack.c.bf16 %v3536_v47, %v3536_v47  ;;  %v3664_v32 = vsel %vm3152_vm2, %v2720_v20, %v3408_v28  ;;  %v2213_v34 = vadd.f32 %v7662_v33, %v2212_v29  ;;  %v2725_v35 = vadd.f32 %v7662_v33, %v2724_v30  ;;  %v2214_v36 = vpop.f32.mrb[141].mxu0  ;;  %v2726_v37 = vpop.f32.mrb[141].mxu1 }
 0x216   :  { %v5856_v40 = vpack.c.bf16 %v3664_v32, %v3664_v32  ;;  %v2215_v41 = vpop.f32.mrb[142].mxu0  ;;  %v2727_v42 = vpop.f32.mrb[142].mxu1 }
 0x217   :  { %4817 = vst.msk [vmem:[%s8591_s3 + $0x114] sm:$0xf] %vm4747_vm5, %v5728_v31  ;;  %vm3025_vm3 = vcmp.ge.f32.partialorder %v2213_v34, 0.0  ;;  %v3281_v44 = vmul.f32 0.1, %v2213_v34  ;;  %vm3153_vm4 = vcmp.ge.f32.partialorder %v2725_v35, 0.0  ;;  %v2216_v46 = vadd.f32 %v7662_v33, %v2215_v41 }
 0x218   :  { %v3409_v45 = vmul.f32 0.1, %v2725_v35  ;;  %4945 = vst.msk [vmem:[%s8591_s3 + $0x314] sm:$0xf] %vm4747_vm5, %v5856_v40  ;;  %v2728_v48 = vadd.f32 %v7662_v33, %v2727_v42  ;;  %v2217_v49 = vpop.f32.mrb[143].mxu0  ;;  %v2729_v50 = vpop.f32.mrb[143].mxu1 }
 0x219   :  { %v3537_v51 = vsel %vm3025_vm3, %v2213_v34, %v3281_v44  ;;  %2427 = vmatmul.mubr.bf16.gmra.mrb[248].mxu0 %v6323_v38  ;;  %2939 = vmatmul.mubr.bf16.gmra.mrb[248].mxu1 %v6324_v39  ;;  %vm3026_vm6 = vcmp.ge.f32.partialorder %v2216_v46, 0.0  ;;  %v3282_v55 = vmul.f32 0.1, %v2216_v46 }
 0x21a   :  { %v3665_v52 = vsel %vm3153_vm4, %v2725_v35, %v3409_v45  ;;  %v5729_v53 = vpack.c.bf16 %v3537_v51, %v3537_v51  ;;  %5338 = vmatprep.mubr.msk.bf16.mxu0 %vm1506_vm0, %v6325_v61  ;;  %5402 = vmatprep.mubr.msk.bf16.mxu1 %vm1506_vm0, %v6327_v43  ;;  %vm3154_vm7 = vcmp.ge.f32.partialorder %v2728_v48, 0.0  ;;  %v3410_v56 = vmul.f32 0.1, %v2728_v48 }
 0x21b   :  { %v5857_v54 = vpack.c.bf16 %v3665_v52, %v3665_v52  ;;  %v3538_v57 = vsel %vm3026_vm6, %v2216_v46, %v3282_v55 }
 0x21c   :  { %4818 = vst.msk [vmem:[%s8591_s3 + $0x118] sm:$0xf] %vm4747_vm5, %v5729_v53  ;;  %v2220_v58 = vpop.f32.mrb[144].mxu0  ;;  %v2732_v59 = vpop.f32.mrb[144].mxu1  ;;  %v5730_v60 = vpack.c.bf16 %v3538_v57, %v3538_v57  ;;  %v3666_v62 = vsel %vm3154_vm7, %v2728_v48, %v3410_v56 }
 0x21d   :  { %4946 = vst.msk [vmem:[%s8591_s3 + $0x318] sm:$0xf] %vm4747_vm5, %v5857_v54  ;;  %v2221_v63 = vadd.f32 %v7662_v33, %v2220_v58  ;;  %v2733_v0 = vadd.f32 %v7662_v33, %v2732_v59  ;;  %v2222_v1 = vpop.f32.mrb[145].mxu0  ;;  %v2734_v2 = vpop.f32.mrb[145].mxu1  ;;  %v5858_v5 = vpack.c.bf16 %v3666_v62, %v3666_v62 }
 0x21e   :  { %v2223_v6 = vpop.f32.mrb[146].mxu0  ;;  %v2735_v7 = vpop.f32.mrb[146].mxu1  ;;  %4819 = vst.msk [vmem:[%s8591_s3 + $0x11c] sm:$0xf] %vm4747_vm5, %v5730_v60 }
 0x21f   :  { %vm3027_vm0 = vcmp.ge.f32.partialorder %v2221_v63, 0.0  ;;  %v3283_v8 = vmul.f32 0.1, %v2221_v63  ;;  %vm3155_vm8 = vcmp.ge.f32.partialorder %v2733_v0, 0.0  ;;  %v3411_v9 = vmul.f32 0.1, %v2733_v0 }
 0x220   :  { %4947 = vst.msk [vmem:[%s8591_s3 + $0x31c] sm:$0xf] %vm4747_vm5, %v5858_v5  ;;  %v2224_v10 = vadd.f32 %v7662_v33, %v2223_v6  ;;  %v2736_v11 = vadd.f32 %v7662_v33, %v2735_v7  ;;  %v2225_v12 = vpop.f32.mrb[147].mxu0  ;;  %v2737_v13 = vpop.f32.mrb[147].mxu1 }
 0x221   :  { %v3539_v14 = vsel %vm3027_vm0, %v2221_v63, %v3283_v8  ;;  %v3667_v15 = vsel %vm3155_vm8, %v2733_v0, %v3411_v9  ;;  %2435 = vmatmul.mubr.bf16.gmra.mrb[252].mxu0 %v6329_v3  ;;  %2947 = vmatmul.mubr.bf16.gmra.mrb[252].mxu1 %v6330_v4 }
 0x222   :  { %v5731_v16 = vpack.c.bf16 %v3539_v14, %v3539_v14  ;;  %v5859_v17 = vpack.c.bf16 %v3667_v15, %v3667_v15  ;;  %vm3028_vm9 = vcmp.ge.f32.partialorder %v2224_v10, 0.0  ;;  %v3284_v18 = vmul.f32 0.1, %v2224_v10 }
 0x223   :  { %vm3156_vm10 = vcmp.ge.f32.partialorder %v2736_v11, 0.0  ;;  %v3412_v19 = vmul.f32 0.1, %v2736_v11 }
 0x224   :  { %4820 = vst.msk [vmem:[%s8591_s3 + $0x120] sm:$0xf] %vm4747_vm5, %v5731_v16  ;;  %4948 = vst.msk [vmem:[%s8591_s3 + $0x320] sm:$0xf] %vm4747_vm5, %v5859_v17  ;;  %v3540_v20 = vsel %vm3028_vm9, %v2224_v10, %v3284_v18  ;;  %v2228_v21 = vpop.f32.mrb[148].mxu0  ;;  %v2740_v22 = vpop.f32.mrb[148].mxu1 }
 0x225   :  { %v5732_v23 = vpack.c.bf16 %v3540_v20, %v3540_v20  ;;  %v3668_v24 = vsel %vm3156_vm10, %v2736_v11, %v3412_v19  ;;  %v2229_v25 = vadd.f32 %v7662_v33, %v2228_v21  ;;  %v2741_v26 = vadd.f32 %v7662_v33, %v2740_v22  ;;  %v2230_v27 = vpop.f32.mrb[149].mxu0  ;;  %v2742_v28 = vpop.f32.mrb[149].mxu1 }
 0x226   :  { %v5860_v47 = vpack.c.bf16 %v3668_v24, %v3668_v24  ;;  %v2231_v29 = vpop.f32.mrb[150].mxu0  ;;  %v2743_v30 = vpop.f32.mrb[150].mxu1 }
 0x227   :  { %4821 = vst.msk [vmem:[%s8591_s3 + $0x124] sm:$0xf] %vm4747_vm5, %v5732_v23  ;;  %vm3029_vm11 = vcmp.ge.f32.partialorder %v2229_v25, 0.0  ;;  %v3285_v31 = vmul.f32 0.1, %v2229_v25  ;;  %vm3157_vm12 = vcmp.ge.f32.partialorder %v2741_v26, 0.0  ;;  %v2232_v34 = vadd.f32 %v7662_v33, %v2231_v29 }
 0x228   :  { %v3413_v32 = vmul.f32 0.1, %v2741_v26  ;;  %4949 = vst.msk [vmem:[%s8591_s3 + $0x324] sm:$0xf] %vm4747_vm5, %v5860_v47  ;;  %v2744_v35 = vadd.f32 %v7662_v33, %v2743_v30  ;;  %v2233_v36 = vpop.f32.mrb[151].mxu0  ;;  %v2745_v37 = vpop.f32.mrb[151].mxu1 }
 0x229   :  { %v3541_v38 = vsel %vm3029_vm11, %v2229_v25, %v3285_v31  ;;  %vm3030_vm13 = vcmp.ge.f32.partialorder %v2232_v34, 0.0  ;;  %v3286_v42 = vmul.f32 0.1, %v2232_v34 }
 0x22a   :  { %v3669_v39 = vsel %vm3157_vm12, %v2741_v26, %v3413_v32  ;;  %v5733_v40 = vpack.c.bf16 %v3541_v38, %v3541_v38  ;;  %vm3158_vm14 = vcmp.ge.f32.partialorder %v2744_v35, 0.0  ;;  %v3414_v61 = vmul.f32 0.1, %v2744_v35 }
 0x22b   :  { %v5861_v41 = vpack.c.bf16 %v3669_v39, %v3669_v39  ;;  %v3542_v43 = vsel %vm3030_vm13, %v2232_v34, %v3286_v42 }
 0x22c   :  { %4822 = vst.msk [vmem:[%s8591_s3 + $0x128] sm:$0xf] %vm4747_vm5, %v5733_v40  ;;  %v2236_v44 = vpop.f32.mrb[152].mxu0  ;;  %v2748_v45 = vpop.f32.mrb[152].mxu1  ;;  %v5734_v46 = vpack.c.bf16 %v3542_v43, %v3542_v43  ;;  %v3670_v48 = vsel %vm3158_vm14, %v2744_v35, %v3414_v61 }
 0x22d   :  { %4950 = vst.msk [vmem:[%s8591_s3 + $0x328] sm:$0xf] %vm4747_vm5, %v5861_v41  ;;  %v2237_v49 = vadd.f32 %v7662_v33, %v2236_v44  ;;  %v2749_v50 = vadd.f32 %v7662_v33, %v2748_v45  ;;  %v2238_v51 = vpop.f32.mrb[153].mxu0  ;;  %v2750_v52 = vpop.f32.mrb[153].mxu1  ;;  %v5862_v53 = vpack.c.bf16 %v3670_v48, %v3670_v48 }
 0x22e   :  { %v2239_v54 = vpop.f32.mrb[154].mxu0  ;;  %v2751_v55 = vpop.f32.mrb[154].mxu1  ;;  %4823 = vst.msk [vmem:[%s8591_s3 + $0x12c] sm:$0xf] %vm4747_vm5, %v5734_v46 }
 0x22f   :  { %vm3031_vm15 = vcmp.ge.f32.partialorder %v2237_v49, 0.0  ;;  %v3287_v56 = vmul.f32 0.1, %v2237_v49  ;;  %vm3159_vm1 = vcmp.ge.f32.partialorder %v2749_v50, 0.0  ;;  %v3415_v57 = vmul.f32 0.1, %v2749_v50 }
 0x230   :  { %4951 = vst.msk [vmem:[%s8591_s3 + $0x32c] sm:$0xf] %vm4747_vm5, %v5862_v53  ;;  %v2240_v58 = vadd.f32 %v7662_v33, %v2239_v54  ;;  %v2752_v59 = vadd.f32 %v7662_v33, %v2751_v55  ;;  %v2241_v60 = vpop.f32.mrb[155].mxu0  ;;  %v2753_v62 = vpop.f32.mrb[155].mxu1 }
 0x231   :  { %v3543_v63 = vsel %vm3031_vm15, %v2237_v49, %v3287_v56  ;;  %v3671_v0 = vsel %vm3159_vm1, %v2749_v50, %v3415_v57 }
 0x232   :  { %v5735_v1 = vpack.c.bf16 %v3543_v63, %v3543_v63  ;;  %v5863_v2 = vpack.c.bf16 %v3671_v0, %v3671_v0  ;;  %vm3032_vm2 = vcmp.ge.f32.partialorder %v2240_v58, 0.0  ;;  %v3288_v3 = vmul.f32 0.1, %v2240_v58 }
 0x233   :  { %vm3160_vm3 = vcmp.ge.f32.partialorder %v2752_v59, 0.0  ;;  %v3416_v4 = vmul.f32 0.1, %v2752_v59 }
 0x234   :  { %4824 = vst.msk [vmem:[%s8591_s3 + $0x130] sm:$0xf] %vm4747_vm5, %v5735_v1  ;;  %4952 = vst.msk [vmem:[%s8591_s3 + $0x330] sm:$0xf] %vm4747_vm5, %v5863_v2  ;;  %v3544_v5 = vsel %vm3032_vm2, %v2240_v58, %v3288_v3  ;;  %v2244_v6 = vpop.f32.mrb[156].mxu0  ;;  %v2756_v7 = vpop.f32.mrb[156].mxu1 }
 0x235   :  { %v5736_v8 = vpack.c.bf16 %v3544_v5, %v3544_v5  ;;  %v3672_v9 = vsel %vm3160_vm3, %v2752_v59, %v3416_v4  ;;  %v2245_v10 = vadd.f32 %v7662_v33, %v2244_v6  ;;  %v2757_v11 = vadd.f32 %v7662_v33, %v2756_v7  ;;  %v2246_v12 = vpop.f32.mrb[157].mxu0  ;;  %v2758_v13 = vpop.f32.mrb[157].mxu1  ;;  %v8083_v33 = vld [vmem:[%s8590_s2] ss:$0 sm:$0xff] }
 0x236   :  { %v5864_v14 = vpack.c.bf16 %v3672_v9, %v3672_v9  ;;  %v2247_v15 = vpop.f32.mrb[158].mxu0  ;;  %v2759_v16 = vpop.f32.mrb[158].mxu1 }
 0x237   :  { %4825 = vst.msk [vmem:[%s8591_s3 + $0x134] sm:$0xf] %vm4747_vm5, %v5736_v8  ;;  %vm3033_vm4 = vcmp.ge.f32.partialorder %v2245_v10, 0.0  ;;  %v3289_v17 = vmul.f32 0.1, %v2245_v10  ;;  %vm3161_vm6 = vcmp.ge.f32.partialorder %v2757_v11, 0.0  ;;  %v2248_v19 = vadd.f32 %v8083_v33, %v2247_v15 }
 0x238   :  { %v3417_v18 = vmul.f32 0.1, %v2757_v11  ;;  %4953 = vst.msk [vmem:[%s8591_s3 + $0x334] sm:$0xf] %vm4747_vm5, %v5864_v14  ;;  %v2760_v20 = vadd.f32 %v8083_v33, %v2759_v16  ;;  %v2249_v21 = vpop.f32.mrb[159].mxu0  ;;  %v2761_v22 = vpop.f32.mrb[159].mxu1 }
 0x239   :  { %v3545_v23 = vsel %vm3033_vm4, %v2245_v10, %v3289_v17  ;;  %vm3034_vm7 = vcmp.ge.f32.partialorder %v2248_v19, 0.0  ;;  %v3290_v27 = vmul.f32 0.1, %v2248_v19 }
 0x23a   :  { %v3673_v24 = vsel %vm3161_vm6, %v2757_v11, %v3417_v18  ;;  %v5737_v25 = vpack.c.bf16 %v3545_v23, %v3545_v23  ;;  %vm3162_vm0 = vcmp.ge.f32.partialorder %v2760_v20, 0.0  ;;  %v3418_v28 = vmul.f32 0.1, %v2760_v20 }
 0x23b   :  { %v5865_v26 = vpack.c.bf16 %v3673_v24, %v3673_v24  ;;  %v3546_v47 = vsel %vm3034_vm7, %v2248_v19, %v3290_v27 }
 0x23c   :  { %4826 = vst.msk [vmem:[%s8591_s3 + $0x138] sm:$0xf] %vm4747_vm5, %v5737_v25  ;;  %v2252_v29 = vpop.f32.mrb[160].mxu0  ;;  %v2764_v30 = vpop.f32.mrb[160].mxu1  ;;  %v5738_v31 = vpack.c.bf16 %v3546_v47, %v3546_v47  ;;  %v3674_v32 = vsel %vm3162_vm0, %v2760_v20, %v3418_v28 }
 0x23d   :  { %4954 = vst.msk [vmem:[%s8591_s3 + $0x338] sm:$0xf] %vm4747_vm5, %v5865_v26  ;;  %v2253_v34 = vadd.f32 %v8083_v33, %v2252_v29  ;;  %v2765_v35 = vadd.f32 %v8083_v33, %v2764_v30  ;;  %v2254_v36 = vpop.f32.mrb[161].mxu0  ;;  %v2766_v37 = vpop.f32.mrb[161].mxu1  ;;  %v5866_v38 = vpack.c.bf16 %v3674_v32, %v3674_v32 }
 0x23e   :  { %v2255_v39 = vpop.f32.mrb[162].mxu0  ;;  %v2767_v40 = vpop.f32.mrb[162].mxu1  ;;  %4827 = vst.msk [vmem:[%s8591_s3 + $0x13c] sm:$0xf] %vm4747_vm5, %v5738_v31 }
 0x23f   :  { %vm3035_vm8 = vcmp.ge.f32.partialorder %v2253_v34, 0.0  ;;  %v3291_v41 = vmul.f32 0.1, %v2253_v34  ;;  %vm3163_vm9 = vcmp.ge.f32.partialorder %v2765_v35, 0.0  ;;  %v3419_v42 = vmul.f32 0.1, %v2765_v35 }
 0x240   :  { %4955 = vst.msk [vmem:[%s8591_s3 + $0x33c] sm:$0xf] %vm4747_vm5, %v5866_v38  ;;  %v2256_v61 = vadd.f32 %v8083_v33, %v2255_v39  ;;  %v2768_v43 = vadd.f32 %v8083_v33, %v2767_v40  ;;  %v2257_v44 = vpop.f32.mrb[163].mxu0  ;;  %v2769_v45 = vpop.f32.mrb[163].mxu1 }
 0x241   :  { %v3547_v46 = vsel %vm3035_vm8, %v2253_v34, %v3291_v41  ;;  %v3675_v48 = vsel %vm3163_vm9, %v2765_v35, %v3419_v42 }
 0x242   :  { %v5739_v49 = vpack.c.bf16 %v3547_v46, %v3547_v46  ;;  %v5867_v50 = vpack.c.bf16 %v3675_v48, %v3675_v48  ;;  %vm3036_vm10 = vcmp.ge.f32.partialorder %v2256_v61, 0.0  ;;  %v3292_v51 = vmul.f32 0.1, %v2256_v61 }
 0x243   :  { %vm3164_vm11 = vcmp.ge.f32.partialorder %v2768_v43, 0.0  ;;  %v3420_v52 = vmul.f32 0.1, %v2768_v43 }
 0x244   :  { %4828 = vst.msk [vmem:[%s8591_s3 + $0x140] sm:$0xf] %vm4747_vm5, %v5739_v49  ;;  %4956 = vst.msk [vmem:[%s8591_s3 + $0x340] sm:$0xf] %vm4747_vm5, %v5867_v50  ;;  %v3548_v53 = vsel %vm3036_vm10, %v2256_v61, %v3292_v51  ;;  %v2260_v54 = vpop.f32.mrb[164].mxu0  ;;  %v2772_v55 = vpop.f32.mrb[164].mxu1 }
 0x245   :  { %v5740_v56 = vpack.c.bf16 %v3548_v53, %v3548_v53  ;;  %v3676_v57 = vsel %vm3164_vm11, %v2768_v43, %v3420_v52  ;;  %v2261_v58 = vadd.f32 %v8083_v33, %v2260_v54  ;;  %v2773_v59 = vadd.f32 %v8083_v33, %v2772_v55  ;;  %v2262_v60 = vpop.f32.mrb[165].mxu0  ;;  %v2774_v62 = vpop.f32.mrb[165].mxu1 }
 0x246   :  { %v5868_v63 = vpack.c.bf16 %v3676_v57, %v3676_v57  ;;  %v2263_v0 = vpop.f32.mrb[166].mxu0  ;;  %v2775_v1 = vpop.f32.mrb[166].mxu1 }
 0x247   :  { %4829 = vst.msk [vmem:[%s8591_s3 + $0x144] sm:$0xf] %vm4747_vm5, %v5740_v56  ;;  %vm3037_vm12 = vcmp.ge.f32.partialorder %v2261_v58, 0.0  ;;  %v3293_v2 = vmul.f32 0.1, %v2261_v58  ;;  %vm3165_vm13 = vcmp.ge.f32.partialorder %v2773_v59, 0.0  ;;  %v2264_v4 = vadd.f32 %v8083_v33, %v2263_v0 }
 0x248   :  { %v3421_v3 = vmul.f32 0.1, %v2773_v59  ;;  %4957 = vst.msk [vmem:[%s8591_s3 + $0x344] sm:$0xf] %vm4747_vm5, %v5868_v63  ;;  %v2776_v5 = vadd.f32 %v8083_v33, %v2775_v1  ;;  %v2265_v6 = vpop.f32.mrb[167].mxu0  ;;  %v2777_v7 = vpop.f32.mrb[167].mxu1 }
 0x249   :  { %v3549_v8 = vsel %vm3037_vm12, %v2261_v58, %v3293_v2  ;;  %vm3038_vm14 = vcmp.ge.f32.partialorder %v2264_v4, 0.0  ;;  %v3294_v12 = vmul.f32 0.1, %v2264_v4 }
 0x24a   :  { %v3677_v9 = vsel %vm3165_vm13, %v2773_v59, %v3421_v3  ;;  %v5741_v10 = vpack.c.bf16 %v3549_v8, %v3549_v8  ;;  %vm3166_vm15 = vcmp.ge.f32.partialorder %v2776_v5, 0.0  ;;  %v3422_v13 = vmul.f32 0.1, %v2776_v5 }
 0x24b   :  { %v5869_v11 = vpack.c.bf16 %v3677_v9, %v3677_v9  ;;  %v3550_v14 = vsel %vm3038_vm14, %v2264_v4, %v3294_v12 }
 0x24c   :  { %4830 = vst.msk [vmem:[%s8591_s3 + $0x148] sm:$0xf] %vm4747_vm5, %v5741_v10  ;;  %v2268_v15 = vpop.f32.mrb[168].mxu0  ;;  %v2780_v16 = vpop.f32.mrb[168].mxu1  ;;  %v5742_v17 = vpack.c.bf16 %v3550_v14, %v3550_v14  ;;  %v3678_v18 = vsel %vm3166_vm15, %v2776_v5, %v3422_v13 }
 0x24d   :  { %4958 = vst.msk [vmem:[%s8591_s3 + $0x348] sm:$0xf] %vm4747_vm5, %v5869_v11  ;;  %v2269_v19 = vadd.f32 %v8083_v33, %v2268_v15  ;;  %v2781_v20 = vadd.f32 %v8083_v33, %v2780_v16  ;;  %v2270_v21 = vpop.f32.mrb[169].mxu0  ;;  %v2782_v22 = vpop.f32.mrb[169].mxu1  ;;  %v5870_v23 = vpack.c.bf16 %v3678_v18, %v3678_v18 }
 0x24e   :  { %v2271_v24 = vpop.f32.mrb[170].mxu0  ;;  %v2783_v25 = vpop.f32.mrb[170].mxu1  ;;  %4831 = vst.msk [vmem:[%s8591_s3 + $0x14c] sm:$0xf] %vm4747_vm5, %v5742_v17 }
 0x24f   :  { %vm3039_vm1 = vcmp.ge.f32.partialorder %v2269_v19, 0.0  ;;  %v3295_v26 = vmul.f32 0.1, %v2269_v19  ;;  %vm3167_vm2 = vcmp.ge.f32.partialorder %v2781_v20, 0.0  ;;  %v3423_v27 = vmul.f32 0.1, %v2781_v20 }
 0x250   :  { %4959 = vst.msk [vmem:[%s8591_s3 + $0x34c] sm:$0xf] %vm4747_vm5, %v5870_v23  ;;  %v2272_v28 = vadd.f32 %v8083_v33, %v2271_v24  ;;  %v2784_v47 = vadd.f32 %v8083_v33, %v2783_v25  ;;  %v2273_v29 = vpop.f32.mrb[171].mxu0  ;;  %v2785_v30 = vpop.f32.mrb[171].mxu1 }
 0x251   :  { %v3551_v31 = vsel %vm3039_vm1, %v2269_v19, %v3295_v26  ;;  %v3679_v32 = vsel %vm3167_vm2, %v2781_v20, %v3423_v27 }
 0x252   :  { %v5743_v34 = vpack.c.bf16 %v3551_v31, %v3551_v31  ;;  %v5871_v35 = vpack.c.bf16 %v3679_v32, %v3679_v32  ;;  %vm3040_vm3 = vcmp.ge.f32.partialorder %v2272_v28, 0.0  ;;  %v3296_v36 = vmul.f32 0.1, %v2272_v28 }
 0x253   :  { %vm3168_vm4 = vcmp.ge.f32.partialorder %v2784_v47, 0.0  ;;  %v3424_v37 = vmul.f32 0.1, %v2784_v47 }
 0x254   :  { %4832 = vst.msk [vmem:[%s8591_s3 + $0x150] sm:$0xf] %vm4747_vm5, %v5743_v34  ;;  %4960 = vst.msk [vmem:[%s8591_s3 + $0x350] sm:$0xf] %vm4747_vm5, %v5871_v35  ;;  %v3552_v38 = vsel %vm3040_vm3, %v2272_v28, %v3296_v36  ;;  %v2276_v39 = vpop.f32.mrb[172].mxu0  ;;  %v2788_v40 = vpop.f32.mrb[172].mxu1 }
 0x255   :  { %v5744_v41 = vpack.c.bf16 %v3552_v38, %v3552_v38  ;;  %v3680_v42 = vsel %vm3168_vm4, %v2784_v47, %v3424_v37  ;;  %v2277_v61 = vadd.f32 %v8083_v33, %v2276_v39  ;;  %v2789_v43 = vadd.f32 %v8083_v33, %v2788_v40  ;;  %v2278_v44 = vpop.f32.mrb[173].mxu0  ;;  %v2790_v45 = vpop.f32.mrb[173].mxu1 }
 0x256   :  { %v5872_v46 = vpack.c.bf16 %v3680_v42, %v3680_v42  ;;  %v2279_v48 = vpop.f32.mrb[174].mxu0  ;;  %v2791_v49 = vpop.f32.mrb[174].mxu1 }
 0x257   :  { %4833 = vst.msk [vmem:[%s8591_s3 + $0x154] sm:$0xf] %vm4747_vm5, %v5744_v41  ;;  %vm3041_vm6 = vcmp.ge.f32.partialorder %v2277_v61, 0.0  ;;  %v3297_v50 = vmul.f32 0.1, %v2277_v61  ;;  %vm3169_vm7 = vcmp.ge.f32.partialorder %v2789_v43, 0.0  ;;  %v2280_v52 = vadd.f32 %v8083_v33, %v2279_v48 }
 0x258   :  { %v3425_v51 = vmul.f32 0.1, %v2789_v43  ;;  %4961 = vst.msk [vmem:[%s8591_s3 + $0x354] sm:$0xf] %vm4747_vm5, %v5872_v46  ;;  %v2792_v53 = vadd.f32 %v8083_v33, %v2791_v49  ;;  %v2281_v54 = vpop.f32.mrb[175].mxu0  ;;  %v2793_v55 = vpop.f32.mrb[175].mxu1 }
 0x259   :  { %v3553_v56 = vsel %vm3041_vm6, %v2277_v61, %v3297_v50  ;;  %vm3042_vm0 = vcmp.ge.f32.partialorder %v2280_v52, 0.0  ;;  %v3298_v60 = vmul.f32 0.1, %v2280_v52 }
 0x25a   :  { %v3681_v57 = vsel %vm3169_vm7, %v2789_v43, %v3425_v51  ;;  %v5745_v58 = vpack.c.bf16 %v3553_v56, %v3553_v56  ;;  %vm3170_vm8 = vcmp.ge.f32.partialorder %v2792_v53, 0.0  ;;  %v3426_v62 = vmul.f32 0.1, %v2792_v53 }
 0x25b   :  { %v5873_v59 = vpack.c.bf16 %v3681_v57, %v3681_v57  ;;  %v3554_v63 = vsel %vm3042_vm0, %v2280_v52, %v3298_v60 }
 0x25c   :  { %4834 = vst.msk [vmem:[%s8591_s3 + $0x158] sm:$0xf] %vm4747_vm5, %v5745_v58  ;;  %v2284_v0 = vpop.f32.mrb[176].mxu0  ;;  %v2796_v1 = vpop.f32.mrb[176].mxu1  ;;  %v5746_v2 = vpack.c.bf16 %v3554_v63, %v3554_v63  ;;  %v3682_v3 = vsel %vm3170_vm8, %v2792_v53, %v3426_v62 }
 0x25d   :  { %4962 = vst.msk [vmem:[%s8591_s3 + $0x358] sm:$0xf] %vm4747_vm5, %v5873_v59  ;;  %v2285_v4 = vadd.f32 %v8083_v33, %v2284_v0  ;;  %v2797_v5 = vadd.f32 %v8083_v33, %v2796_v1  ;;  %v2286_v6 = vpop.f32.mrb[177].mxu0  ;;  %v2798_v7 = vpop.f32.mrb[177].mxu1  ;;  %v5874_v8 = vpack.c.bf16 %v3682_v3, %v3682_v3 }
 0x25e   :  { %v2287_v9 = vpop.f32.mrb[178].mxu0  ;;  %v2799_v10 = vpop.f32.mrb[178].mxu1  ;;  %4835 = vst.msk [vmem:[%s8591_s3 + $0x15c] sm:$0xf] %vm4747_vm5, %v5746_v2 }
 0x25f   :  { %vm3043_vm9 = vcmp.ge.f32.partialorder %v2285_v4, 0.0  ;;  %v3299_v11 = vmul.f32 0.1, %v2285_v4  ;;  %vm3171_vm10 = vcmp.ge.f32.partialorder %v2797_v5, 0.0  ;;  %v3427_v12 = vmul.f32 0.1, %v2797_v5 }
 0x260   :  { %4963 = vst.msk [vmem:[%s8591_s3 + $0x35c] sm:$0xf] %vm4747_vm5, %v5874_v8  ;;  %v2288_v13 = vadd.f32 %v8083_v33, %v2287_v9  ;;  %v2800_v14 = vadd.f32 %v8083_v33, %v2799_v10  ;;  %v2289_v15 = vpop.f32.mrb[179].mxu0  ;;  %v2801_v16 = vpop.f32.mrb[179].mxu1 }
 0x261   :  { %v3555_v17 = vsel %vm3043_vm9, %v2285_v4, %v3299_v11  ;;  %v3683_v18 = vsel %vm3171_vm10, %v2797_v5, %v3427_v12 }
 0x262   :  { %v5747_v19 = vpack.c.bf16 %v3555_v17, %v3555_v17  ;;  %v5875_v20 = vpack.c.bf16 %v3683_v18, %v3683_v18  ;;  %vm3044_vm11 = vcmp.ge.f32.partialorder %v2288_v13, 0.0  ;;  %v3300_v21 = vmul.f32 0.1, %v2288_v13 }
 0x263   :  { %vm3172_vm12 = vcmp.ge.f32.partialorder %v2800_v14, 0.0  ;;  %v3428_v22 = vmul.f32 0.1, %v2800_v14 }
 0x264   :  { %4836 = vst.msk [vmem:[%s8591_s3 + $0x160] sm:$0xf] %vm4747_vm5, %v5747_v19  ;;  %4964 = vst.msk [vmem:[%s8591_s3 + $0x360] sm:$0xf] %vm4747_vm5, %v5875_v20  ;;  %v3556_v23 = vsel %vm3044_vm11, %v2288_v13, %v3300_v21  ;;  %v2292_v24 = vpop.f32.mrb[180].mxu0  ;;  %v2804_v25 = vpop.f32.mrb[180].mxu1 }
 0x265   :  { %v5748_v26 = vpack.c.bf16 %v3556_v23, %v3556_v23  ;;  %v3684_v27 = vsel %vm3172_vm12, %v2800_v14, %v3428_v22  ;;  %v2293_v28 = vadd.f32 %v8083_v33, %v2292_v24  ;;  %v2805_v47 = vadd.f32 %v8083_v33, %v2804_v25  ;;  %v2294_v29 = vpop.f32.mrb[181].mxu0  ;;  %v2806_v30 = vpop.f32.mrb[181].mxu1 }
 0x266   :  { %v5876_v31 = vpack.c.bf16 %v3684_v27, %v3684_v27  ;;  %v2295_v32 = vpop.f32.mrb[182].mxu0  ;;  %v2807_v34 = vpop.f32.mrb[182].mxu1 }
 0x267   :  { %4837 = vst.msk [vmem:[%s8591_s3 + $0x164] sm:$0xf] %vm4747_vm5, %v5748_v26  ;;  %vm3045_vm13 = vcmp.ge.f32.partialorder %v2293_v28, 0.0  ;;  %v3301_v35 = vmul.f32 0.1, %v2293_v28  ;;  %vm3173_vm14 = vcmp.ge.f32.partialorder %v2805_v47, 0.0  ;;  %v2296_v37 = vadd.f32 %v8083_v33, %v2295_v32 }
 0x268   :  { %v3429_v36 = vmul.f32 0.1, %v2805_v47  ;;  %4965 = vst.msk [vmem:[%s8591_s3 + $0x364] sm:$0xf] %vm4747_vm5, %v5876_v31  ;;  %v2808_v38 = vadd.f32 %v8083_v33, %v2807_v34  ;;  %v2297_v39 = vpop.f32.mrb[183].mxu0  ;;  %v2809_v40 = vpop.f32.mrb[183].mxu1 }
 0x269   :  { %v3557_v41 = vsel %vm3045_vm13, %v2293_v28, %v3301_v35  ;;  %vm3046_vm15 = vcmp.ge.f32.partialorder %v2296_v37, 0.0  ;;  %v3302_v44 = vmul.f32 0.1, %v2296_v37 }
 0x26a   :  { %v3685_v42 = vsel %vm3173_vm14, %v2805_v47, %v3429_v36  ;;  %v5749_v61 = vpack.c.bf16 %v3557_v41, %v3557_v41  ;;  %vm3174_vm1 = vcmp.ge.f32.partialorder %v2808_v38, 0.0  ;;  %v3430_v45 = vmul.f32 0.1, %v2808_v38 }
 0x26b   :  { %v5877_v43 = vpack.c.bf16 %v3685_v42, %v3685_v42  ;;  %v3558_v46 = vsel %vm3046_vm15, %v2296_v37, %v3302_v44 }
 0x26c   :  { %4838 = vst.msk [vmem:[%s8591_s3 + $0x168] sm:$0xf] %vm4747_vm5, %v5749_v61  ;;  %v2300_v48 = vpop.f32.mrb[184].mxu0  ;;  %v2812_v49 = vpop.f32.mrb[184].mxu1  ;;  %v5750_v50 = vpack.c.bf16 %v3558_v46, %v3558_v46  ;;  %v3686_v51 = vsel %vm3174_vm1, %v2808_v38, %v3430_v45 }
 0x26d   :  { %4966 = vst.msk [vmem:[%s8591_s3 + $0x368] sm:$0xf] %vm4747_vm5, %v5877_v43  ;;  %v2301_v52 = vadd.f32 %v8083_v33, %v2300_v48  ;;  %v2813_v53 = vadd.f32 %v8083_v33, %v2812_v49  ;;  %v2302_v54 = vpop.f32.mrb[185].mxu0  ;;  %v2814_v55 = vpop.f32.mrb[185].mxu1  ;;  %v5878_v56 = vpack.c.bf16 %v3686_v51, %v3686_v51 }
 0x26e   :  { %v2303_v57 = vpop.f32.mrb[186].mxu0  ;;  %v2815_v58 = vpop.f32.mrb[186].mxu1  ;;  %4839 = vst.msk [vmem:[%s8591_s3 + $0x16c] sm:$0xf] %vm4747_vm5, %v5750_v50 }
 0x26f   :  { %vm3047_vm2 = vcmp.ge.f32.partialorder %v2301_v52, 0.0  ;;  %v3303_v59 = vmul.f32 0.1, %v2301_v52  ;;  %vm3175_vm3 = vcmp.ge.f32.partialorder %v2813_v53, 0.0  ;;  %v3431_v60 = vmul.f32 0.1, %v2813_v53 }
 0x270   :  { %4967 = vst.msk [vmem:[%s8591_s3 + $0x36c] sm:$0xf] %vm4747_vm5, %v5878_v56  ;;  %v2304_v62 = vadd.f32 %v8083_v33, %v2303_v57  ;;  %v2816_v63 = vadd.f32 %v8083_v33, %v2815_v58  ;;  %v2305_v0 = vpop.f32.mrb[187].mxu0  ;;  %v2817_v1 = vpop.f32.mrb[187].mxu1 }
 0x271   :  { %v3559_v2 = vsel %vm3047_vm2, %v2301_v52, %v3303_v59  ;;  %v3687_v3 = vsel %vm3175_vm3, %v2813_v53, %v3431_v60 }
 0x272   :  { %v5751_v4 = vpack.c.bf16 %v3559_v2, %v3559_v2  ;;  %v5879_v5 = vpack.c.bf16 %v3687_v3, %v3687_v3  ;;  %vm3048_vm4 = vcmp.ge.f32.partialorder %v2304_v62, 0.0  ;;  %v3304_v6 = vmul.f32 0.1, %v2304_v62 }
 0x273   :  { %vm3176_vm6 = vcmp.ge.f32.partialorder %v2816_v63, 0.0  ;;  %v3432_v7 = vmul.f32 0.1, %v2816_v63 }
 0x274   :  { %4840 = vst.msk [vmem:[%s8591_s3 + $0x170] sm:$0xf] %vm4747_vm5, %v5751_v4  ;;  %4968 = vst.msk [vmem:[%s8591_s3 + $0x370] sm:$0xf] %vm4747_vm5, %v5879_v5  ;;  %v3560_v8 = vsel %vm3048_vm4, %v2304_v62, %v3304_v6  ;;  %v2308_v9 = vpop.f32.mrb[188].mxu0  ;;  %v2820_v10 = vpop.f32.mrb[188].mxu1 }
 0x275   :  { %v5752_v11 = vpack.c.bf16 %v3560_v8, %v3560_v8  ;;  %v3688_v12 = vsel %vm3176_vm6, %v2816_v63, %v3432_v7  ;;  %v2309_v13 = vadd.f32 %v8083_v33, %v2308_v9  ;;  %v2821_v14 = vadd.f32 %v8083_v33, %v2820_v10  ;;  %v2310_v15 = vpop.f32.mrb[189].mxu0  ;;  %v2822_v16 = vpop.f32.mrb[189].mxu1 }
 0x276   :  { %v5880_v17 = vpack.c.bf16 %v3688_v12, %v3688_v12  ;;  %v2311_v18 = vpop.f32.mrb[190].mxu0  ;;  %v2823_v19 = vpop.f32.mrb[190].mxu1 }
 0x277   :  { %4841 = vst.msk [vmem:[%s8591_s3 + $0x174] sm:$0xf] %vm4747_vm5, %v5752_v11  ;;  %vm3049_vm7 = vcmp.ge.f32.partialorder %v2309_v13, 0.0  ;;  %v3305_v20 = vmul.f32 0.1, %v2309_v13  ;;  %vm3177_vm0 = vcmp.ge.f32.partialorder %v2821_v14, 0.0  ;;  %v2312_v22 = vadd.f32 %v8083_v33, %v2311_v18 }
 0x278   :  { %v3433_v21 = vmul.f32 0.1, %v2821_v14  ;;  %4969 = vst.msk [vmem:[%s8591_s3 + $0x374] sm:$0xf] %vm4747_vm5, %v5880_v17  ;;  %v2824_v23 = vadd.f32 %v8083_v33, %v2823_v19  ;;  %v2313_v24 = vpop.f32.mrb[191].mxu0  ;;  %v2825_v25 = vpop.f32.mrb[191].mxu1 }
 0x279   :  { %v3561_v26 = vsel %vm3049_vm7, %v2309_v13, %v3305_v20  ;;  %vm3050_vm8 = vcmp.ge.f32.partialorder %v2312_v22, 0.0  ;;  %v3306_v29 = vmul.f32 0.1, %v2312_v22 }
 0x27a   :  { %v3689_v27 = vsel %vm3177_vm0, %v2821_v14, %v3433_v21  ;;  %v5753_v28 = vpack.c.bf16 %v3561_v26, %v3561_v26  ;;  %vm3178_vm9 = vcmp.ge.f32.partialorder %v2824_v23, 0.0  ;;  %v3434_v30 = vmul.f32 0.1, %v2824_v23 }
 0x27b   :  { %v5881_v47 = vpack.c.bf16 %v3689_v27, %v3689_v27  ;;  %v3562_v31 = vsel %vm3050_vm8, %v2312_v22, %v3306_v29 }
 0x27c   :  { %4842 = vst.msk [vmem:[%s8591_s3 + $0x178] sm:$0xf] %vm4747_vm5, %v5753_v28  ;;  %v2316_v32 = vpop.f32.mrb[192].mxu0  ;;  %v2828_v34 = vpop.f32.mrb[192].mxu1  ;;  %v5754_v35 = vpack.c.bf16 %v3562_v31, %v3562_v31  ;;  %v3690_v36 = vsel %vm3178_vm9, %v2824_v23, %v3434_v30 }
 0x27d   :  { %4970 = vst.msk [vmem:[%s8591_s3 + $0x378] sm:$0xf] %vm4747_vm5, %v5881_v47  ;;  %v2317_v37 = vadd.f32 %v8083_v33, %v2316_v32  ;;  %v2829_v38 = vadd.f32 %v8083_v33, %v2828_v34  ;;  %v2318_v39 = vpop.f32.mrb[193].mxu0  ;;  %v2830_v40 = vpop.f32.mrb[193].mxu1  ;;  %v5882_v41 = vpack.c.bf16 %v3690_v36, %v3690_v36 }
 0x27e   :  { %v2319_v42 = vpop.f32.mrb[194].mxu0  ;;  %v2831_v61 = vpop.f32.mrb[194].mxu1  ;;  %4843 = vst.msk [vmem:[%s8591_s3 + $0x17c] sm:$0xf] %vm4747_vm5, %v5754_v35 }
 0x27f   :  { %vm3051_vm10 = vcmp.ge.f32.partialorder %v2317_v37, 0.0  ;;  %v3307_v43 = vmul.f32 0.1, %v2317_v37  ;;  %vm3179_vm11 = vcmp.ge.f32.partialorder %v2829_v38, 0.0  ;;  %v3435_v44 = vmul.f32 0.1, %v2829_v38 }
 0x280   :  { %4971 = vst.msk [vmem:[%s8591_s3 + $0x37c] sm:$0xf] %vm4747_vm5, %v5882_v41  ;;  %v2320_v45 = vadd.f32 %v8083_v33, %v2319_v42  ;;  %v2832_v46 = vadd.f32 %v8083_v33, %v2831_v61  ;;  %v2321_v48 = vpop.f32.mrb[195].mxu0  ;;  %v2833_v49 = vpop.f32.mrb[195].mxu1 }
 0x281   :  { %v3563_v50 = vsel %vm3051_vm10, %v2317_v37, %v3307_v43  ;;  %v3691_v51 = vsel %vm3179_vm11, %v2829_v38, %v3435_v44 }
 0x282   :  { %v5755_v52 = vpack.c.bf16 %v3563_v50, %v3563_v50  ;;  %v5883_v53 = vpack.c.bf16 %v3691_v51, %v3691_v51  ;;  %vm3052_vm12 = vcmp.ge.f32.partialorder %v2320_v45, 0.0  ;;  %v3308_v54 = vmul.f32 0.1, %v2320_v45 }
 0x283   :  { %vm3180_vm13 = vcmp.ge.f32.partialorder %v2832_v46, 0.0  ;;  %v3436_v55 = vmul.f32 0.1, %v2832_v46 }
 0x284   :  { %4844 = vst.msk [vmem:[%s8591_s3 + $0x180] sm:$0xf] %vm4747_vm5, %v5755_v52  ;;  %4972 = vst.msk [vmem:[%s8591_s3 + $0x380] sm:$0xf] %vm4747_vm5, %v5883_v53  ;;  %v3564_v56 = vsel %vm3052_vm12, %v2320_v45, %v3308_v54  ;;  %v2324_v57 = vpop.f32.mrb[196].mxu0  ;;  %v2836_v58 = vpop.f32.mrb[196].mxu1 }
 0x285   :  { %v5756_v59 = vpack.c.bf16 %v3564_v56, %v3564_v56  ;;  %v3692_v60 = vsel %vm3180_vm13, %v2832_v46, %v3436_v55  ;;  %v2325_v62 = vadd.f32 %v8083_v33, %v2324_v57  ;;  %v2837_v63 = vadd.f32 %v8083_v33, %v2836_v58  ;;  %v2326_v0 = vpop.f32.mrb[197].mxu0  ;;  %v2838_v1 = vpop.f32.mrb[197].mxu1 }
 0x286   :  { %v5884_v2 = vpack.c.bf16 %v3692_v60, %v3692_v60  ;;  %v2327_v3 = vpop.f32.mrb[198].mxu0  ;;  %v2839_v4 = vpop.f32.mrb[198].mxu1 }
 0x287   :  { %4845 = vst.msk [vmem:[%s8591_s3 + $0x184] sm:$0xf] %vm4747_vm5, %v5756_v59  ;;  %vm3053_vm14 = vcmp.ge.f32.partialorder %v2325_v62, 0.0  ;;  %v3309_v5 = vmul.f32 0.1, %v2325_v62  ;;  %vm3181_vm15 = vcmp.ge.f32.partialorder %v2837_v63, 0.0  ;;  %v2328_v7 = vadd.f32 %v8083_v33, %v2327_v3 }
 0x288   :  { %v3437_v6 = vmul.f32 0.1, %v2837_v63  ;;  %4973 = vst.msk [vmem:[%s8591_s3 + $0x384] sm:$0xf] %vm4747_vm5, %v5884_v2  ;;  %v2840_v8 = vadd.f32 %v8083_v33, %v2839_v4  ;;  %v2329_v9 = vpop.f32.mrb[199].mxu0  ;;  %v2841_v10 = vpop.f32.mrb[199].mxu1 }
 0x289   :  { %v3565_v11 = vsel %vm3053_vm14, %v2325_v62, %v3309_v5  ;;  %vm3054_vm1 = vcmp.ge.f32.partialorder %v2328_v7, 0.0  ;;  %v3310_v15 = vmul.f32 0.1, %v2328_v7 }
 0x28a   :  { %v3693_v12 = vsel %vm3181_vm15, %v2837_v63, %v3437_v6  ;;  %v5757_v13 = vpack.c.bf16 %v3565_v11, %v3565_v11  ;;  %vm3182_vm2 = vcmp.ge.f32.partialorder %v2840_v8, 0.0  ;;  %v3438_v16 = vmul.f32 0.1, %v2840_v8 }
 0x28b   :  { %v5885_v14 = vpack.c.bf16 %v3693_v12, %v3693_v12  ;;  %v3566_v17 = vsel %vm3054_vm1, %v2328_v7, %v3310_v15 }
 0x28c   :  { %4846 = vst.msk [vmem:[%s8591_s3 + $0x188] sm:$0xf] %vm4747_vm5, %v5757_v13  ;;  %v2332_v18 = vpop.f32.mrb[200].mxu0  ;;  %v2844_v19 = vpop.f32.mrb[200].mxu1  ;;  %v5758_v20 = vpack.c.bf16 %v3566_v17, %v3566_v17  ;;  %v3694_v21 = vsel %vm3182_vm2, %v2840_v8, %v3438_v16 }
 0x28d   :  { %4974 = vst.msk [vmem:[%s8591_s3 + $0x388] sm:$0xf] %vm4747_vm5, %v5885_v14  ;;  %v2333_v22 = vadd.f32 %v8083_v33, %v2332_v18  ;;  %v2845_v23 = vadd.f32 %v8083_v33, %v2844_v19  ;;  %v2334_v24 = vpop.f32.mrb[201].mxu0  ;;  %v2846_v25 = vpop.f32.mrb[201].mxu1  ;;  %v5886_v26 = vpack.c.bf16 %v3694_v21, %v3694_v21 }
 0x28e   :  { %v2335_v27 = vpop.f32.mrb[202].mxu0  ;;  %v2847_v28 = vpop.f32.mrb[202].mxu1  ;;  %4847 = vst.msk [vmem:[%s8591_s3 + $0x18c] sm:$0xf] %vm4747_vm5, %v5758_v20 }
 0x28f   :  { %vm3055_vm3 = vcmp.ge.f32.partialorder %v2333_v22, 0.0  ;;  %v3311_v47 = vmul.f32 0.1, %v2333_v22  ;;  %vm3183_vm4 = vcmp.ge.f32.partialorder %v2845_v23, 0.0  ;;  %v3439_v29 = vmul.f32 0.1, %v2845_v23 }
 0x290   :  { %4975 = vst.msk [vmem:[%s8591_s3 + $0x38c] sm:$0xf] %vm4747_vm5, %v5886_v26  ;;  %v2336_v30 = vadd.f32 %v8083_v33, %v2335_v27  ;;  %v2848_v31 = vadd.f32 %v8083_v33, %v2847_v28  ;;  %v2337_v32 = vpop.f32.mrb[203].mxu0  ;;  %v2849_v34 = vpop.f32.mrb[203].mxu1 }
 0x291   :  { %v3567_v35 = vsel %vm3055_vm3, %v2333_v22, %v3311_v47  ;;  %v3695_v36 = vsel %vm3183_vm4, %v2845_v23, %v3439_v29 }
 0x292   :  { %v5759_v37 = vpack.c.bf16 %v3567_v35, %v3567_v35  ;;  %v5887_v38 = vpack.c.bf16 %v3695_v36, %v3695_v36  ;;  %vm3056_vm6 = vcmp.ge.f32.partialorder %v2336_v30, 0.0  ;;  %v3312_v39 = vmul.f32 0.1, %v2336_v30 }
 0x293   :  { %vm3184_vm7 = vcmp.ge.f32.partialorder %v2848_v31, 0.0  ;;  %v3440_v40 = vmul.f32 0.1, %v2848_v31 }
 0x294   :  { %4848 = vst.msk [vmem:[%s8591_s3 + $0x190] sm:$0xf] %vm4747_vm5, %v5759_v37  ;;  %4976 = vst.msk [vmem:[%s8591_s3 + $0x390] sm:$0xf] %vm4747_vm5, %v5887_v38  ;;  %v3568_v41 = vsel %vm3056_vm6, %v2336_v30, %v3312_v39  ;;  %v2340_v42 = vpop.f32.mrb[204].mxu0  ;;  %v2852_v61 = vpop.f32.mrb[204].mxu1 }
 0x295   :  { %v5760_v43 = vpack.c.bf16 %v3568_v41, %v3568_v41  ;;  %v3696_v44 = vsel %vm3184_vm7, %v2848_v31, %v3440_v40  ;;  %v2341_v45 = vadd.f32 %v8083_v33, %v2340_v42  ;;  %v2853_v46 = vadd.f32 %v8083_v33, %v2852_v61  ;;  %v2342_v48 = vpop.f32.mrb[205].mxu0  ;;  %v2854_v49 = vpop.f32.mrb[205].mxu1 }
 0x296   :  { %v5888_v50 = vpack.c.bf16 %v3696_v44, %v3696_v44  ;;  %v2343_v51 = vpop.f32.mrb[206].mxu0  ;;  %v2855_v52 = vpop.f32.mrb[206].mxu1 }
 0x297   :  { %4849 = vst.msk [vmem:[%s8591_s3 + $0x194] sm:$0xf] %vm4747_vm5, %v5760_v43  ;;  %vm3057_vm0 = vcmp.ge.f32.partialorder %v2341_v45, 0.0  ;;  %v3313_v53 = vmul.f32 0.1, %v2341_v45  ;;  %vm3185_vm8 = vcmp.ge.f32.partialorder %v2853_v46, 0.0  ;;  %v2344_v55 = vadd.f32 %v8083_v33, %v2343_v51 }
 0x298   :  { %v3441_v54 = vmul.f32 0.1, %v2853_v46  ;;  %4977 = vst.msk [vmem:[%s8591_s3 + $0x394] sm:$0xf] %vm4747_vm5, %v5888_v50  ;;  %v2856_v56 = vadd.f32 %v8083_v33, %v2855_v52  ;;  %v2345_v57 = vpop.f32.mrb[207].mxu0  ;;  %v2857_v58 = vpop.f32.mrb[207].mxu1 }
 0x299   :  { %v3569_v59 = vsel %vm3057_vm0, %v2341_v45, %v3313_v53  ;;  %vm3058_vm9 = vcmp.ge.f32.partialorder %v2344_v55, 0.0  ;;  %v3314_v0 = vmul.f32 0.1, %v2344_v55 }
 0x29a   :  { %v3697_v60 = vsel %vm3185_vm8, %v2853_v46, %v3441_v54  ;;  %v5761_v62 = vpack.c.bf16 %v3569_v59, %v3569_v59  ;;  %vm3186_vm10 = vcmp.ge.f32.partialorder %v2856_v56, 0.0  ;;  %v3442_v1 = vmul.f32 0.1, %v2856_v56 }
 0x29b   :  { %v5889_v63 = vpack.c.bf16 %v3697_v60, %v3697_v60  ;;  %v3570_v2 = vsel %vm3058_vm9, %v2344_v55, %v3314_v0 }
 0x29c   :  { %4850 = vst.msk [vmem:[%s8591_s3 + $0x198] sm:$0xf] %vm4747_vm5, %v5761_v62  ;;  %v2348_v3 = vpop.f32.mrb[208].mxu0  ;;  %v2860_v4 = vpop.f32.mrb[208].mxu1  ;;  %v5762_v5 = vpack.c.bf16 %v3570_v2, %v3570_v2  ;;  %v3698_v6 = vsel %vm3186_vm10, %v2856_v56, %v3442_v1 }
 0x29d   :  { %4978 = vst.msk [vmem:[%s8591_s3 + $0x398] sm:$0xf] %vm4747_vm5, %v5889_v63  ;;  %v2349_v7 = vadd.f32 %v8083_v33, %v2348_v3  ;;  %v2861_v8 = vadd.f32 %v8083_v33, %v2860_v4  ;;  %v2350_v9 = vpop.f32.mrb[209].mxu0  ;;  %v2862_v10 = vpop.f32.mrb[209].mxu1  ;;  %v5890_v11 = vpack.c.bf16 %v3698_v6, %v3698_v6 }
 0x29e   :  { %v2351_v12 = vpop.f32.mrb[210].mxu0  ;;  %v2863_v13 = vpop.f32.mrb[210].mxu1  ;;  %4851 = vst.msk [vmem:[%s8591_s3 + $0x19c] sm:$0xf] %vm4747_vm5, %v5762_v5 }
 0x29f   :  { %vm3059_vm11 = vcmp.ge.f32.partialorder %v2349_v7, 0.0  ;;  %v3315_v14 = vmul.f32 0.1, %v2349_v7  ;;  %vm3187_vm12 = vcmp.ge.f32.partialorder %v2861_v8, 0.0  ;;  %v3443_v15 = vmul.f32 0.1, %v2861_v8 }
 0x2a0   :  { %4979 = vst.msk [vmem:[%s8591_s3 + $0x39c] sm:$0xf] %vm4747_vm5, %v5890_v11  ;;  %v2352_v16 = vadd.f32 %v8083_v33, %v2351_v12  ;;  %v2864_v17 = vadd.f32 %v8083_v33, %v2863_v13  ;;  %v2353_v18 = vpop.f32.mrb[211].mxu0  ;;  %v2865_v19 = vpop.f32.mrb[211].mxu1 }
 0x2a1   :  { %v3571_v20 = vsel %vm3059_vm11, %v2349_v7, %v3315_v14  ;;  %v3699_v21 = vsel %vm3187_vm12, %v2861_v8, %v3443_v15 }
 0x2a2   :  { %v5763_v22 = vpack.c.bf16 %v3571_v20, %v3571_v20  ;;  %v5891_v23 = vpack.c.bf16 %v3699_v21, %v3699_v21  ;;  %vm3060_vm13 = vcmp.ge.f32.partialorder %v2352_v16, 0.0  ;;  %v3316_v24 = vmul.f32 0.1, %v2352_v16 }
 0x2a3   :  { %vm3188_vm14 = vcmp.ge.f32.partialorder %v2864_v17, 0.0  ;;  %v3444_v25 = vmul.f32 0.1, %v2864_v17 }
 0x2a4   :  { %4852 = vst.msk [vmem:[%s8591_s3 + $0x1a0] sm:$0xf] %vm4747_vm5, %v5763_v22  ;;  %4980 = vst.msk [vmem:[%s8591_s3 + $0x3a0] sm:$0xf] %vm4747_vm5, %v5891_v23  ;;  %v3572_v26 = vsel %vm3060_vm13, %v2352_v16, %v3316_v24  ;;  %v2356_v27 = vpop.f32.mrb[212].mxu0  ;;  %v2868_v28 = vpop.f32.mrb[212].mxu1 }
 0x2a5   :  { %v5764_v47 = vpack.c.bf16 %v3572_v26, %v3572_v26  ;;  %v3700_v29 = vsel %vm3188_vm14, %v2864_v17, %v3444_v25  ;;  %v2357_v30 = vadd.f32 %v8083_v33, %v2356_v27  ;;  %v2869_v31 = vadd.f32 %v8083_v33, %v2868_v28  ;;  %v2358_v32 = vpop.f32.mrb[213].mxu0  ;;  %v2870_v34 = vpop.f32.mrb[213].mxu1 }
 0x2a6   :  { %v5892_v35 = vpack.c.bf16 %v3700_v29, %v3700_v29  ;;  %v2359_v36 = vpop.f32.mrb[214].mxu0  ;;  %v2871_v37 = vpop.f32.mrb[214].mxu1 }
 0x2a7   :  { %4853 = vst.msk [vmem:[%s8591_s3 + $0x1a4] sm:$0xf] %vm4747_vm5, %v5764_v47  ;;  %vm3061_vm15 = vcmp.ge.f32.partialorder %v2357_v30, 0.0  ;;  %v3317_v38 = vmul.f32 0.1, %v2357_v30  ;;  %vm3189_vm1 = vcmp.ge.f32.partialorder %v2869_v31, 0.0  ;;  %v2360_v40 = vadd.f32 %v8083_v33, %v2359_v36 }
 0x2a8   :  { %v3445_v39 = vmul.f32 0.1, %v2869_v31  ;;  %4981 = vst.msk [vmem:[%s8591_s3 + $0x3a4] sm:$0xf] %vm4747_vm5, %v5892_v35  ;;  %v2872_v41 = vadd.f32 %v8083_v33, %v2871_v37  ;;  %v2361_v42 = vpop.f32.mrb[215].mxu0  ;;  %v2873_v61 = vpop.f32.mrb[215].mxu1 }
 0x2a9   :  { %v3573_v43 = vsel %vm3061_vm15, %v2357_v30, %v3317_v38  ;;  %vm3062_vm2 = vcmp.ge.f32.partialorder %v2360_v40, 0.0  ;;  %v3318_v48 = vmul.f32 0.1, %v2360_v40 }
 0x2aa   :  { %v3701_v44 = vsel %vm3189_vm1, %v2869_v31, %v3445_v39  ;;  %v5765_v45 = vpack.c.bf16 %v3573_v43, %v3573_v43  ;;  %vm3190_vm3 = vcmp.ge.f32.partialorder %v2872_v41, 0.0  ;;  %v3446_v49 = vmul.f32 0.1, %v2872_v41 }
 0x2ab   :  { %v5893_v46 = vpack.c.bf16 %v3701_v44, %v3701_v44  ;;  %v3574_v50 = vsel %vm3062_vm2, %v2360_v40, %v3318_v48 }
 0x2ac   :  { %4854 = vst.msk [vmem:[%s8591_s3 + $0x1a8] sm:$0xf] %vm4747_vm5, %v5765_v45  ;;  %v2364_v51 = vpop.f32.mrb[216].mxu0  ;;  %v2876_v52 = vpop.f32.mrb[216].mxu1  ;;  %v5766_v53 = vpack.c.bf16 %v3574_v50, %v3574_v50  ;;  %v3702_v54 = vsel %vm3190_vm3, %v2872_v41, %v3446_v49 }
 0x2ad   :  { %4982 = vst.msk [vmem:[%s8591_s3 + $0x3a8] sm:$0xf] %vm4747_vm5, %v5893_v46  ;;  %v2365_v55 = vadd.f32 %v8083_v33, %v2364_v51  ;;  %v2877_v56 = vadd.f32 %v8083_v33, %v2876_v52  ;;  %v2366_v57 = vpop.f32.mrb[217].mxu0  ;;  %v2878_v58 = vpop.f32.mrb[217].mxu1  ;;  %v5894_v59 = vpack.c.bf16 %v3702_v54, %v3702_v54 }
 0x2ae   :  { %v2367_v60 = vpop.f32.mrb[218].mxu0  ;;  %v2879_v62 = vpop.f32.mrb[218].mxu1  ;;  %4855 = vst.msk [vmem:[%s8591_s3 + $0x1ac] sm:$0xf] %vm4747_vm5, %v5766_v53 }
 0x2af   :  { %vm3063_vm4 = vcmp.ge.f32.partialorder %v2365_v55, 0.0  ;;  %v3319_v63 = vmul.f32 0.1, %v2365_v55  ;;  %vm3191_vm6 = vcmp.ge.f32.partialorder %v2877_v56, 0.0  ;;  %v3447_v0 = vmul.f32 0.1, %v2877_v56 }
 0x2b0   :  { %4983 = vst.msk [vmem:[%s8591_s3 + $0x3ac] sm:$0xf] %vm4747_vm5, %v5894_v59  ;;  %v2368_v1 = vadd.f32 %v8083_v33, %v2367_v60  ;;  %v2880_v2 = vadd.f32 %v8083_v33, %v2879_v62  ;;  %v2369_v3 = vpop.f32.mrb[219].mxu0  ;;  %v2881_v4 = vpop.f32.mrb[219].mxu1 }
 0x2b1   :  { %v3575_v5 = vsel %vm3063_vm4, %v2365_v55, %v3319_v63  ;;  %v3703_v6 = vsel %vm3191_vm6, %v2877_v56, %v3447_v0 }
 0x2b2   :  { %v5767_v7 = vpack.c.bf16 %v3575_v5, %v3575_v5  ;;  %v5895_v8 = vpack.c.bf16 %v3703_v6, %v3703_v6  ;;  %vm3064_vm7 = vcmp.ge.f32.partialorder %v2368_v1, 0.0  ;;  %v3320_v9 = vmul.f32 0.1, %v2368_v1 }
 0x2b3   :  { %vm3192_vm0 = vcmp.ge.f32.partialorder %v2880_v2, 0.0  ;;  %v3448_v10 = vmul.f32 0.1, %v2880_v2 }
 0x2b4   :  { %4856 = vst.msk [vmem:[%s8591_s3 + $0x1b0] sm:$0xf] %vm4747_vm5, %v5767_v7  ;;  %4984 = vst.msk [vmem:[%s8591_s3 + $0x3b0] sm:$0xf] %vm4747_vm5, %v5895_v8  ;;  %v3576_v11 = vsel %vm3064_vm7, %v2368_v1, %v3320_v9  ;;  %v2372_v12 = vpop.f32.mrb[220].mxu0  ;;  %v2884_v13 = vpop.f32.mrb[220].mxu1 }
 0x2b5   :  { %v5768_v14 = vpack.c.bf16 %v3576_v11, %v3576_v11  ;;  %v3704_v15 = vsel %vm3192_vm0, %v2880_v2, %v3448_v10  ;;  %v2373_v16 = vadd.f32 %v8083_v33, %v2372_v12  ;;  %v2885_v17 = vadd.f32 %v8083_v33, %v2884_v13  ;;  %v2374_v18 = vpop.f32.mrb[221].mxu0  ;;  %v2886_v19 = vpop.f32.mrb[221].mxu1  ;;  %v8408_v33 = vld [vmem:[%s8590_s2] ss:$0 sm:$0xff] }
 0x2b6   :  { %v5896_v20 = vpack.c.bf16 %v3704_v15, %v3704_v15  ;;  %v2375_v21 = vpop.f32.mrb[222].mxu0  ;;  %v2887_v22 = vpop.f32.mrb[222].mxu1 }
 0x2b7   :  { %4857 = vst.msk [vmem:[%s8591_s3 + $0x1b4] sm:$0xf] %vm4747_vm5, %v5768_v14  ;;  %vm3065_vm8 = vcmp.ge.f32.partialorder %v2373_v16, 0.0  ;;  %v3321_v23 = vmul.f32 0.1, %v2373_v16  ;;  %vm3193_vm9 = vcmp.ge.f32.partialorder %v2885_v17, 0.0  ;;  %v2376_v25 = vadd.f32 %v8408_v33, %v2375_v21 }
 0x2b8   :  { %v3449_v24 = vmul.f32 0.1, %v2885_v17  ;;  %4985 = vst.msk [vmem:[%s8591_s3 + $0x3b4] sm:$0xf] %vm4747_vm5, %v5896_v20  ;;  %v2888_v26 = vadd.f32 %v8408_v33, %v2887_v22  ;;  %v2377_v27 = vpop.f32.mrb[223].mxu0  ;;  %v2889_v28 = vpop.f32.mrb[223].mxu1 }
 0x2b9   :  { %v3577_v47 = vsel %vm3065_vm8, %v2373_v16, %v3321_v23  ;;  %vm3066_vm10 = vcmp.ge.f32.partialorder %v2376_v25, 0.0  ;;  %v3322_v32 = vmul.f32 0.1, %v2376_v25 }
 0x2ba   :  { %v3705_v29 = vsel %vm3193_vm9, %v2885_v17, %v3449_v24  ;;  %v5769_v30 = vpack.c.bf16 %v3577_v47, %v3577_v47  ;;  %vm3194_vm11 = vcmp.ge.f32.partialorder %v2888_v26, 0.0  ;;  %v3450_v34 = vmul.f32 0.1, %v2888_v26 }
 0x2bb   :  { %v5897_v31 = vpack.c.bf16 %v3705_v29, %v3705_v29  ;;  %v3578_v35 = vsel %vm3066_vm10, %v2376_v25, %v3322_v32 }
 0x2bc   :  { %4858 = vst.msk [vmem:[%s8591_s3 + $0x1b8] sm:$0xf] %vm4747_vm5, %v5769_v30  ;;  %v2380_v36 = vpop.f32.mrb[224].mxu0  ;;  %v2892_v37 = vpop.f32.mrb[224].mxu1  ;;  %v5770_v38 = vpack.c.bf16 %v3578_v35, %v3578_v35  ;;  %v3706_v39 = vsel %vm3194_vm11, %v2888_v26, %v3450_v34 }
 0x2bd   :  { %4986 = vst.msk [vmem:[%s8591_s3 + $0x3b8] sm:$0xf] %vm4747_vm5, %v5897_v31  ;;  %v2381_v40 = vadd.f32 %v8408_v33, %v2380_v36  ;;  %v2893_v41 = vadd.f32 %v8408_v33, %v2892_v37  ;;  %v2382_v42 = vpop.f32.mrb[225].mxu0  ;;  %v2894_v61 = vpop.f32.mrb[225].mxu1  ;;  %v5898_v43 = vpack.c.bf16 %v3706_v39, %v3706_v39 }
 0x2be   :  { %v2383_v44 = vpop.f32.mrb[226].mxu0  ;;  %v2895_v45 = vpop.f32.mrb[226].mxu1  ;;  %4859 = vst.msk [vmem:[%s8591_s3 + $0x1bc] sm:$0xf] %vm4747_vm5, %v5770_v38 }
 0x2bf   :  { %vm3067_vm12 = vcmp.ge.f32.partialorder %v2381_v40, 0.0  ;;  %v3323_v46 = vmul.f32 0.1, %v2381_v40  ;;  %vm3195_vm13 = vcmp.ge.f32.partialorder %v2893_v41, 0.0  ;;  %v3451_v48 = vmul.f32 0.1, %v2893_v41 }
 0x2c0   :  { %4987 = vst.msk [vmem:[%s8591_s3 + $0x3bc] sm:$0xf] %vm4747_vm5, %v5898_v43  ;;  %v2384_v49 = vadd.f32 %v8408_v33, %v2383_v44  ;;  %v2896_v50 = vadd.f32 %v8408_v33, %v2895_v45  ;;  %v2385_v51 = vpop.f32.mrb[227].mxu0  ;;  %v2897_v52 = vpop.f32.mrb[227].mxu1 }
 0x2c1   :  { %v3579_v53 = vsel %vm3067_vm12, %v2381_v40, %v3323_v46  ;;  %v3707_v54 = vsel %vm3195_vm13, %v2893_v41, %v3451_v48 }
 0x2c2   :  { %v5771_v55 = vpack.c.bf16 %v3579_v53, %v3579_v53  ;;  %v5899_v56 = vpack.c.bf16 %v3707_v54, %v3707_v54  ;;  %vm3068_vm14 = vcmp.ge.f32.partialorder %v2384_v49, 0.0  ;;  %v3324_v57 = vmul.f32 0.1, %v2384_v49 }
 0x2c3   :  { %vm3196_vm15 = vcmp.ge.f32.partialorder %v2896_v50, 0.0  ;;  %v3452_v58 = vmul.f32 0.1, %v2896_v50 }
 0x2c4   :  { %4860 = vst.msk [vmem:[%s8591_s3 + $0x1c0] sm:$0xf] %vm4747_vm5, %v5771_v55  ;;  %4988 = vst.msk [vmem:[%s8591_s3 + $0x3c0] sm:$0xf] %vm4747_vm5, %v5899_v56  ;;  %v3580_v59 = vsel %vm3068_vm14, %v2384_v49, %v3324_v57  ;;  %v2388_v60 = vpop.f32.mrb[228].mxu0  ;;  %v2900_v62 = vpop.f32.mrb[228].mxu1 }
 0x2c5   :  { %v5772_v63 = vpack.c.bf16 %v3580_v59, %v3580_v59  ;;  %v3708_v0 = vsel %vm3196_vm15, %v2896_v50, %v3452_v58  ;;  %v2389_v1 = vadd.f32 %v8408_v33, %v2388_v60  ;;  %v2901_v2 = vadd.f32 %v8408_v33, %v2900_v62  ;;  %v2390_v3 = vpop.f32.mrb[229].mxu0  ;;  %v2902_v4 = vpop.f32.mrb[229].mxu1 }
 0x2c6   :  { %v5900_v5 = vpack.c.bf16 %v3708_v0, %v3708_v0  ;;  %v2391_v6 = vpop.f32.mrb[230].mxu0  ;;  %v2903_v7 = vpop.f32.mrb[230].mxu1 }
 0x2c7   :  { %4861 = vst.msk [vmem:[%s8591_s3 + $0x1c4] sm:$0xf] %vm4747_vm5, %v5772_v63  ;;  %vm3069_vm1 = vcmp.ge.f32.partialorder %v2389_v1, 0.0  ;;  %v3325_v8 = vmul.f32 0.1, %v2389_v1  ;;  %vm3197_vm2 = vcmp.ge.f32.partialorder %v2901_v2, 0.0  ;;  %v2392_v10 = vadd.f32 %v8408_v33, %v2391_v6 }
 0x2c8   :  { %v3453_v9 = vmul.f32 0.1, %v2901_v2  ;;  %4989 = vst.msk [vmem:[%s8591_s3 + $0x3c4] sm:$0xf] %vm4747_vm5, %v5900_v5  ;;  %v2904_v11 = vadd.f32 %v8408_v33, %v2903_v7  ;;  %v2393_v12 = vpop.f32.mrb[231].mxu0  ;;  %v2905_v13 = vpop.f32.mrb[231].mxu1 }
 0x2c9   :  { %v3581_v14 = vsel %vm3069_vm1, %v2389_v1, %v3325_v8  ;;  %vm3070_vm3 = vcmp.ge.f32.partialorder %v2392_v10, 0.0  ;;  %v3326_v18 = vmul.f32 0.1, %v2392_v10 }
 0x2ca   :  { %v3709_v15 = vsel %vm3197_vm2, %v2901_v2, %v3453_v9  ;;  %v5773_v16 = vpack.c.bf16 %v3581_v14, %v3581_v14  ;;  %vm3198_vm4 = vcmp.ge.f32.partialorder %v2904_v11, 0.0  ;;  %v3454_v19 = vmul.f32 0.1, %v2904_v11 }
 0x2cb   :  { %v5901_v17 = vpack.c.bf16 %v3709_v15, %v3709_v15  ;;  %v3582_v20 = vsel %vm3070_vm3, %v2392_v10, %v3326_v18 }
 0x2cc   :  { %4862 = vst.msk [vmem:[%s8591_s3 + $0x1c8] sm:$0xf] %vm4747_vm5, %v5773_v16  ;;  %v2396_v21 = vpop.f32.mrb[232].mxu0  ;;  %v2908_v22 = vpop.f32.mrb[232].mxu1  ;;  %v5774_v23 = vpack.c.bf16 %v3582_v20, %v3582_v20  ;;  %v3710_v24 = vsel %vm3198_vm4, %v2904_v11, %v3454_v19 }
 0x2cd   :  { %4990 = vst.msk [vmem:[%s8591_s3 + $0x3c8] sm:$0xf] %vm4747_vm5, %v5901_v17  ;;  %v2397_v25 = vadd.f32 %v8408_v33, %v2396_v21  ;;  %v2909_v26 = vadd.f32 %v8408_v33, %v2908_v22  ;;  %v2398_v27 = vpop.f32.mrb[233].mxu0  ;;  %v2910_v28 = vpop.f32.mrb[233].mxu1  ;;  %v5902_v47 = vpack.c.bf16 %v3710_v24, %v3710_v24 }
 0x2ce   :  { %v2399_v29 = vpop.f32.mrb[234].mxu0  ;;  %v2911_v30 = vpop.f32.mrb[234].mxu1  ;;  %4863 = vst.msk [vmem:[%s8591_s3 + $0x1cc] sm:$0xf] %vm4747_vm5, %v5774_v23 }
 0x2cf   :  { %vm3071_vm6 = vcmp.ge.f32.partialorder %v2397_v25, 0.0  ;;  %v3327_v31 = vmul.f32 0.1, %v2397_v25  ;;  %vm3199_vm7 = vcmp.ge.f32.partialorder %v2909_v26, 0.0  ;;  %v3455_v32 = vmul.f32 0.1, %v2909_v26 }
 0x2d0   :  { %4991 = vst.msk [vmem:[%s8591_s3 + $0x3cc] sm:$0xf] %vm4747_vm5, %v5902_v47  ;;  %v2400_v34 = vadd.f32 %v8408_v33, %v2399_v29  ;;  %v2912_v35 = vadd.f32 %v8408_v33, %v2911_v30  ;;  %v2401_v36 = vpop.f32.mrb[235].mxu0  ;;  %v2913_v37 = vpop.f32.mrb[235].mxu1 }
 0x2d1   :  { %v3583_v38 = vsel %vm3071_vm6, %v2397_v25, %v3327_v31  ;;  %v3711_v39 = vsel %vm3199_vm7, %v2909_v26, %v3455_v32 }
 0x2d2   :  { %v5775_v40 = vpack.c.bf16 %v3583_v38, %v3583_v38  ;;  %v5903_v41 = vpack.c.bf16 %v3711_v39, %v3711_v39  ;;  %vm3072_vm0 = vcmp.ge.f32.partialorder %v2400_v34, 0.0  ;;  %v3328_v42 = vmul.f32 0.1, %v2400_v34 }
 0x2d3   :  { %vm3200_vm8 = vcmp.ge.f32.partialorder %v2912_v35, 0.0  ;;  %v3456_v61 = vmul.f32 0.1, %v2912_v35 }
 0x2d4   :  { %4864 = vst.msk [vmem:[%s8591_s3 + $0x1d0] sm:$0xf] %vm4747_vm5, %v5775_v40  ;;  %4992 = vst.msk [vmem:[%s8591_s3 + $0x3d0] sm:$0xf] %vm4747_vm5, %v5903_v41  ;;  %v3584_v43 = vsel %vm3072_vm0, %v2400_v34, %v3328_v42  ;;  %v2404_v44 = vpop.f32.mrb[236].mxu0  ;;  %v2916_v45 = vpop.f32.mrb[236].mxu1 }
 0x2d5   :  { %v5776_v46 = vpack.c.bf16 %v3584_v43, %v3584_v43  ;;  %v3712_v48 = vsel %vm3200_vm8, %v2912_v35, %v3456_v61  ;;  %v2405_v49 = vadd.f32 %v8408_v33, %v2404_v44  ;;  %v2917_v50 = vadd.f32 %v8408_v33, %v2916_v45  ;;  %v2406_v51 = vpop.f32.mrb[237].mxu0  ;;  %v2918_v52 = vpop.f32.mrb[237].mxu1 }
 0x2d6   :  { %v5904_v53 = vpack.c.bf16 %v3712_v48, %v3712_v48  ;;  %v2407_v54 = vpop.f32.mrb[238].mxu0  ;;  %v2919_v55 = vpop.f32.mrb[238].mxu1 }
 0x2d7   :  { %4865 = vst.msk [vmem:[%s8591_s3 + $0x1d4] sm:$0xf] %vm4747_vm5, %v5776_v46  ;;  %vm3073_vm9 = vcmp.ge.f32.partialorder %v2405_v49, 0.0  ;;  %v3329_v56 = vmul.f32 0.1, %v2405_v49  ;;  %vm3201_vm10 = vcmp.ge.f32.partialorder %v2917_v50, 0.0  ;;  %v2408_v58 = vadd.f32 %v8408_v33, %v2407_v54 }
 0x2d8   :  { %v3457_v57 = vmul.f32 0.1, %v2917_v50  ;;  %4993 = vst.msk [vmem:[%s8591_s3 + $0x3d4] sm:$0xf] %vm4747_vm5, %v5904_v53  ;;  %v2920_v59 = vadd.f32 %v8408_v33, %v2919_v55  ;;  %v2409_v60 = vpop.f32.mrb[239].mxu0  ;;  %v2921_v62 = vpop.f32.mrb[239].mxu1 }
 0x2d9   :  { %v3585_v63 = vsel %vm3073_vm9, %v2405_v49, %v3329_v56  ;;  %vm3074_vm11 = vcmp.ge.f32.partialorder %v2408_v58, 0.0  ;;  %v3330_v3 = vmul.f32 0.1, %v2408_v58 }
 0x2da   :  { %v3713_v0 = vsel %vm3201_vm10, %v2917_v50, %v3457_v57  ;;  %v5777_v1 = vpack.c.bf16 %v3585_v63, %v3585_v63  ;;  %vm3202_vm12 = vcmp.ge.f32.partialorder %v2920_v59, 0.0  ;;  %v3458_v4 = vmul.f32 0.1, %v2920_v59 }
 0x2db   :  { %v5905_v2 = vpack.c.bf16 %v3713_v0, %v3713_v0  ;;  %v3586_v5 = vsel %vm3074_vm11, %v2408_v58, %v3330_v3 }
 0x2dc   :  { %4866 = vst.msk [vmem:[%s8591_s3 + $0x1d8] sm:$0xf] %vm4747_vm5, %v5777_v1  ;;  %v2412_v6 = vpop.f32.mrb[240].mxu0  ;;  %v2924_v7 = vpop.f32.mrb[240].mxu1  ;;  %v5778_v8 = vpack.c.bf16 %v3586_v5, %v3586_v5  ;;  %v3714_v9 = vsel %vm3202_vm12, %v2920_v59, %v3458_v4 }
 0x2dd   :  { %4994 = vst.msk [vmem:[%s8591_s3 + $0x3d8] sm:$0xf] %vm4747_vm5, %v5905_v2  ;;  %v2413_v10 = vadd.f32 %v8408_v33, %v2412_v6  ;;  %v2925_v11 = vadd.f32 %v8408_v33, %v2924_v7  ;;  %v2414_v12 = vpop.f32.mrb[241].mxu0  ;;  %v2926_v13 = vpop.f32.mrb[241].mxu1  ;;  %v5906_v14 = vpack.c.bf16 %v3714_v9, %v3714_v9 }
 0x2de   :  { %v2415_v15 = vpop.f32.mrb[242].mxu0  ;;  %v2927_v16 = vpop.f32.mrb[242].mxu1  ;;  %4867 = vst.msk [vmem:[%s8591_s3 + $0x1dc] sm:$0xf] %vm4747_vm5, %v5778_v8 }
 0x2df   :  { %vm3075_vm13 = vcmp.ge.f32.partialorder %v2413_v10, 0.0  ;;  %v3331_v17 = vmul.f32 0.1, %v2413_v10  ;;  %vm3203_vm14 = vcmp.ge.f32.partialorder %v2925_v11, 0.0  ;;  %v3459_v18 = vmul.f32 0.1, %v2925_v11 }
 0x2e0   :  { %4995 = vst.msk [vmem:[%s8591_s3 + $0x3dc] sm:$0xf] %vm4747_vm5, %v5906_v14  ;;  %v2416_v19 = vadd.f32 %v8408_v33, %v2415_v15  ;;  %v2928_v20 = vadd.f32 %v8408_v33, %v2927_v16  ;;  %v2417_v21 = vpop.f32.mrb[243].mxu0  ;;  %v2929_v22 = vpop.f32.mrb[243].mxu1 }
 0x2e1   :  { %v3587_v23 = vsel %vm3075_vm13, %v2413_v10, %v3331_v17  ;;  %v3715_v24 = vsel %vm3203_vm14, %v2925_v11, %v3459_v18 }
 0x2e2   :  { %v5779_v25 = vpack.c.bf16 %v3587_v23, %v3587_v23  ;;  %v5907_v26 = vpack.c.bf16 %v3715_v24, %v3715_v24  ;;  %vm3076_vm15 = vcmp.ge.f32.partialorder %v2416_v19, 0.0  ;;  %v3332_v27 = vmul.f32 0.1, %v2416_v19 }
 0x2e3   :  { %vm3204_vm1 = vcmp.ge.f32.partialorder %v2928_v20, 0.0  ;;  %v3460_v28 = vmul.f32 0.1, %v2928_v20 }
 0x2e4   :  { %4868 = vst.msk [vmem:[%s8591_s3 + $0x1e0] sm:$0xf] %vm4747_vm5, %v5779_v25  ;;  %4996 = vst.msk [vmem:[%s8591_s3 + $0x3e0] sm:$0xf] %vm4747_vm5, %v5907_v26  ;;  %v3588_v47 = vsel %vm3076_vm15, %v2416_v19, %v3332_v27  ;;  %v2420_v29 = vpop.f32.mrb[244].mxu0  ;;  %v2932_v30 = vpop.f32.mrb[244].mxu1 }
 0x2e5   :  { %v5780_v31 = vpack.c.bf16 %v3588_v47, %v3588_v47  ;;  %v3716_v32 = vsel %vm3204_vm1, %v2928_v20, %v3460_v28  ;;  %v2421_v34 = vadd.f32 %v8408_v33, %v2420_v29  ;;  %v2933_v35 = vadd.f32 %v8408_v33, %v2932_v30  ;;  %v2422_v36 = vpop.f32.mrb[245].mxu0  ;;  %v2934_v37 = vpop.f32.mrb[245].mxu1 }
 0x2e6   :  { %v5908_v38 = vpack.c.bf16 %v3716_v32, %v3716_v32  ;;  %v2423_v39 = vpop.f32.mrb[246].mxu0  ;;  %v2935_v40 = vpop.f32.mrb[246].mxu1 }
 0x2e7   :  { %4869 = vst.msk [vmem:[%s8591_s3 + $0x1e4] sm:$0xf] %vm4747_vm5, %v5780_v31  ;;  %vm3077_vm2 = vcmp.ge.f32.partialorder %v2421_v34, 0.0  ;;  %v3333_v41 = vmul.f32 0.1, %v2421_v34  ;;  %vm3205_vm3 = vcmp.ge.f32.partialorder %v2933_v35, 0.0  ;;  %v2424_v61 = vadd.f32 %v8408_v33, %v2423_v39 }
 0x2e8   :  { %v3461_v42 = vmul.f32 0.1, %v2933_v35  ;;  %4997 = vst.msk [vmem:[%s8591_s3 + $0x3e4] sm:$0xf] %vm4747_vm5, %v5908_v38  ;;  %v2936_v43 = vadd.f32 %v8408_v33, %v2935_v40  ;;  %v2425_v44 = vpop.f32.mrb[247].mxu0  ;;  %v2937_v45 = vpop.f32.mrb[247].mxu1 }
 0x2e9   :  { %v3589_v46 = vsel %vm3077_vm2, %v2421_v34, %v3333_v41  ;;  %vm3078_vm4 = vcmp.ge.f32.partialorder %v2424_v61, 0.0  ;;  %v3334_v51 = vmul.f32 0.1, %v2424_v61 }
 0x2ea   :  { %v3717_v48 = vsel %vm3205_vm3, %v2933_v35, %v3461_v42  ;;  %v5781_v49 = vpack.c.bf16 %v3589_v46, %v3589_v46  ;;  %vm3206_vm6 = vcmp.ge.f32.partialorder %v2936_v43, 0.0  ;;  %v3462_v52 = vmul.f32 0.1, %v2936_v43 }
 0x2eb   :  { %v5909_v50 = vpack.c.bf16 %v3717_v48, %v3717_v48  ;;  %v3590_v53 = vsel %vm3078_vm4, %v2424_v61, %v3334_v51 }
 0x2ec   :  { %4870 = vst.msk [vmem:[%s8591_s3 + $0x1e8] sm:$0xf] %vm4747_vm5, %v5781_v49  ;;  %v2428_v54 = vpop.f32.mrb[248].mxu0  ;;  %v2940_v55 = vpop.f32.mrb[248].mxu1  ;;  %v5782_v56 = vpack.c.bf16 %v3590_v53, %v3590_v53  ;;  %v3718_v57 = vsel %vm3206_vm6, %v2936_v43, %v3462_v52 }
 0x2ed   :  { %4998 = vst.msk [vmem:[%s8591_s3 + $0x3e8] sm:$0xf] %vm4747_vm5, %v5909_v50  ;;  %v2429_v58 = vadd.f32 %v8408_v33, %v2428_v54  ;;  %v2941_v59 = vadd.f32 %v8408_v33, %v2940_v55  ;;  %v2430_v60 = vpop.f32.mrb[249].mxu0  ;;  %v2942_v62 = vpop.f32.mrb[249].mxu1  ;;  %v5910_v63 = vpack.c.bf16 %v3718_v57, %v3718_v57 }
 0x2ee   :  { %v2431_v0 = vpop.f32.mrb[250].mxu0  ;;  %v2943_v1 = vpop.f32.mrb[250].mxu1  ;;  %4871 = vst.msk [vmem:[%s8591_s3 + $0x1ec] sm:$0xf] %vm4747_vm5, %v5782_v56 }
 0x2ef   :  { %vm3079_vm7 = vcmp.ge.f32.partialorder %v2429_v58, 0.0  ;;  %v3335_v2 = vmul.f32 0.1, %v2429_v58  ;;  %vm3207_vm0 = vcmp.ge.f32.partialorder %v2941_v59, 0.0  ;;  %v3463_v3 = vmul.f32 0.1, %v2941_v59 }
 0x2f0   :  { %4999 = vst.msk [vmem:[%s8591_s3 + $0x3ec] sm:$0xf] %vm4747_vm5, %v5910_v63  ;;  %v2432_v4 = vadd.f32 %v8408_v33, %v2431_v0  ;;  %v2944_v5 = vadd.f32 %v8408_v33, %v2943_v1  ;;  %v2433_v6 = vpop.f32.mrb[251].mxu0  ;;  %v2945_v7 = vpop.f32.mrb[251].mxu1 }
 0x2f1   :  { %v3591_v8 = vsel %vm3079_vm7, %v2429_v58, %v3335_v2  ;;  %v3719_v9 = vsel %vm3207_vm0, %v2941_v59, %v3463_v3 }
 0x2f2   :  { %v5783_v10 = vpack.c.bf16 %v3591_v8, %v3591_v8  ;;  %v5911_v11 = vpack.c.bf16 %v3719_v9, %v3719_v9  ;;  %vm3080_vm8 = vcmp.ge.f32.partialorder %v2432_v4, 0.0  ;;  %v3336_v12 = vmul.f32 0.1, %v2432_v4 }
 0x2f3   :  { %vm3208_vm9 = vcmp.ge.f32.partialorder %v2944_v5, 0.0  ;;  %v3464_v13 = vmul.f32 0.1, %v2944_v5 }
 0x2f4   :  { %4872 = vst.msk [vmem:[%s8591_s3 + $0x1f0] sm:$0xf] %vm4747_vm5, %v5783_v10  ;;  %5000 = vst.msk [vmem:[%s8591_s3 + $0x3f0] sm:$0xf] %vm4747_vm5, %v5911_v11  ;;  %v3592_v14 = vsel %vm3080_vm8, %v2432_v4, %v3336_v12  ;;  %v2436_v15 = vpop.f32.mrb[252].mxu0  ;;  %v2948_v16 = vpop.f32.mrb[252].mxu1 }
 0x2f5   :  { %v5784_v17 = vpack.c.bf16 %v3592_v14, %v3592_v14  ;;  %v3720_v18 = vsel %vm3208_vm9, %v2944_v5, %v3464_v13  ;;  %v2437_v19 = vadd.f32 %v8408_v33, %v2436_v15  ;;  %v2949_v20 = vadd.f32 %v8408_v33, %v2948_v16  ;;  %v2438_v21 = vpop.f32.mrb[253].mxu0  ;;  %v2950_v22 = vpop.f32.mrb[253].mxu1 }
 0x2f6   :  { %v5912_v23 = vpack.c.bf16 %v3720_v18, %v3720_v18  ;;  %v2439_v24 = vpop.f32.mrb[254].mxu0  ;;  %v2951_v25 = vpop.f32.mrb[254].mxu1 }
 0x2f7   :  { %4873 = vst.msk [vmem:[%s8591_s3 + $0x1f4] sm:$0xf] %vm4747_vm5, %v5784_v17  ;;  %vm3081_vm10 = vcmp.ge.f32.partialorder %v2437_v19, 0.0  ;;  %v3337_v26 = vmul.f32 0.1, %v2437_v19  ;;  %vm3209_vm11 = vcmp.ge.f32.partialorder %v2949_v20, 0.0  ;;  %v2440_v28 = vadd.f32 %v8408_v33, %v2439_v24 }
 0x2f8   :  { %v3465_v27 = vmul.f32 0.1, %v2949_v20  ;;  %5001 = vst.msk [vmem:[%s8591_s3 + $0x3f4] sm:$0xf] %vm4747_vm5, %v5912_v23  ;;  %v2952_v47 = vadd.f32 %v8408_v33, %v2951_v25  ;;  %v2441_v29 = vpop.f32.mrb[255].mxu0  ;;  %v2953_v30 = vpop.f32.mrb[255].mxu1 }
 0x2f9   :  { %v3593_v31 = vsel %vm3081_vm10, %v2437_v19, %v3337_v26  ;;  %vm3082_vm12 = vcmp.ge.f32.partialorder %v2440_v28, 0.0  ;;  %v3338_v36 = vmul.f32 0.1, %v2440_v28 }
 0x2fa   :  { %v3721_v32 = vsel %vm3209_vm11, %v2949_v20, %v3465_v27  ;;  %v5785_v34 = vpack.c.bf16 %v3593_v31, %v3593_v31  ;;  %vm3210_vm13 = vcmp.ge.f32.partialorder %v2952_v47, 0.0  ;;  %v3466_v37 = vmul.f32 0.1, %v2952_v47 }
 0x2fb   :  { %v5913_v35 = vpack.c.bf16 %v3721_v32, %v3721_v32  ;;  %v3594_v33 = vsel %vm3082_vm12, %v2440_v28, %v3338_v36 }
 0x2fc   :  { %4874 = vst.msk [vmem:[%s8591_s3 + $0x1f8] sm:$0xf] %vm4747_vm5, %v5785_v34  ;;  %v5786_v38 = vpack.c.bf16 %v3594_v33, %v3594_v33  ;;  %v3722_v39 = vsel %vm3210_vm13, %v2952_v47, %v3466_v37 }
 0x2fd   :  { %5002 = vst.msk [vmem:[%s8591_s3 + $0x3f8] sm:$0xf] %vm4747_vm5, %v5913_v35  ;;  %v5914_v40 = vpack.c.bf16 %v3722_v39, %v3722_v39 }
 0x2fe   :  { %4875 = vst.msk [vmem:[%s8591_s3 + $0x1fc] sm:$0xf] %vm4747_vm5, %v5786_v38 }
 0x2ff   :  { %5003 = vst.msk [vmem:[%s8591_s3 + $0x3fc] sm:$0xf] %vm4747_vm5, %v5914_v40 }

</bundles_post_ra>
